<compile_context>
chip_gen: v5e
topology: v5e:2x2
jax: 0.10.0
libtpu: 0.0.40
codegen_flags: <defaults>
</compile_context>

<pallas_src>
import functools

import jax
import jax.numpy as jnp
from jax.experimental import pallas as pl
from jax.experimental.pallas import tpu as pltpu

NEG_SLOPE = 0.2
BN_EPS = 1e-5
C = 128  # lane width; every conv channel dim is padded to this


# ----------------------------------------------------------------------------
# Fully fused forward kernel
# ----------------------------------------------------------------------------
def _fused_kernel(xp_ref, w0_ref, w1_ref, w2_ref, w3_ref,
                  scales_ref, shifts_ref,
                  lw1_ref, lb1_ref, lw2_ref, lb2_ref,
                  o_ref,
                  pad0, pad1, pad2, z0, z1, z2, fbuf,
                  *, B, L):
    L0, L1, L2, L3 = L
    Lp0, Lp1, Lp2 = L0 + 2, L1 + 2, L2 + 2

    # Zero the padded activation scratches once.  Interiors are overwritten below; the
    # first/last row of every per-sample segment stays zero and provides the k=3, p=1 halo.
    pad0[...] = jnp.zeros_like(pad0)
    pad1[...] = jnp.zeros_like(pad1)
    pad2[...] = jnp.zeros_like(pad2)

    def conv_taps(src, w_ref, rows):
        # One matmul per tap over ALL batch segments at once (each (Cin,128) weight tile is
        # pushed through the MXU exactly once per layer).  Results go to VMEM slabs so the
        # per-sample combine below can use cheap (optionally strided) sublane reads.
        lhs = src.astype(jnp.bfloat16)
        z0[0:rows, :] = jnp.dot(lhs, w_ref[0], preferred_element_type=jnp.float32)
        z1[0:rows, :] = jnp.dot(lhs, w_ref[1], preferred_element_type=jnp.float32)
        z2[0:rows, :] = jnp.dot(lhs, w_ref[2], preferred_element_type=jnp.float32)

    def affine_lrelu(y, li):
        # per-channel scale/shift (bias or folded eval-mode BN) + LeakyReLU(0.2), f32 VPU.
        y = y * scales_ref[li:li + 1, :] + shifts_ref[li:li + 1, :]
        return jnp.where(y >= 0.0, y, NEG_SLOPE * y)

    # ---- conv0_0 (k=3, s=1, p=1) + bias + lrelu ---------------------------------------
    conv_taps(xp_ref[...], w0_ref, B * Lp0)
    for b in range(B):
        r = b * Lp0
        y = z0[r:r + L0, :] + z1[r + 1:r + 1 + L0, :] + z2[r + 2:r + 2 + L0, :]
        pad0[r + 1:r + 1 + L0, :] = affine_lrelu(y, 0)

    # ---- conv0_1 (k=3, s=2, p=1) + bn0_1 + lrelu  (stride 2 = decimated tap reads) ----
    conv_taps(pad0[...], w1_ref, B * Lp0)
    for b in range(B):
        r = b * Lp0
        y = (z0[pl.ds(r, L1, stride=2), :]
             + z1[pl.ds(r + 1, L1, stride=2), :]
             + z2[pl.ds(r + 2, L1, stride=2), :])
        pad1[b * Lp1 + 1:b * Lp1 + 1 + L1, :] = affine_lrelu(y, 1)

    # ---- conv1_0 (k=3, s=1, p=1) + bn1_0 + lrelu --------------------------------------
    conv_taps(pad1[...], w2_ref, B * Lp1)
    for b in range(B):
        r = b * Lp1
        y = z0[r:r + L2, :] + z1[r + 1:r + 1 + L2, :] + z2[r + 2:r + 2 + L2, :]
        pad2[r + 1:r + 1 + L2, :] = affine_lrelu(y, 2)

    # ---- conv1_1 (k=3, s=2, p=1) + bn1_1 + lrelu -> final NLC features ----------------
    conv_taps(pad2[...], w3_ref, B * Lp2)
    for b in range(B):
        r = b * Lp2
        y = (z0[pl.ds(r, L3, stride=2), :]
             + z1[pl.ds(r + 1, L3, stride=2), :]
             + z2[pl.ds(r + 2, L3, stride=2), :])
        fbuf[b * L3:(b + 1) * L3, :] = affine_lrelu(y, 3)

    # ---- linear1 (PyTorch's channel-major flatten is folded into lw1's row order) -----
    # h[b, j] = sum_{l,c} f[b, l, c] * lw1[l, c, j]; each 128x128 tile is pushed once,
    # with the batch's row-l features gathered by a stride-L3 sublane read as the LHS.
    h = lb1_ref[...]                                                      # (1, 128) f32
    for l in range(L3):
        h = h + jnp.dot(fbuf[pl.ds(l, B, stride=L3), :].astype(jnp.bfloat16),
                        lw1_ref[l], preferred_element_type=jnp.float32)
    h = jnp.where(h >= 0.0, h, NEG_SLOPE * h)                             # (B, 128)

    # ---- linear2 as a lane reduction; single store of the whole batch -----------------
    o_ref[...] = jnp.sum(h * lw2_ref[...], axis=-1, keepdims=True) + lb2_ref[...]


def vgg_style_discriminator_1d(x_ncl, kp, input_size=49):
    """x_ncl: PyTorch-layout (B, num_in_ch, L) input; kp: prepared kernel params."""
    assert x_ncl.shape[2] == input_size, (
        f'Input size must be identical to input_size, but received {x_ncl.shape}.')
    B, cin, L0 = x_ncl.shape
    L1 = (L0 - 1) // 2 + 1          # conv k=3, s=2, p=1
    L2 = L1
    L3 = (L1 - 1) // 2 + 1

    # Tiny boundary glue only: NCL -> NLC, outer length pad, stack batch along sublanes.
    x = jnp.transpose(x_ncl, (0, 2, 1)).astype(jnp.float32)              # (B, L0, Cin)
    xp = jnp.pad(x, ((0, 0), (1, 1), (0, 0)))                            # (B, L0+2, Cin)
    xp = xp.reshape(B * (L0 + 2), cin)                                   # (B*(L0+2), Cin)

    inputs = (xp, kp['w0'], kp['w1'], kp['w2'], kp['w3'],
              kp['scales'], kp['shifts'],
              kp['lw1'], kp['lb1'], kp['lw2'], kp['lb2'])
    in_specs = [pl.BlockSpec(a.shape, lambda i, _n=a.ndim: (0,) * _n) for a in inputs]

    kernel = functools.partial(_fused_kernel, B=B, L=(L0, L1, L2, L3))
    return pl.pallas_call(
        kernel,
        out_shape=jax.ShapeDtypeStruct((B, 1), jnp.float32),
        grid=(1,),
        in_specs=in_specs,
        out_specs=pl.BlockSpec((B, 1), lambda i: (0, 0)),
        scratch_shapes=[
            pltpu.VMEM((B * (L0 + 2), C), jnp.float32),   # pad0: conv0_0 output (+halo)
            pltpu.VMEM((B * (L1 + 2), C), jnp.float32),   # pad1: conv0_1 output (+halo)
            pltpu.VMEM((B * (L2 + 2), C), jnp.float32),   # pad2: conv1_0 output (+halo)
            pltpu.VMEM((B * (L0 + 2), C), jnp.float32),   # z0: per-tap matmul slab
            pltpu.VMEM((B * (L0 + 2), C), jnp.float32),   # z1
            pltpu.VMEM((B * (L0 + 2), C), jnp.float32),   # z2
            pltpu.VMEM((B * L3, C), jnp.float32),         # final features, all samples
        ],
        compiler_params=pltpu.CompilerParams(dimension_semantics=("arbitrary",)),
    )(*inputs)


# ----------------------------------------------------------------------------
# Parameters: PyTorch-layout synthetic params + conversion to kernel layout
# ----------------------------------------------------------------------------
def init_module_params(key, num_in_ch, num_feat):
    nf, nf2 = num_feat, 2 * num_feat
    ks = jax.random.split(key, 15)

    def n(k, shape, s=0.05):
        return s * jax.random.normal(k, shape, jnp.float32)

    return {
        'conv0_0.weight': n(ks[0], (nf, num_in_ch, 3)),       # (Cout, Cin, K)
        'conv0_0.bias':   n(ks[1], (nf,)),
        'conv0_1.weight': n(ks[2], (nf, nf, 3)),
        'bn0_1.gamma':    1.0 + n(ks[3], (nf,)),
        'bn0_1.beta':     n(ks[4], (nf,)),
        'conv1_0.weight': n(ks[5], (nf2, nf, 3)),
        'bn1_0.gamma':    1.0 + n(ks[6], (nf2,)),
        'bn1_0.beta':     n(ks[7], (nf2,)),
        'conv1_1.weight': n(ks[8], (nf2, nf2, 3)),
        'bn1_1.gamma':    1.0 + n(ks[9], (nf2,)),
        'bn1_1.beta':     n(ks[10], (nf2,)),
        'linear1.weight': n(ks[11], (100, 1664), 0.02),       # (out, in)
        'linear1.bias':   n(ks[12], (100,), 0.02),
        'linear2.weight': n(ks[13], (1, 100), 0.02),
        'linear2.bias':   n(ks[14], (1,), 0.02),
    }


def prepare_kernel_params(p, num_feat, input_size):
    """One-time host-side repack: pad channels to 128 lanes, per-tap bf16 conv weights,
    fold eval-mode BN into scale/shift, fold the channel-major flatten into linear1."""
    nf, nf2 = num_feat, 2 * num_feat
    L0 = input_size
    L1 = (L0 - 1) // 2 + 1
    L3 = (L1 - 1) // 2 + 1
    assert nf2 == C and nf2 * L3 == p['linear1.weight'].shape[1]

    def conv_w(w, cin_pad, cout_pad):
        # PyTorch (Cout, Cin, K) -> kernel (K, cin_pad, cout_pad), zero-padded, bf16.
        cout, cin, _ = w.shape
        wt = jnp.transpose(w, (2, 1, 0))                                  # (K, Cin, Cout)
        wt = jnp.pad(wt, ((0, 0), (0, cin_pad - cin), (0, cout_pad - cout)))
        return wt.astype(jnp.bfloat16)

    def pad_vec(v, n):
        return jnp.pad(v.astype(jnp.float32), (0, n - v.shape[0]))

    # Eval-mode BN fold (running_mean=0, running_var=1).
    # TODO(synk): training-mode BatchNorm / real running statistics not implemented.
    inv = 1.0 / jnp.sqrt(1.0 + BN_EPS)
    scales = jnp.stack([
        pad_vec(jnp.ones((nf,), jnp.float32), C),
        pad_vec(p['bn0_1.gamma'] * inv, C),
        pad_vec(p['bn1_0.gamma'] * inv, C),
        pad_vec(p['bn1_1.gamma'] * inv, C),
    ])
    shifts = jnp.stack([
        pad_vec(p['conv0_0.bias'], C),
        pad_vec(p['bn0_1.beta'], C),
        pad_vec(p['bn1_0.beta'], C),
        pad_vec(p['bn1_1.beta'], C),
    ])

    # linear1: flat index = c*L3 + l (channel-major flatten of the NCL feature map).
    # Reorganize (1664, 100) -> (L3, 128, 100) = [l, c, j] and pad j to 128 lanes.
    w1 = jnp.transpose(p['linear1.weight'], (1, 0))                       # (1664, 100)
    w1 = w1.reshape(C, L3, 100).transpose(1, 0, 2)                        # (L3, C, 100)
    w1 = jnp.pad(w1, ((0, 0), (0, 0), (0, C - 100))).astype(jnp.bfloat16)

    return {
        'w0': conv_w(p['conv0_0.weight'], p['conv0_0.weight'].shape[1], C),
        'w1': conv_w(p['conv0_1.weight'], C, C),
        'w2': conv_w(p['conv1_0.weight'], C, C),
        'w3': conv_w(p['conv1_1.weight'], C, C),
        'scales': scales,
        'shifts': shifts,
        'lw1': w1,
        'lb1': pad_vec(p['linear1.bias'], C).reshape(1, C),
        'lw2': pad_vec(p['linear2.weight'].reshape(-1), C).reshape(1, C),
        'lb2': p['linear2.bias'].reshape(1, 1).astype(jnp.float32),
    }


if __name__ == "__main__":
    key = jax.random.PRNGKey(0)
    kx, kparam = jax.random.split(key)

    # num_feat=64 and input_size=49 are forced by nn.Linear(1664, 100): 2*64*13 == 1664.
    num_in_ch, num_feat, input_size = 4, 64, 49
    batch = 2

    x = jax.random.normal(kx, (batch, num_in_ch, input_size), jnp.float32)  # PyTorch NCL
    module_params = init_module_params(kparam, num_in_ch, num_feat)
    kernel_params = prepare_kernel_params(module_params, num_feat, input_size)

    fwd = jax.jit(functools.partial(vgg_style_discriminator_1d, input_size=input_size))
    out = fwd(x, kernel_params)
    out = jax.block_until_ready(out)
    assert out.shape == (batch, 1) and out.dtype == jnp.float32
    print("KERNEL_OK")
</pallas_src>

<mosaic_0001>
module attributes {stable_mosaic.version = 11 : i64} {
  func.func @_fused_kernel(%arg0: i32, %arg1: memref<102x4xf32, #tpu.memory_space<vmem>>, %arg2: memref<3x4x128xbf16, #tpu.memory_space<vmem>>, %arg3: memref<3x128x128xbf16, #tpu.memory_space<vmem>>, %arg4: memref<3x128x128xbf16, #tpu.memory_space<vmem>>, %arg5: memref<3x128x128xbf16, #tpu.memory_space<vmem>>, %arg6: memref<4x128xf32, #tpu.memory_space<vmem>>, %arg7: memref<4x128xf32, #tpu.memory_space<vmem>>, %arg8: memref<13x128x128xbf16, #tpu.memory_space<vmem>>, %arg9: memref<1x128xf32, #tpu.memory_space<vmem>>, %arg10: memref<1x128xf32, #tpu.memory_space<vmem>>, %arg11: memref<1x1xf32, #tpu.memory_space<vmem>>, %arg12: memref<2x1xf32, #tpu.memory_space<vmem>>, %arg13: memref<102x128xf32, #tpu.memory_space<vmem>>, %arg14: memref<54x128xf32, #tpu.memory_space<vmem>>, %arg15: memref<54x128xf32, #tpu.memory_space<vmem>>, %arg16: memref<102x128xf32, #tpu.memory_space<vmem>>, %arg17: memref<102x128xf32, #tpu.memory_space<vmem>>, %arg18: memref<102x128xf32, #tpu.memory_space<vmem>>, %arg19: memref<26x128xf32, #tpu.memory_space<vmem>>) attributes {dimension_semantics = [#tpu.dimension_semantics<arbitrary>], iteration_bounds = array<i64: 1>, scalar_prefetch = 0 : i64, scratch_operands = 7 : i64, tpu.core_type = #tpu.core_type<tc>, window_params = [{pipeline_mode = #tpu.pipeline_mode<synchronous>, transform_indices = @transform_0, window_bounds = array<i64: 102, 4>}, {pipeline_mode = #tpu.pipeline_mode<synchronous>, transform_indices = @transform_1, window_bounds = array<i64: 3, 4, 128>}, {pipeline_mode = #tpu.pipeline_mode<synchronous>, transform_indices = @transform_2, window_bounds = array<i64: 3, 128, 128>}, {pipeline_mode = #tpu.pipeline_mode<synchronous>, transform_indices = @transform_3, window_bounds = array<i64: 3, 128, 128>}, {pipeline_mode = #tpu.pipeline_mode<synchronous>, transform_indices = @transform_4, window_bounds = array<i64: 3, 128, 128>}, {pipeline_mode = #tpu.pipeline_mode<synchronous>, transform_indices = @transform_5, window_bounds = array<i64: 4, 128>}, {pipeline_mode = #tpu.pipeline_mode<synchronous>, transform_indices = @transform_6, window_bounds = array<i64: 4, 128>}, {pipeline_mode = #tpu.pipeline_mode<synchronous>, transform_indices = @transform_7, window_bounds = array<i64: 13, 128, 128>}, {pipeline_mode = #tpu.pipeline_mode<synchronous>, transform_indices = @transform_8, window_bounds = array<i64: 1, 128>}, {pipeline_mode = #tpu.pipeline_mode<synchronous>, transform_indices = @transform_9, window_bounds = array<i64: 1, 128>}, {pipeline_mode = #tpu.pipeline_mode<synchronous>, transform_indices = @transform_10, window_bounds = array<i64: 1, 1>}, {pipeline_mode = #tpu.pipeline_mode<synchronous>, transform_indices = @transform_11, window_bounds = array<i64: 2, 1>}]} {
    %cst = arith.constant 0.000000e+00 : f32
    %0 = vector.broadcast %cst : f32 to vector<102x128xf32>
    %c0 = arith.constant 0 : index
    %c0_0 = arith.constant 0 : index
    %1 = vector.load %arg13[%c0, %c0_0] : memref<102x128xf32, #tpu.memory_space<vmem>>, vector<102x128xf32>
    tpu.vector_store %arg13[%c0, %c0_0], %0 {strides = array<i32>} : memref<102x128xf32, #tpu.memory_space<vmem>>, vector<102x128xf32>,
    %cst_1 = arith.constant 0.000000e+00 : f32
    %2 = vector.broadcast %cst_1 : f32 to vector<54x128xf32>
    %c0_2 = arith.constant 0 : index
    %c0_3 = arith.constant 0 : index
    %3 = vector.load %arg14[%c0_2, %c0_3] : memref<54x128xf32, #tpu.memory_space<vmem>>, vector<54x128xf32>
    tpu.vector_store %arg14[%c0_2, %c0_3], %2 {strides = array<i32>} : memref<54x128xf32, #tpu.memory_space<vmem>>, vector<54x128xf32>,
    %cst_4 = arith.constant 0.000000e+00 : f32
    %4 = vector.broadcast %cst_4 : f32 to vector<54x128xf32>
    %c0_5 = arith.constant 0 : index
    %c0_6 = arith.constant 0 : index
    %5 = vector.load %arg15[%c0_5, %c0_6] : memref<54x128xf32, #tpu.memory_space<vmem>>, vector<54x128xf32>
    tpu.vector_store %arg15[%c0_5, %c0_6], %4 {strides = array<i32>} : memref<54x128xf32, #tpu.memory_space<vmem>>, vector<54x128xf32>,
    %c0_7 = arith.constant 0 : index
    %c0_8 = arith.constant 0 : index
    %6 = vector.load %arg1[%c0_7, %c0_8] : memref<102x4xf32, #tpu.memory_space<vmem>>, vector<102x4xf32>
    %7 = arith.truncf %6 : vector<102x4xf32> to vector<102x4xbf16>
    %c0_9 = arith.constant 0 : index
    %c0_10 = arith.constant 0 : index
    %c0_11 = arith.constant 0 : index
    %8 = vector.load %arg2[%c0_9, %c0_10, %c0_11] : memref<3x4x128xbf16, #tpu.memory_space<vmem>>, vector<1x4x128xbf16>
    %9 = vector.shape_cast %8 : vector<1x4x128xbf16> to vector<4x128xbf16>
    %cst_12 = arith.constant dense<0.000000e+00> : vector<102x128xf32>
    %10 = tpu.matmul %7, %9, %cst_12 {dimension_numbers = #tpu.dot_dimension_numbers<[1], [0], [0], [1], [0, 0, 1, 1], [], []>} : vector<102x4xbf16>, vector<4x128xbf16>, vector<102x128xf32> -> vector<102x128xf32>
    %c0_13 = arith.constant 0 : index
    %c0_14 = arith.constant 0 : index
    %11 = vector.load %arg16[%c0_13, %c0_14] : memref<102x128xf32, #tpu.memory_space<vmem>>, vector<102x128xf32>
    tpu.vector_store %arg16[%c0_13, %c0_14], %10 {strides = array<i32>} : memref<102x128xf32, #tpu.memory_space<vmem>>, vector<102x128xf32>,
    %c1 = arith.constant 1 : index
    %c0_15 = arith.constant 0 : index
    %c0_16 = arith.constant 0 : index
    %12 = vector.load %arg2[%c1, %c0_15, %c0_16] : memref<3x4x128xbf16, #tpu.memory_space<vmem>>, vector<1x4x128xbf16>
    %13 = vector.shape_cast %12 : vector<1x4x128xbf16> to vector<4x128xbf16>
    %cst_17 = arith.constant dense<0.000000e+00> : vector<102x128xf32>
    %14 = tpu.matmul %7, %13, %cst_17 {dimension_numbers = #tpu.dot_dimension_numbers<[1], [0], [0], [1], [0, 0, 1, 1], [], []>} : vector<102x4xbf16>, vector<4x128xbf16>, vector<102x128xf32> -> vector<102x128xf32>
    %c0_18 = arith.constant 0 : index
    %c0_19 = arith.constant 0 : index
    %15 = vector.load %arg17[%c0_18, %c0_19] : memref<102x128xf32, #tpu.memory_space<vmem>>, vector<102x128xf32>
    tpu.vector_store %arg17[%c0_18, %c0_19], %14 {strides = array<i32>} : memref<102x128xf32, #tpu.memory_space<vmem>>, vector<102x128xf32>,
    %c2 = arith.constant 2 : index
    %c0_20 = arith.constant 0 : index
    %c0_21 = arith.constant 0 : index
    %16 = vector.load %arg2[%c2, %c0_20, %c0_21] : memref<3x4x128xbf16, #tpu.memory_space<vmem>>, vector<1x4x128xbf16>
    %17 = vector.shape_cast %16 : vector<1x4x128xbf16> to vector<4x128xbf16>
    %cst_22 = arith.constant dense<0.000000e+00> : vector<102x128xf32>
    %18 = tpu.matmul %7, %17, %cst_22 {dimension_numbers = #tpu.dot_dimension_numbers<[1], [0], [0], [1], [0, 0, 1, 1], [], []>} : vector<102x4xbf16>, vector<4x128xbf16>, vector<102x128xf32> -> vector<102x128xf32>
    %c0_23 = arith.constant 0 : index
    %c0_24 = arith.constant 0 : index
    %19 = vector.load %arg18[%c0_23, %c0_24] : memref<102x128xf32, #tpu.memory_space<vmem>>, vector<102x128xf32>
    tpu.vector_store %arg18[%c0_23, %c0_24], %18 {strides = array<i32>} : memref<102x128xf32, #tpu.memory_space<vmem>>, vector<102x128xf32>,
    %c0_25 = arith.constant 0 : index
    %c0_26 = arith.constant 0 : index
    %20 = vector.load %arg16[%c0_25, %c0_26] : memref<102x128xf32, #tpu.memory_space<vmem>>, vector<49x128xf32>
    %c1_27 = arith.constant 1 : index
    %c0_28 = arith.constant 0 : index
    %21 = vector.load %arg17[%c1_27, %c0_28] : memref<102x128xf32, #tpu.memory_space<vmem>>, vector<49x128xf32>
    %22 = arith.addf %20, %21 : vector<49x128xf32>
    %c2_29 = arith.constant 2 : index
    %c0_30 = arith.constant 0 : index
    %23 = vector.load %arg18[%c2_29, %c0_30] : memref<102x128xf32, #tpu.memory_space<vmem>>, vector<49x128xf32>
    %24 = arith.addf %22, %23 : vector<49x128xf32>
    %c0_31 = arith.constant 0 : index
    %c0_32 = arith.constant 0 : index
    %25 = vector.load %arg6[%c0_31, %c0_32] : memref<4x128xf32, #tpu.memory_space<vmem>>, vector<1x128xf32>
    %26 = vector.broadcast %25 : vector<1x128xf32> to vector<49x128xf32>
    %27 = arith.mulf %24, %26 : vector<49x128xf32>
    %c0_33 = arith.constant 0 : index
    %c0_34 = arith.constant 0 : index
    %28 = vector.load %arg7[%c0_33, %c0_34] : memref<4x128xf32, #tpu.memory_space<vmem>>, vector<1x128xf32>
    %29 = vector.broadcast %28 : vector<1x128xf32> to vector<49x128xf32>
    %30 = arith.addf %27, %29 : vector<49x128xf32>
    %cst_35 = arith.constant 0.000000e+00 : f32
    %31 = vector.broadcast %cst_35 : f32 to vector<49x128xf32>
    %32 = arith.cmpf oge, %30, %31 : vector<49x128xf32>
    %cst_36 = arith.constant 2.000000e-01 : f32
    %33 = vector.broadcast %cst_36 : f32 to vector<49x128xf32>
    %34 = arith.mulf %33, %30 : vector<49x128xf32>
    %35 = arith.select %32, %30, %34 : vector<49x128xi1>, vector<49x128xf32>
    %c1_37 = arith.constant 1 : index
    %c0_38 = arith.constant 0 : index
    %36 = vector.load %arg13[%c1_37, %c0_38] : memref<102x128xf32, #tpu.memory_space<vmem>>, vector<49x128xf32>
    tpu.vector_store %arg13[%c1_37, %c0_38], %35 {strides = array<i32>} : memref<102x128xf32, #tpu.memory_space<vmem>>, vector<49x128xf32>,
    %c51 = arith.constant 51 : index
    %c0_39 = arith.constant 0 : index
    %37 = vector.load %arg16[%c51, %c0_39] : memref<102x128xf32, #tpu.memory_space<vmem>>, vector<49x128xf32>
    %c52 = arith.constant 52 : index
    %c0_40 = arith.constant 0 : index
    %38 = vector.load %arg17[%c52, %c0_40] : memref<102x128xf32, #tpu.memory_space<vmem>>, vector<49x128xf32>
    %39 = arith.addf %37, %38 : vector<49x128xf32>
    %c53 = arith.constant 53 : index
    %c0_41 = arith.constant 0 : index
    %40 = vector.load %arg18[%c53, %c0_41] : memref<102x128xf32, #tpu.memory_space<vmem>>, vector<49x128xf32>
    %41 = arith.addf %39, %40 : vector<49x128xf32>
    %c0_42 = arith.constant 0 : index
    %c0_43 = arith.constant 0 : index
    %42 = vector.load %arg6[%c0_42, %c0_43] : memref<4x128xf32, #tpu.memory_space<vmem>>, vector<1x128xf32>
    %43 = vector.broadcast %42 : vector<1x128xf32> to vector<49x128xf32>
    %44 = arith.mulf %41, %43 : vector<49x128xf32>
    %c0_44 = arith.constant 0 : index
    %c0_45 = arith.constant 0 : index
    %45 = vector.load %arg7[%c0_44, %c0_45] : memref<4x128xf32, #tpu.memory_space<vmem>>, vector<1x128xf32>
    %46 = vector.broadcast %45 : vector<1x128xf32> to vector<49x128xf32>
    %47 = arith.addf %44, %46 : vector<49x128xf32>
    %cst_46 = arith.constant 0.000000e+00 : f32
    %48 = vector.broadcast %cst_46 : f32 to vector<49x128xf32>
    %49 = arith.cmpf oge, %47, %48 : vector<49x128xf32>
    %cst_47 = arith.constant 2.000000e-01 : f32
    %50 = vector.broadcast %cst_47 : f32 to vector<49x128xf32>
    %51 = arith.mulf %50, %47 : vector<49x128xf32>
    %52 = arith.select %49, %47, %51 : vector<49x128xi1>, vector<49x128xf32>
    %c52_48 = arith.constant 52 : index
    %c0_49 = arith.constant 0 : index
    %53 = vector.load %arg13[%c52_48, %c0_49] : memref<102x128xf32, #tpu.memory_space<vmem>>, vector<49x128xf32>
    tpu.vector_store %arg13[%c52_48, %c0_49], %52 {strides = array<i32>} : memref<102x128xf32, #tpu.memory_space<vmem>>, vector<49x128xf32>,
    %c0_50 = arith.constant 0 : index
    %c0_51 = arith.constant 0 : index
    %54 = vector.load %arg13[%c0_50, %c0_51] : memref<102x128xf32, #tpu.memory_space<vmem>>, vector<102x128xf32>
    %55 = arith.truncf %54 : vector<102x128xf32> to vector<102x128xbf16>
    %c0_52 = arith.constant 0 : index
    %c0_53 = arith.constant 0 : index
    %c0_54 = arith.constant 0 : index
    %56 = vector.load %arg3[%c0_52, %c0_53, %c0_54] : memref<3x128x128xbf16, #tpu.memory_space<vmem>>, vector<1x128x128xbf16>
    %57 = vector.shape_cast %56 : vector<1x128x128xbf16> to vector<128x128xbf16>
    %cst_55 = arith.constant dense<0.000000e+00> : vector<102x128xf32>
    %58 = tpu.matmul %55, %57, %cst_55 {dimension_numbers = #tpu.dot_dimension_numbers<[1], [0], [0], [1], [0, 0, 1, 1], [], []>} : vector<102x128xbf16>, vector<128x128xbf16>, vector<102x128xf32> -> vector<102x128xf32>
    %c0_56 = arith.constant 0 : index
    %c0_57 = arith.constant 0 : index
    %59 = vector.load %arg16[%c0_56, %c0_57] : memref<102x128xf32, #tpu.memory_space<vmem>>, vector<102x128xf32>
    tpu.vector_store %arg16[%c0_56, %c0_57], %58 {strides = array<i32>} : memref<102x128xf32, #tpu.memory_space<vmem>>, vector<102x128xf32>,
    %c1_58 = arith.constant 1 : index
    %c0_59 = arith.constant 0 : index
    %c0_60 = arith.constant 0 : index
    %60 = vector.load %arg3[%c1_58, %c0_59, %c0_60] : memref<3x128x128xbf16, #tpu.memory_space<vmem>>, vector<1x128x128xbf16>
    %61 = vector.shape_cast %60 : vector<1x128x128xbf16> to vector<128x128xbf16>
    %cst_61 = arith.constant dense<0.000000e+00> : vector<102x128xf32>
    %62 = tpu.matmul %55, %61, %cst_61 {dimension_numbers = #tpu.dot_dimension_numbers<[1], [0], [0], [1], [0, 0, 1, 1], [], []>} : vector<102x128xbf16>, vector<128x128xbf16>, vector<102x128xf32> -> vector<102x128xf32>
    %c0_62 = arith.constant 0 : index
    %c0_63 = arith.constant 0 : index
    %63 = vector.load %arg17[%c0_62, %c0_63] : memref<102x128xf32, #tpu.memory_space<vmem>>, vector<102x128xf32>
    tpu.vector_store %arg17[%c0_62, %c0_63], %62 {strides = array<i32>} : memref<102x128xf32, #tpu.memory_space<vmem>>, vector<102x128xf32>,
    %c2_64 = arith.constant 2 : index
    %c0_65 = arith.constant 0 : index
    %c0_66 = arith.constant 0 : index
    %64 = vector.load %arg3[%c2_64, %c0_65, %c0_66] : memref<3x128x128xbf16, #tpu.memory_space<vmem>>, vector<1x128x128xbf16>
    %65 = vector.shape_cast %64 : vector<1x128x128xbf16> to vector<128x128xbf16>
    %cst_67 = arith.constant dense<0.000000e+00> : vector<102x128xf32>
    %66 = tpu.matmul %55, %65, %cst_67 {dimension_numbers = #tpu.dot_dimension_numbers<[1], [0], [0], [1], [0, 0, 1, 1], [], []>} : vector<102x128xbf16>, vector<128x128xbf16>, vector<102x128xf32> -> vector<102x128xf32>
    %c0_68 = arith.constant 0 : index
    %c0_69 = arith.constant 0 : index
    %67 = vector.load %arg18[%c0_68, %c0_69] : memref<102x128xf32, #tpu.memory_space<vmem>>, vector<102x128xf32>
    tpu.vector_store %arg18[%c0_68, %c0_69], %66 {strides = array<i32>} : memref<102x128xf32, #tpu.memory_space<vmem>>, vector<102x128xf32>,
    %c0_70 = arith.constant 0 : index
    %c0_71 = arith.constant 0 : index
    %68 = tpu.strided_load %arg16[%c0_70, %c0_71] {strides = array<i32: 2, 1>} : memref<102x128xf32, #tpu.memory_space<vmem>>, vector<25x128xf32>
    %c1_72 = arith.constant 1 : index
    %c0_73 = arith.constant 0 : index
    %69 = tpu.strided_load %arg17[%c1_72, %c0_73] {strides = array<i32: 2, 1>} : memref<102x128xf32, #tpu.memory_space<vmem>>, vector<25x128xf32>
    %70 = arith.addf %68, %69 : vector<25x128xf32>
    %c2_74 = arith.constant 2 : index
    %c0_75 = arith.constant 0 : index
    %71 = tpu.strided_load %arg18[%c2_74, %c0_75] {strides = array<i32: 2, 1>} : memref<102x128xf32, #tpu.memory_space<vmem>>, vector<25x128xf32>
    %72 = arith.addf %70, %71 : vector<25x128xf32>
    %c1_76 = arith.constant 1 : index
    %c0_77 = arith.constant 0 : index
    %73 = vector.load %arg6[%c1_76, %c0_77] : memref<4x128xf32, #tpu.memory_space<vmem>>, vector<1x128xf32>
    %74 = vector.broadcast %73 : vector<1x128xf32> to vector<25x128xf32>
    %75 = arith.mulf %72, %74 : vector<25x128xf32>
    %c1_78 = arith.constant 1 : index
    %c0_79 = arith.constant 0 : index
    %76 = vector.load %arg7[%c1_78, %c0_79] : memref<4x128xf32, #tpu.memory_space<vmem>>, vector<1x128xf32>
    %77 = vector.broadcast %76 : vector<1x128xf32> to vector<25x128xf32>
    %78 = arith.addf %75, %77 : vector<25x128xf32>
    %cst_80 = arith.constant 0.000000e+00 : f32
    %79 = vector.broadcast %cst_80 : f32 to vector<25x128xf32>
    %80 = arith.cmpf oge, %78, %79 : vector<25x128xf32>
    %cst_81 = arith.constant 2.000000e-01 : f32
    %81 = vector.broadcast %cst_81 : f32 to vector<25x128xf32>
    %82 = arith.mulf %81, %78 : vector<25x128xf32>
    %83 = arith.select %80, %78, %82 : vector<25x128xi1>, vector<25x128xf32>
    %c1_82 = arith.constant 1 : index
    %c0_83 = arith.constant 0 : index
    %84 = vector.load %arg14[%c1_82, %c0_83] : memref<54x128xf32, #tpu.memory_space<vmem>>, vector<25x128xf32>
    tpu.vector_store %arg14[%c1_82, %c0_83], %83 {strides = array<i32>} : memref<54x128xf32, #tpu.memory_space<vmem>>, vector<25x128xf32>,
    %c51_84 = arith.constant 51 : index
    %c0_85 = arith.constant 0 : index
    %85 = tpu.strided_load %arg16[%c51_84, %c0_85] {strides = array<i32: 2, 1>} : memref<102x128xf32, #tpu.memory_space<vmem>>, vector<25x128xf32>
    %c52_86 = arith.constant 52 : index
    %c0_87 = arith.constant 0 : index
    %86 = tpu.strided_load %arg17[%c52_86, %c0_87] {strides = array<i32: 2, 1>} : memref<102x128xf32, #tpu.memory_space<vmem>>, vector<25x128xf32>
    %87 = arith.addf %85, %86 : vector<25x128xf32>
    %c53_88 = arith.constant 53 : index
    %c0_89 = arith.constant 0 : index
    %88 = tpu.strided_load %arg18[%c53_88, %c0_89] {strides = array<i32: 2, 1>} : memref<102x128xf32, #tpu.memory_space<vmem>>, vector<25x128xf32>
    %89 = arith.addf %87, %88 : vector<25x128xf32>
    %c1_90 = arith.constant 1 : index
    %c0_91 = arith.constant 0 : index
    %90 = vector.load %arg6[%c1_90, %c0_91] : memref<4x128xf32, #tpu.memory_space<vmem>>, vector<1x128xf32>
    %91 = vector.broadcast %90 : vector<1x128xf32> to vector<25x128xf32>
    %92 = arith.mulf %89, %91 : vector<25x128xf32>
    %c1_92 = arith.constant 1 : index
    %c0_93 = arith.constant 0 : index
    %93 = vector.load %arg7[%c1_92, %c0_93] : memref<4x128xf32, #tpu.memory_space<vmem>>, vector<1x128xf32>
    %94 = vector.broadcast %93 : vector<1x128xf32> to vector<25x128xf32>
    %95 = arith.addf %92, %94 : vector<25x128xf32>
    %cst_94 = arith.constant 0.000000e+00 : f32
    %96 = vector.broadcast %cst_94 : f32 to vector<25x128xf32>
    %97 = arith.cmpf oge, %95, %96 : vector<25x128xf32>
    %cst_95 = arith.constant 2.000000e-01 : f32
    %98 = vector.broadcast %cst_95 : f32 to vector<25x128xf32>
    %99 = arith.mulf %98, %95 : vector<25x128xf32>
    %100 = arith.select %97, %95, %99 : vector<25x128xi1>, vector<25x128xf32>
    %c28 = arith.constant 28 : index
    %c0_96 = arith.constant 0 : index
    %101 = vector.load %arg14[%c28, %c0_96] : memref<54x128xf32, #tpu.memory_space<vmem>>, vector<25x128xf32>
    tpu.vector_store %arg14[%c28, %c0_96], %100 {strides = array<i32>} : memref<54x128xf32, #tpu.memory_space<vmem>>, vector<25x128xf32>,
    %c0_97 = arith.constant 0 : index
    %c0_98 = arith.constant 0 : index
    %102 = vector.load %arg14[%c0_97, %c0_98] : memref<54x128xf32, #tpu.memory_space<vmem>>, vector<54x128xf32>
    %103 = arith.truncf %102 : vector<54x128xf32> to vector<54x128xbf16>
    %c0_99 = arith.constant 0 : index
    %c0_100 = arith.constant 0 : index
    %c0_101 = arith.constant 0 : index
    %104 = vector.load %arg4[%c0_99, %c0_100, %c0_101] : memref<3x128x128xbf16, #tpu.memory_space<vmem>>, vector<1x128x128xbf16>
    %105 = vector.shape_cast %104 : vector<1x128x128xbf16> to vector<128x128xbf16>
    %cst_102 = arith.constant dense<0.000000e+00> : vector<54x128xf32>
    %106 = tpu.matmul %103, %105, %cst_102 {dimension_numbers = #tpu.dot_dimension_numbers<[1], [0], [0], [1], [0, 0, 1, 1], [], []>} : vector<54x128xbf16>, vector<128x128xbf16>, vector<54x128xf32> -> vector<54x128xf32>
    %c0_103 = arith.constant 0 : index
    %c0_104 = arith.constant 0 : index
    %107 = vector.load %arg16[%c0_103, %c0_104] : memref<102x128xf32, #tpu.memory_space<vmem>>, vector<54x128xf32>
    tpu.vector_store %arg16[%c0_103, %c0_104], %106 {strides = array<i32>} : memref<102x128xf32, #tpu.memory_space<vmem>>, vector<54x128xf32>,
    %c1_105 = arith.constant 1 : index
    %c0_106 = arith.constant 0 : index
    %c0_107 = arith.constant 0 : index
    %108 = vector.load %arg4[%c1_105, %c0_106, %c0_107] : memref<3x128x128xbf16, #tpu.memory_space<vmem>>, vector<1x128x128xbf16>
    %109 = vector.shape_cast %108 : vector<1x128x128xbf16> to vector<128x128xbf16>
    %cst_108 = arith.constant dense<0.000000e+00> : vector<54x128xf32>
    %110 = tpu.matmul %103, %109, %cst_108 {dimension_numbers = #tpu.dot_dimension_numbers<[1], [0], [0], [1], [0, 0, 1, 1], [], []>} : vector<54x128xbf16>, vector<128x128xbf16>, vector<54x128xf32> -> vector<54x128xf32>
    %c0_109 = arith.constant 0 : index
    %c0_110 = arith.constant 0 : index
    %111 = vector.load %arg17[%c0_109, %c0_110] : memref<102x128xf32, #tpu.memory_space<vmem>>, vector<54x128xf32>
    tpu.vector_store %arg17[%c0_109, %c0_110], %110 {strides = array<i32>} : memref<102x128xf32, #tpu.memory_space<vmem>>, vector<54x128xf32>,
    %c2_111 = arith.constant 2 : index
    %c0_112 = arith.constant 0 : index
    %c0_113 = arith.constant 0 : index
    %112 = vector.load %arg4[%c2_111, %c0_112, %c0_113] : memref<3x128x128xbf16, #tpu.memory_space<vmem>>, vector<1x128x128xbf16>
    %113 = vector.shape_cast %112 : vector<1x128x128xbf16> to vector<128x128xbf16>
    %cst_114 = arith.constant dense<0.000000e+00> : vector<54x128xf32>
    %114 = tpu.matmul %103, %113, %cst_114 {dimension_numbers = #tpu.dot_dimension_numbers<[1], [0], [0], [1], [0, 0, 1, 1], [], []>} : vector<54x128xbf16>, vector<128x128xbf16>, vector<54x128xf32> -> vector<54x128xf32>
    %c0_115 = arith.constant 0 : index
    %c0_116 = arith.constant 0 : index
    %115 = vector.load %arg18[%c0_115, %c0_116] : memref<102x128xf32, #tpu.memory_space<vmem>>, vector<54x128xf32>
    tpu.vector_store %arg18[%c0_115, %c0_116], %114 {strides = array<i32>} : memref<102x128xf32, #tpu.memory_space<vmem>>, vector<54x128xf32>,
    %c0_117 = arith.constant 0 : index
    %c0_118 = arith.constant 0 : index
    %116 = vector.load %arg16[%c0_117, %c0_118] : memref<102x128xf32, #tpu.memory_space<vmem>>, vector<25x128xf32>
    %c1_119 = arith.constant 1 : index
    %c0_120 = arith.constant 0 : index
    %117 = vector.load %arg17[%c1_119, %c0_120] : memref<102x128xf32, #tpu.memory_space<vmem>>, vector<25x128xf32>
    %118 = arith.addf %116, %117 : vector<25x128xf32>
    %c2_121 = arith.constant 2 : index
    %c0_122 = arith.constant 0 : index
    %119 = vector.load %arg18[%c2_121, %c0_122] : memref<102x128xf32, #tpu.memory_space<vmem>>, vector<25x128xf32>
    %120 = arith.addf %118, %119 : vector<25x128xf32>
    %c2_123 = arith.constant 2 : index
    %c0_124 = arith.constant 0 : index
    %121 = vector.load %arg6[%c2_123, %c0_124] : memref<4x128xf32, #tpu.memory_space<vmem>>, vector<1x128xf32>
    %122 = vector.broadcast %121 : vector<1x128xf32> to vector<25x128xf32>
    %123 = arith.mulf %120, %122 : vector<25x128xf32>
    %c2_125 = arith.constant 2 : index
    %c0_126 = arith.constant 0 : index
    %124 = vector.load %arg7[%c2_125, %c0_126] : memref<4x128xf32, #tpu.memory_space<vmem>>, vector<1x128xf32>
    %125 = vector.broadcast %124 : vector<1x128xf32> to vector<25x128xf32>
    %126 = arith.addf %123, %125 : vector<25x128xf32>
    %cst_127 = arith.constant 0.000000e+00 : f32
    %127 = vector.broadcast %cst_127 : f32 to vector<25x128xf32>
    %128 = arith.cmpf oge, %126, %127 : vector<25x128xf32>
    %cst_128 = arith.constant 2.000000e-01 : f32
    %129 = vector.broadcast %cst_128 : f32 to vector<25x128xf32>
    %130 = arith.mulf %129, %126 : vector<25x128xf32>
    %131 = arith.select %128, %126, %130 : vector<25x128xi1>, vector<25x128xf32>
    %c1_129 = arith.constant 1 : index
    %c0_130 = arith.constant 0 : index
    %132 = vector.load %arg15[%c1_129, %c0_130] : memref<54x128xf32, #tpu.memory_space<vmem>>, vector<25x128xf32>
    tpu.vector_store %arg15[%c1_129, %c0_130], %131 {strides = array<i32>} : memref<54x128xf32, #tpu.memory_space<vmem>>, vector<25x128xf32>,
    %c27 = arith.constant 27 : index
    %c0_131 = arith.constant 0 : index
    %133 = vector.load %arg16[%c27, %c0_131] : memref<102x128xf32, #tpu.memory_space<vmem>>, vector<25x128xf32>
    %c28_132 = arith.constant 28 : index
    %c0_133 = arith.constant 0 : index
    %134 = vector.load %arg17[%c28_132, %c0_133] : memref<102x128xf32, #tpu.memory_space<vmem>>, vector<25x128xf32>
    %135 = arith.addf %133, %134 : vector<25x128xf32>
    %c29 = arith.constant 29 : index
    %c0_134 = arith.constant 0 : index
    %136 = vector.load %arg18[%c29, %c0_134] : memref<102x128xf32, #tpu.memory_space<vmem>>, vector<25x128xf32>
    %137 = arith.addf %135, %136 : vector<25x128xf32>
    %c2_135 = arith.constant 2 : index
    %c0_136 = arith.constant 0 : index
    %138 = vector.load %arg6[%c2_135, %c0_136] : memref<4x128xf32, #tpu.memory_space<vmem>>, vector<1x128xf32>
    %139 = vector.broadcast %138 : vector<1x128xf32> to vector<25x128xf32>
    %140 = arith.mulf %137, %139 : vector<25x128xf32>
    %c2_137 = arith.constant 2 : index
    %c0_138 = arith.constant 0 : index
    %141 = vector.load %arg7[%c2_137, %c0_138] : memref<4x128xf32, #tpu.memory_space<vmem>>, vector<1x128xf32>
    %142 = vector.broadcast %141 : vector<1x128xf32> to vector<25x128xf32>
    %143 = arith.addf %140, %142 : vector<25x128xf32>
    %cst_139 = arith.constant 0.000000e+00 : f32
    %144 = vector.broadcast %cst_139 : f32 to vector<25x128xf32>
    %145 = arith.cmpf oge, %143, %144 : vector<25x128xf32>
    %cst_140 = arith.constant 2.000000e-01 : f32
    %146 = vector.broadcast %cst_140 : f32 to vector<25x128xf32>
    %147 = arith.mulf %146, %143 : vector<25x128xf32>
    %148 = arith.select %145, %143, %147 : vector<25x128xi1>, vector<25x128xf32>
    %c28_141 = arith.constant 28 : index
    %c0_142 = arith.constant 0 : index
    %149 = vector.load %arg15[%c28_141, %c0_142] : memref<54x128xf32, #tpu.memory_space<vmem>>, vector<25x128xf32>
    tpu.vector_store %arg15[%c28_141, %c0_142], %148 {strides = array<i32>} : memref<54x128xf32, #tpu.memory_space<vmem>>, vector<25x128xf32>,
    %c0_143 = arith.constant 0 : index
    %c0_144 = arith.constant 0 : index
    %150 = vector.load %arg15[%c0_143, %c0_144] : memref<54x128xf32, #tpu.memory_space<vmem>>, vector<54x128xf32>
    %151 = arith.truncf %150 : vector<54x128xf32> to vector<54x128xbf16>
    %c0_145 = arith.constant 0 : index
    %c0_146 = arith.constant 0 : index
    %c0_147 = arith.constant 0 : index
    %152 = vector.load %arg5[%c0_145, %c0_146, %c0_147] : memref<3x128x128xbf16, #tpu.memory_space<vmem>>, vector<1x128x128xbf16>
    %153 = vector.shape_cast %152 : vector<1x128x128xbf16> to vector<128x128xbf16>
    %cst_148 = arith.constant dense<0.000000e+00> : vector<54x128xf32>
    %154 = tpu.matmul %151, %153, %cst_148 {dimension_numbers = #tpu.dot_dimension_numbers<[1], [0], [0], [1], [0, 0, 1, 1], [], []>} : vector<54x128xbf16>, vector<128x128xbf16>, vector<54x128xf32> -> vector<54x128xf32>
    %c0_149 = arith.constant 0 : index
    %c0_150 = arith.constant 0 : index
    %155 = vector.load %arg16[%c0_149, %c0_150] : memref<102x128xf32, #tpu.memory_space<vmem>>, vector<54x128xf32>
    tpu.vector_store %arg16[%c0_149, %c0_150], %154 {strides = array<i32>} : memref<102x128xf32, #tpu.memory_space<vmem>>, vector<54x128xf32>,
    %c1_151 = arith.constant 1 : index
    %c0_152 = arith.constant 0 : index
    %c0_153 = arith.constant 0 : index
    %156 = vector.load %arg5[%c1_151, %c0_152, %c0_153] : memref<3x128x128xbf16, #tpu.memory_space<vmem>>, vector<1x128x128xbf16>
    %157 = vector.shape_cast %156 : vector<1x128x128xbf16> to vector<128x128xbf16>
    %cst_154 = arith.constant dense<0.000000e+00> : vector<54x128xf32>
    %158 = tpu.matmul %151, %157, %cst_154 {dimension_numbers = #tpu.dot_dimension_numbers<[1], [0], [0], [1], [0, 0, 1, 1], [], []>} : vector<54x128xbf16>, vector<128x128xbf16>, vector<54x128xf32> -> vector<54x128xf32>
    %c0_155 = arith.constant 0 : index
    %c0_156 = arith.constant 0 : index
    %159 = vector.load %arg17[%c0_155, %c0_156] : memref<102x128xf32, #tpu.memory_space<vmem>>, vector<54x128xf32>
    tpu.vector_store %arg17[%c0_155, %c0_156], %158 {strides = array<i32>} : memref<102x128xf32, #tpu.memory_space<vmem>>, vector<54x128xf32>,
    %c2_157 = arith.constant 2 : index
    %c0_158 = arith.constant 0 : index
    %c0_159 = arith.constant 0 : index
    %160 = vector.load %arg5[%c2_157, %c0_158, %c0_159] : memref<3x128x128xbf16, #tpu.memory_space<vmem>>, vector<1x128x128xbf16>
    %161 = vector.shape_cast %160 : vector<1x128x128xbf16> to vector<128x128xbf16>
    %cst_160 = arith.constant dense<0.000000e+00> : vector<54x128xf32>
    %162 = tpu.matmul %151, %161, %cst_160 {dimension_numbers = #tpu.dot_dimension_numbers<[1], [0], [0], [1], [0, 0, 1, 1], [], []>} : vector<54x128xbf16>, vector<128x128xbf16>, vector<54x128xf32> -> vector<54x128xf32>
    %c0_161 = arith.constant 0 : index
    %c0_162 = arith.constant 0 : index
    %163 = vector.load %arg18[%c0_161, %c0_162] : memref<102x128xf32, #tpu.memory_space<vmem>>, vector<54x128xf32>
    tpu.vector_store %arg18[%c0_161, %c0_162], %162 {strides = array<i32>} : memref<102x128xf32, #tpu.memory_space<vmem>>, vector<54x128xf32>,
    %c0_163 = arith.constant 0 : index
    %c0_164 = arith.constant 0 : index
    %164 = tpu.strided_load %arg16[%c0_163, %c0_164] {strides = array<i32: 2, 1>} : memref<102x128xf32, #tpu.memory_space<vmem>>, vector<13x128xf32>
    %c1_165 = arith.constant 1 : index
    %c0_166 = arith.constant 0 : index
    %165 = tpu.strided_load %arg17[%c1_165, %c0_166] {strides = array<i32: 2, 1>} : memref<102x128xf32, #tpu.memory_space<vmem>>, vector<13x128xf32>
    %166 = arith.addf %164, %165 : vector<13x128xf32>
    %c2_167 = arith.constant 2 : index
    %c0_168 = arith.constant 0 : index
    %167 = tpu.strided_load %arg18[%c2_167, %c0_168] {strides = array<i32: 2, 1>} : memref<102x128xf32, #tpu.memory_space<vmem>>, vector<13x128xf32>
    %168 = arith.addf %166, %167 : vector<13x128xf32>
    %c3 = arith.constant 3 : index
    %c0_169 = arith.constant 0 : index
    %169 = vector.load %arg6[%c3, %c0_169] : memref<4x128xf32, #tpu.memory_space<vmem>>, vector<1x128xf32>
    %170 = vector.broadcast %169 : vector<1x128xf32> to vector<13x128xf32>
    %171 = arith.mulf %168, %170 : vector<13x128xf32>
    %c3_170 = arith.constant 3 : index
    %c0_171 = arith.constant 0 : index
    %172 = vector.load %arg7[%c3_170, %c0_171] : memref<4x128xf32, #tpu.memory_space<vmem>>, vector<1x128xf32>
    %173 = vector.broadcast %172 : vector<1x128xf32> to vector<13x128xf32>
    %174 = arith.addf %171, %173 : vector<13x128xf32>
    %cst_172 = arith.constant 0.000000e+00 : f32
    %175 = vector.broadcast %cst_172 : f32 to vector<13x128xf32>
    %176 = arith.cmpf oge, %174, %175 : vector<13x128xf32>
    %cst_173 = arith.constant 2.000000e-01 : f32
    %177 = vector.broadcast %cst_173 : f32 to vector<13x128xf32>
    %178 = arith.mulf %177, %174 : vector<13x128xf32>
    %179 = arith.select %176, %174, %178 : vector<13x128xi1>, vector<13x128xf32>
    %c0_174 = arith.constant 0 : index
    %c0_175 = arith.constant 0 : index
    %180 = vector.load %arg19[%c0_174, %c0_175] : memref<26x128xf32, #tpu.memory_space<vmem>>, vector<13x128xf32>
    tpu.vector_store %arg19[%c0_174, %c0_175], %179 {strides = array<i32>} : memref<26x128xf32, #tpu.memory_space<vmem>>, vector<13x128xf32>,
    %c27_176 = arith.constant 27 : index
    %c0_177 = arith.constant 0 : index
    %181 = tpu.strided_load %arg16[%c27_176, %c0_177] {strides = array<i32: 2, 1>} : memref<102x128xf32, #tpu.memory_space<vmem>>, vector<13x128xf32>
    %c28_178 = arith.constant 28 : index
    %c0_179 = arith.constant 0 : index
    %182 = tpu.strided_load %arg17[%c28_178, %c0_179] {strides = array<i32: 2, 1>} : memref<102x128xf32, #tpu.memory_space<vmem>>, vector<13x128xf32>
    %183 = arith.addf %181, %182 : vector<13x128xf32>
    %c29_180 = arith.constant 29 : index
    %c0_181 = arith.constant 0 : index
    %184 = tpu.strided_load %arg18[%c29_180, %c0_181] {strides = array<i32: 2, 1>} : memref<102x128xf32, #tpu.memory_space<vmem>>, vector<13x128xf32>
    %185 = arith.addf %183, %184 : vector<13x128xf32>
    %c3_182 = arith.constant 3 : index
    %c0_183 = arith.constant 0 : index
    %186 = vector.load %arg6[%c3_182, %c0_183] : memref<4x128xf32, #tpu.memory_space<vmem>>, vector<1x128xf32>
    %187 = vector.broadcast %186 : vector<1x128xf32> to vector<13x128xf32>
    %188 = arith.mulf %185, %187 : vector<13x128xf32>
    %c3_184 = arith.constant 3 : index
    %c0_185 = arith.constant 0 : index
    %189 = vector.load %arg7[%c3_184, %c0_185] : memref<4x128xf32, #tpu.memory_space<vmem>>, vector<1x128xf32>
    %190 = vector.broadcast %189 : vector<1x128xf32> to vector<13x128xf32>
    %191 = arith.addf %188, %190 : vector<13x128xf32>
    %cst_186 = arith.constant 0.000000e+00 : f32
    %192 = vector.broadcast %cst_186 : f32 to vector<13x128xf32>
    %193 = arith.cmpf oge, %191, %192 : vector<13x128xf32>
    %cst_187 = arith.constant 2.000000e-01 : f32
    %194 = vector.broadcast %cst_187 : f32 to vector<13x128xf32>
    %195 = arith.mulf %194, %191 : vector<13x128xf32>
    %196 = arith.select %193, %191, %195 : vector<13x128xi1>, vector<13x128xf32>
    %c13 = arith.constant 13 : index
    %c0_188 = arith.constant 0 : index
    %197 = vector.load %arg19[%c13, %c0_188] : memref<26x128xf32, #tpu.memory_space<vmem>>, vector<13x128xf32>
    tpu.vector_store %arg19[%c13, %c0_188], %196 {strides = array<i32>} : memref<26x128xf32, #tpu.memory_space<vmem>>, vector<13x128xf32>,
    %c0_189 = arith.constant 0 : index
    %c0_190 = arith.constant 0 : index
    %198 = vector.load %arg9[%c0_189, %c0_190] : memref<1x128xf32, #tpu.memory_space<vmem>>, vector<1x128xf32>
    %c0_191 = arith.constant 0 : index
    %c0_192 = arith.constant 0 : index
    %199 = tpu.strided_load %arg19[%c0_191, %c0_192] {strides = array<i32: 13, 1>} : memref<26x128xf32, #tpu.memory_space<vmem>>, vector<2x128xf32>
    %200 = arith.truncf %199 : vector<2x128xf32> to vector<2x128xbf16>
    %c0_193 = arith.constant 0 : index
    %c0_194 = arith.constant 0 : index
    %c0_195 = arith.constant 0 : index
    %201 = vector.load %arg8[%c0_193, %c0_194, %c0_195] : memref<13x128x128xbf16, #tpu.memory_space<vmem>>, vector<1x128x128xbf16>
    %202 = vector.shape_cast %201 : vector<1x128x128xbf16> to vector<128x128xbf16>
    %cst_196 = arith.constant dense<0.000000e+00> : vector<2x128xf32>
    %203 = tpu.matmul %200, %202, %cst_196 {dimension_numbers = #tpu.dot_dimension_numbers<[1], [0], [0], [1], [0, 0, 1, 1], [], []>} : vector<2x128xbf16>, vector<128x128xbf16>, vector<2x128xf32> -> vector<2x128xf32>
    %204 = vector.broadcast %198 : vector<1x128xf32> to vector<2x128xf32>
    %205 = arith.addf %204, %203 : vector<2x128xf32>
    %c1_197 = arith.constant 1 : index
    %c0_198 = arith.constant 0 : index
    %206 = tpu.strided_load %arg19[%c1_197, %c0_198] {strides = array<i32: 13, 1>} : memref<26x128xf32, #tpu.memory_space<vmem>>, vector<2x128xf32>
    %207 = arith.truncf %206 : vector<2x128xf32> to vector<2x128xbf16>
    %c1_199 = arith.constant 1 : index
    %c0_200 = arith.constant 0 : index
    %c0_201 = arith.constant 0 : index
    %208 = vector.load %arg8[%c1_199, %c0_200, %c0_201] : memref<13x128x128xbf16, #tpu.memory_space<vmem>>, vector<1x128x128xbf16>
    %209 = vector.shape_cast %208 : vector<1x128x128xbf16> to vector<128x128xbf16>
    %cst_202 = arith.constant dense<0.000000e+00> : vector<2x128xf32>
    %210 = tpu.matmul %207, %209, %cst_202 {dimension_numbers = #tpu.dot_dimension_numbers<[1], [0], [0], [1], [0, 0, 1, 1], [], []>} : vector<2x128xbf16>, vector<128x128xbf16>, vector<2x128xf32> -> vector<2x128xf32>
    %211 = arith.addf %205, %210 : vector<2x128xf32>
    %c2_203 = arith.constant 2 : index
    %c0_204 = arith.constant 0 : index
    %212 = tpu.strided_load %arg19[%c2_203, %c0_204] {strides = array<i32: 13, 1>} : memref<26x128xf32, #tpu.memory_space<vmem>>, vector<2x128xf32>
    %213 = arith.truncf %212 : vector<2x128xf32> to vector<2x128xbf16>
    %c2_205 = arith.constant 2 : index
    %c0_206 = arith.constant 0 : index
    %c0_207 = arith.constant 0 : index
    %214 = vector.load %arg8[%c2_205, %c0_206, %c0_207] : memref<13x128x128xbf16, #tpu.memory_space<vmem>>, vector<1x128x128xbf16>
    %215 = vector.shape_cast %214 : vector<1x128x128xbf16> to vector<128x128xbf16>
    %cst_208 = arith.constant dense<0.000000e+00> : vector<2x128xf32>
    %216 = tpu.matmul %213, %215, %cst_208 {dimension_numbers = #tpu.dot_dimension_numbers<[1], [0], [0], [1], [0, 0, 1, 1], [], []>} : vector<2x128xbf16>, vector<128x128xbf16>, vector<2x128xf32> -> vector<2x128xf32>
    %217 = arith.addf %211, %216 : vector<2x128xf32>
    %c3_209 = arith.constant 3 : index
    %c0_210 = arith.constant 0 : index
    %218 = tpu.strided_load %arg19[%c3_209, %c0_210] {strides = array<i32: 13, 1>} : memref<26x128xf32, #tpu.memory_space<vmem>>, vector<2x128xf32>
    %219 = arith.truncf %218 : vector<2x128xf32> to vector<2x128xbf16>
    %c3_211 = arith.constant 3 : index
    %c0_212 = arith.constant 0 : index
    %c0_213 = arith.constant 0 : index
    %220 = vector.load %arg8[%c3_211, %c0_212, %c0_213] : memref<13x128x128xbf16, #tpu.memory_space<vmem>>, vector<1x128x128xbf16>
    %221 = vector.shape_cast %220 : vector<1x128x128xbf16> to vector<128x128xbf16>
    %cst_214 = arith.constant dense<0.000000e+00> : vector<2x128xf32>
    %222 = tpu.matmul %219, %221, %cst_214 {dimension_numbers = #tpu.dot_dimension_numbers<[1], [0], [0], [1], [0, 0, 1, 1], [], []>} : vector<2x128xbf16>, vector<128x128xbf16>, vector<2x128xf32> -> vector<2x128xf32>
    %223 = arith.addf %217, %222 : vector<2x128xf32>
    %c4 = arith.constant 4 : index
    %c0_215 = arith.constant 0 : index
    %224 = tpu.strided_load %arg19[%c4, %c0_215] {strides = array<i32: 13, 1>} : memref<26x128xf32, #tpu.memory_space<vmem>>, vector<2x128xf32>
    %225 = arith.truncf %224 : vector<2x128xf32> to vector<2x128xbf16>
    %c4_216 = arith.constant 4 : index
    %c0_217 = arith.constant 0 : index
    %c0_218 = arith.constant 0 : index
    %226 = vector.load %arg8[%c4_216, %c0_217, %c0_218] : memref<13x128x128xbf16, #tpu.memory_space<vmem>>, vector<1x128x128xbf16>
    %227 = vector.shape_cast %226 : vector<1x128x128xbf16> to vector<128x128xbf16>
    %cst_219 = arith.constant dense<0.000000e+00> : vector<2x128xf32>
    %228 = tpu.matmul %225, %227, %cst_219 {dimension_numbers = #tpu.dot_dimension_numbers<[1], [0], [0], [1], [0, 0, 1, 1], [], []>} : vector<2x128xbf16>, vector<128x128xbf16>, vector<2x128xf32> -> vector<2x128xf32>
    %229 = arith.addf %223, %228 : vector<2x128xf32>
    %c5 = arith.constant 5 : index
    %c0_220 = arith.constant 0 : index
    %230 = tpu.strided_load %arg19[%c5, %c0_220] {strides = array<i32: 13, 1>} : memref<26x128xf32, #tpu.memory_space<vmem>>, vector<2x128xf32>
    %231 = arith.truncf %230 : vector<2x128xf32> to vector<2x128xbf16>
    %c5_221 = arith.constant 5 : index
    %c0_222 = arith.constant 0 : index
    %c0_223 = arith.constant 0 : index
    %232 = vector.load %arg8[%c5_221, %c0_222, %c0_223] : memref<13x128x128xbf16, #tpu.memory_space<vmem>>, vector<1x128x128xbf16>
    %233 = vector.shape_cast %232 : vector<1x128x128xbf16> to vector<128x128xbf16>
    %cst_224 = arith.constant dense<0.000000e+00> : vector<2x128xf32>
    %234 = tpu.matmul %231, %233, %cst_224 {dimension_numbers = #tpu.dot_dimension_numbers<[1], [0], [0], [1], [0, 0, 1, 1], [], []>} : vector<2x128xbf16>, vector<128x128xbf16>, vector<2x128xf32> -> vector<2x128xf32>
    %235 = arith.addf %229, %234 : vector<2x128xf32>
    %c6 = arith.constant 6 : index
    %c0_225 = arith.constant 0 : index
    %236 = tpu.strided_load %arg19[%c6, %c0_225] {strides = array<i32: 13, 1>} : memref<26x128xf32, #tpu.memory_space<vmem>>, vector<2x128xf32>
    %237 = arith.truncf %236 : vector<2x128xf32> to vector<2x128xbf16>
    %c6_226 = arith.constant 6 : index
    %c0_227 = arith.constant 0 : index
    %c0_228 = arith.constant 0 : index
    %238 = vector.load %arg8[%c6_226, %c0_227, %c0_228] : memref<13x128x128xbf16, #tpu.memory_space<vmem>>, vector<1x128x128xbf16>
    %239 = vector.shape_cast %238 : vector<1x128x128xbf16> to vector<128x128xbf16>
    %cst_229 = arith.constant dense<0.000000e+00> : vector<2x128xf32>
    %240 = tpu.matmul %237, %239, %cst_229 {dimension_numbers = #tpu.dot_dimension_numbers<[1], [0], [0], [1], [0, 0, 1, 1], [], []>} : vector<2x128xbf16>, vector<128x128xbf16>, vector<2x128xf32> -> vector<2x128xf32>
    %241 = arith.addf %235, %240 : vector<2x128xf32>
    %c7 = arith.constant 7 : index
    %c0_230 = arith.constant 0 : index
    %242 = tpu.strided_load %arg19[%c7, %c0_230] {strides = array<i32: 13, 1>} : memref<26x128xf32, #tpu.memory_space<vmem>>, vector<2x128xf32>
    %243 = arith.truncf %242 : vector<2x128xf32> to vector<2x128xbf16>
    %c7_231 = arith.constant 7 : index
    %c0_232 = arith.constant 0 : index
    %c0_233 = arith.constant 0 : index
    %244 = vector.load %arg8[%c7_231, %c0_232, %c0_233] : memref<13x128x128xbf16, #tpu.memory_space<vmem>>, vector<1x128x128xbf16>
    %245 = vector.shape_cast %244 : vector<1x128x128xbf16> to vector<128x128xbf16>
    %cst_234 = arith.constant dense<0.000000e+00> : vector<2x128xf32>
    %246 = tpu.matmul %243, %245, %cst_234 {dimension_numbers = #tpu.dot_dimension_numbers<[1], [0], [0], [1], [0, 0, 1, 1], [], []>} : vector<2x128xbf16>, vector<128x128xbf16>, vector<2x128xf32> -> vector<2x128xf32>
    %247 = arith.addf %241, %246 : vector<2x128xf32>
    %c8 = arith.constant 8 : index
    %c0_235 = arith.constant 0 : index
    %248 = tpu.strided_load %arg19[%c8, %c0_235] {strides = array<i32: 13, 1>} : memref<26x128xf32, #tpu.memory_space<vmem>>, vector<2x128xf32>
    %249 = arith.truncf %248 : vector<2x128xf32> to vector<2x128xbf16>
    %c8_236 = arith.constant 8 : index
    %c0_237 = arith.constant 0 : index
    %c0_238 = arith.constant 0 : index
    %250 = vector.load %arg8[%c8_236, %c0_237, %c0_238] : memref<13x128x128xbf16, #tpu.memory_space<vmem>>, vector<1x128x128xbf16>
    %251 = vector.shape_cast %250 : vector<1x128x128xbf16> to vector<128x128xbf16>
    %cst_239 = arith.constant dense<0.000000e+00> : vector<2x128xf32>
    %252 = tpu.matmul %249, %251, %cst_239 {dimension_numbers = #tpu.dot_dimension_numbers<[1], [0], [0], [1], [0, 0, 1, 1], [], []>} : vector<2x128xbf16>, vector<128x128xbf16>, vector<2x128xf32> -> vector<2x128xf32>
    %253 = arith.addf %247, %252 : vector<2x128xf32>
    %c9 = arith.constant 9 : index
    %c0_240 = arith.constant 0 : index
    %254 = tpu.strided_load %arg19[%c9, %c0_240] {strides = array<i32: 13, 1>} : memref<26x128xf32, #tpu.memory_space<vmem>>, vector<2x128xf32>
    %255 = arith.truncf %254 : vector<2x128xf32> to vector<2x128xbf16>
    %c9_241 = arith.constant 9 : index
    %c0_242 = arith.constant 0 : index
    %c0_243 = arith.constant 0 : index
    %256 = vector.load %arg8[%c9_241, %c0_242, %c0_243] : memref<13x128x128xbf16, #tpu.memory_space<vmem>>, vector<1x128x128xbf16>
    %257 = vector.shape_cast %256 : vector<1x128x128xbf16> to vector<128x128xbf16>
    %cst_244 = arith.constant dense<0.000000e+00> : vector<2x128xf32>
    %258 = tpu.matmul %255, %257, %cst_244 {dimension_numbers = #tpu.dot_dimension_numbers<[1], [0], [0], [1], [0, 0, 1, 1], [], []>} : vector<2x128xbf16>, vector<128x128xbf16>, vector<2x128xf32> -> vector<2x128xf32>
    %259 = arith.addf %253, %258 : vector<2x128xf32>
    %c10 = arith.constant 10 : index
    %c0_245 = arith.constant 0 : index
    %260 = tpu.strided_load %arg19[%c10, %c0_245] {strides = array<i32: 13, 1>} : memref<26x128xf32, #tpu.memory_space<vmem>>, vector<2x128xf32>
    %261 = arith.truncf %260 : vector<2x128xf32> to vector<2x128xbf16>
    %c10_246 = arith.constant 10 : index
    %c0_247 = arith.constant 0 : index
    %c0_248 = arith.constant 0 : index
    %262 = vector.load %arg8[%c10_246, %c0_247, %c0_248] : memref<13x128x128xbf16, #tpu.memory_space<vmem>>, vector<1x128x128xbf16>
    %263 = vector.shape_cast %262 : vector<1x128x128xbf16> to vector<128x128xbf16>
    %cst_249 = arith.constant dense<0.000000e+00> : vector<2x128xf32>
    %264 = tpu.matmul %261, %263, %cst_249 {dimension_numbers = #tpu.dot_dimension_numbers<[1], [0], [0], [1], [0, 0, 1, 1], [], []>} : vector<2x128xbf16>, vector<128x128xbf16>, vector<2x128xf32> -> vector<2x128xf32>
    %265 = arith.addf %259, %264 : vector<2x128xf32>
    %c11 = arith.constant 11 : index
    %c0_250 = arith.constant 0 : index
    %266 = tpu.strided_load %arg19[%c11, %c0_250] {strides = array<i32: 13, 1>} : memref<26x128xf32, #tpu.memory_space<vmem>>, vector<2x128xf32>
    %267 = arith.truncf %266 : vector<2x128xf32> to vector<2x128xbf16>
    %c11_251 = arith.constant 11 : index
    %c0_252 = arith.constant 0 : index
    %c0_253 = arith.constant 0 : index
    %268 = vector.load %arg8[%c11_251, %c0_252, %c0_253] : memref<13x128x128xbf16, #tpu.memory_space<vmem>>, vector<1x128x128xbf16>
    %269 = vector.shape_cast %268 : vector<1x128x128xbf16> to vector<128x128xbf16>
    %cst_254 = arith.constant dense<0.000000e+00> : vector<2x128xf32>
    %270 = tpu.matmul %267, %269, %cst_254 {dimension_numbers = #tpu.dot_dimension_numbers<[1], [0], [0], [1], [0, 0, 1, 1], [], []>} : vector<2x128xbf16>, vector<128x128xbf16>, vector<2x128xf32> -> vector<2x128xf32>
    %271 = arith.addf %265, %270 : vector<2x128xf32>
    %c12 = arith.constant 12 : index
    %c0_255 = arith.constant 0 : index
    %272 = tpu.strided_load %arg19[%c12, %c0_255] {strides = array<i32: 13, 1>} : memref<26x128xf32, #tpu.memory_space<vmem>>, vector<2x128xf32>
    %273 = arith.truncf %272 : vector<2x128xf32> to vector<2x128xbf16>
    %c12_256 = arith.constant 12 : index
    %c0_257 = arith.constant 0 : index
    %c0_258 = arith.constant 0 : index
    %274 = vector.load %arg8[%c12_256, %c0_257, %c0_258] : memref<13x128x128xbf16, #tpu.memory_space<vmem>>, vector<1x128x128xbf16>
    %275 = vector.shape_cast %274 : vector<1x128x128xbf16> to vector<128x128xbf16>
    %cst_259 = arith.constant dense<0.000000e+00> : vector<2x128xf32>
    %276 = tpu.matmul %273, %275, %cst_259 {dimension_numbers = #tpu.dot_dimension_numbers<[1], [0], [0], [1], [0, 0, 1, 1], [], []>} : vector<2x128xbf16>, vector<128x128xbf16>, vector<2x128xf32> -> vector<2x128xf32>
    %277 = arith.addf %271, %276 : vector<2x128xf32>
    %cst_260 = arith.constant 0.000000e+00 : f32
    %278 = vector.broadcast %cst_260 : f32 to vector<2x128xf32>
    %279 = arith.cmpf oge, %277, %278 : vector<2x128xf32>
    %cst_261 = arith.constant 2.000000e-01 : f32
    %280 = vector.broadcast %cst_261 : f32 to vector<2x128xf32>
    %281 = arith.mulf %280, %277 : vector<2x128xf32>
    %282 = arith.select %279, %277, %281 : vector<2x128xi1>, vector<2x128xf32>
    %c0_262 = arith.constant 0 : index
    %c0_263 = arith.constant 0 : index
    %283 = vector.load %arg10[%c0_262, %c0_263] : memref<1x128xf32, #tpu.memory_space<vmem>>, vector<1x128xf32>
    %284 = vector.broadcast %283 : vector<1x128xf32> to vector<2x128xf32>
    %285 = arith.mulf %282, %284 : vector<2x128xf32>
    %cst_264 = arith.constant dense<0.000000e+00> : vector<2xf32>
    %286 = vector.multi_reduction <add>, %285, %cst_264 [1] : vector<2x128xf32> to vector<2xf32>
    %287 = vector.shape_cast %286 : vector<2xf32> to vector<2x1xf32>
    %c0_265 = arith.constant 0 : index
    %c0_266 = arith.constant 0 : index
    %288 = vector.load %arg11[%c0_265, %c0_266] : memref<1x1xf32, #tpu.memory_space<vmem>>, vector<1x1xf32>
    %289 = vector.broadcast %288 : vector<1x1xf32> to vector<2x1xf32>
    %290 = arith.addf %287, %289 : vector<2x1xf32>
    %c0_267 = arith.constant 0 : index
    %c0_268 = arith.constant 0 : index
    %291 = vector.load %arg12[%c0_267, %c0_268] : memref<2x1xf32, #tpu.memory_space<vmem>>, vector<2x1xf32>
    tpu.vector_store %arg12[%c0_267, %c0_268], %290 {strides = array<i32>} : memref<2x1xf32, #tpu.memory_space<vmem>>, vector<2x1xf32>,
    return
  }
  func.func @transform_0(%arg0: i32) -> (i32, i32) {
    %c0_i32 = arith.constant 0 : i32
    %c0_i32_0 = arith.constant 0 : i32
    %c0_i32_1 = arith.constant 0 : i32
    return %c0_i32, %c0_i32_0 : i32, i32
  }
  func.func @transform_1(%arg0: i32) -> (i32, i32, i32) {
    %c0_i32 = arith.constant 0 : i32
    %c0_i32_0 = arith.constant 0 : i32
    %c0_i32_1 = arith.constant 0 : i32
    %c0_i32_2 = arith.constant 0 : i32
    return %c0_i32, %c0_i32_0, %c0_i32_1 : i32, i32, i32
  }
  func.func @transform_2(%arg0: i32) -> (i32, i32, i32) {
    %c0_i32 = arith.constant 0 : i32
    %c0_i32_0 = arith.constant 0 : i32
    %c0_i32_1 = arith.constant 0 : i32
    %c0_i32_2 = arith.constant 0 : i32
    return %c0_i32, %c0_i32_0, %c0_i32_1 : i32, i32, i32
  }
  func.func @transform_3(%arg0: i32) -> (i32, i32, i32) {
    %c0_i32 = arith.constant 0 : i32
    %c0_i32_0 = arith.constant 0 : i32
    %c0_i32_1 = arith.constant 0 : i32
    %c0_i32_2 = arith.constant 0 : i32
    return %c0_i32, %c0_i32_0, %c0_i32_1 : i32, i32, i32
  }
  func.func @transform_4(%arg0: i32) -> (i32, i32, i32) {
    %c0_i32 = arith.constant 0 : i32
    %c0_i32_0 = arith.constant 0 : i32
    %c0_i32_1 = arith.constant 0 : i32
    %c0_i32_2 = arith.constant 0 : i32
    return %c0_i32, %c0_i32_0, %c0_i32_1 : i32, i32, i32
  }
  func.func @transform_5(%arg0: i32) -> (i32, i32) {
    %c0_i32 = arith.constant 0 : i32
    %c0_i32_0 = arith.constant 0 : i32
    %c0_i32_1 = arith.constant 0 : i32
    return %c0_i32, %c0_i32_0 : i32, i32
  }
  func.func @transform_6(%arg0: i32) -> (i32, i32) {
    %c0_i32 = arith.constant 0 : i32
    %c0_i32_0 = arith.constant 0 : i32
    %c0_i32_1 = arith.constant 0 : i32
    return %c0_i32, %c0_i32_0 : i32, i32
  }
  func.func @transform_7(%arg0: i32) -> (i32, i32, i32) {
    %c0_i32 = arith.constant 0 : i32
    %c0_i32_0 = arith.constant 0 : i32
    %c0_i32_1 = arith.constant 0 : i32
    %c0_i32_2 = arith.constant 0 : i32
    return %c0_i32, %c0_i32_0, %c0_i32_1 : i32, i32, i32
  }
  func.func @transform_8(%arg0: i32) -> (i32, i32) {
    %c0_i32 = arith.constant 0 : i32
    %c0_i32_0 = arith.constant 0 : i32
    %c0_i32_1 = arith.constant 0 : i32
    return %c0_i32, %c0_i32_0 : i32, i32
  }
  func.func @transform_9(%arg0: i32) -> (i32, i32) {
    %c0_i32 = arith.constant 0 : i32
    %c0_i32_0 = arith.constant 0 : i32
    %c0_i32_1 = arith.constant 0 : i32
    return %c0_i32, %c0_i32_0 : i32, i32
  }
  func.func @transform_10(%arg0: i32) -> (i32, i32) {
    %c0_i32 = arith.constant 0 : i32
    %c0_i32_0 = arith.constant 0 : i32
    %c0_i32_1 = arith.constant 0 : i32
    return %c0_i32, %c0_i32_0 : i32, i32
  }
  func.func @transform_11(%arg0: i32) -> (i32, i32) {
    %c0_i32 = arith.constant 0 : i32
    %c0_i32_0 = arith.constant 0 : i32
    %c0_i32_1 = arith.constant 0 : i32
    return %c0_i32, %c0_i32_0 : i32, i32
  }
}

</mosaic_0001>

<bundles_post_ra>
// kernel: vgg_style_discriminator_1d.1
= control target key start
LH: loop header
LB: loop body
LE: loop exit
PB: predicated region body
PF: predicated region fallthrough
CT: control target
= control target key end

     0   :  { %s4234_s0 = inlined_call_operand.vmem [shape: f32[102,4], index: 0, kind: input, shape index: {}]   ;;  %s4235_s1 = inlined_call_operand.vmem [shape: bf16[3,4,128], index: 1, kind: input, shape index: {}]   ;;  %s4236_s2 = inlined_call_operand.hbm [shape: bf16[3,128,128], index: 2, kind: input, shape index: {}]   ;;  %s4237_s3 = inlined_call_operand.hbm [shape: bf16[3,128,128], index: 3, kind: input, shape index: {}]   ;;  %s4238_s4 = inlined_call_operand.hbm [shape: bf16[3,128,128], index: 4, kind: input, shape index: {}]   ;;  %s4239_s5 = inlined_call_operand.vmem [shape: f32[4,128], index: 5, kind: input, shape index: {}]   ;;  %s4240_s6 = inlined_call_operand.vmem [shape: f32[4,128], index: 6, kind: input, shape index: {}]   ;;  %s4241_s7 = inlined_call_operand.hbm [shape: bf16[13,128,128], index: 7, kind: input, shape index: {}]   ;;  %s4242_s8 = inlined_call_operand.vmem [shape: f32[1,128], index: 8, kind: input, shape index: {}]   ;;  %s4243_s9 = inlined_call_operand.vmem [shape: f32[1,128], index: 9, kind: input, shape index: {}]   ;;  %s4244_s10 = inlined_call_operand.<no memory space> [shape: f32[1,1], index: 10, kind: input, shape index: {}]   ;;  %s4245_s11 = inlined_call_operand.vmem [shape: f32[2,1], index: 11, kind: output, shape index: {}]  }
   0x1   :  { %v16_v0 = vstv %s4244_s10 }
   0x2   :  { %17 = vst [vmem:[#allocation9] sm:$0x1] %v16_v0 }
   0x3   :  { %18 = vsyncpa [#allocation11], 0 }
   0x4   :  { %19 = vsyncpa [#allocation13], 0 }
   0x5   :  { %20 = vsyncpa [#allocation16], 0  ;;  %s42_s21 = sshll.u32 %s4237_s3, 4  ;;  %s3917_s22 = smov [#allocation12]   ;;  %s43_s21 = int_to_ptr.hbm [resolvable:$true] %s42_s21 }
   0x6   :  { %s44_s23 = sshll.u32 %s3917_s22, 4  ;;  %s29_s26 = sshll.u32 %s4236_s2, 4  ;;  %s45_s23 = int_to_ptr.vmem [resolvable:$true] %s44_s23  ;;  %s30_s26 = int_to_ptr.hbm [resolvable:$true] %s29_s26 }
   0x7   :  { %s3918_s27 = smov 64   ;;  %s3919_s28 = smov 4  }
   0x8   :  { %50 = dma.hbm_to_vmem [thread:$0]  %s43_s21, 3072, %s45_s23, [#allocation13], %s3918_s27, %s3918_s27, %s3919_s28  }
   0x9   :  { %s3920_s10 = smov [#allocation10]   ;;  %s55_s13 = sshll.u32 %s4238_s4, 4  ;;  %s56_s13 = int_to_ptr.hbm [resolvable:$true] %s55_s13 }
   0xa   :  { %s31_s29 = sshll.u32 %s3920_s10, 4  ;;  %s72_s15 = sshll.u32 %s4241_s7, 4  ;;  %s32_s29 = int_to_ptr.vmem [resolvable:$true] %s31_s29  ;;  %s73_s15 = int_to_ptr.hbm [resolvable:$true] %s72_s15 }
   0xb   :  { %37 = dma.hbm_to_vmem [thread:$0]  %s30_s26, 3072, %s32_s29, [#allocation11], %s3918_s27, %s3918_s27, %s3919_s28  }
   0xc   :  { %s3921_s16 = smov [#allocation14]   ;;  %s3922_s2 = smov [#allocation15]  }
   0xd   :  { %s57_s17 = sshll.u32 %s3921_s16, 4  ;;  %s74_s18 = sshll.u32 %s3922_s2, 4  ;;  %s58_s17 = int_to_ptr.vmem [resolvable:$true] %s57_s17  ;;  %s75_s18 = int_to_ptr.vmem [resolvable:$true] %s74_s18 }
   0xe   :  { %63 = dma.hbm_to_vmem [thread:$0]  %s56_s13, 3072, %s58_s17, [#allocation13], %s3918_s27, %s3918_s27, %s3919_s28  }
   0xf   :  { %80 = dma.hbm_to_vmem [thread:$0]  %s73_s15, 13312, %s75_s18, [#allocation16], %s3918_s27, %s3918_s27, %s3919_s28  }
  0x10   :  { %3911 = dma.done.wait [#allocation11], 3072  }
  0x11   :  { %3912 = vsyncadd [#allocation11], 4294964224 }
  0x12   :  { %3913 = dma.done.wait [#allocation13], 6144  }
  0x13   :  { %3914 = vsyncadd [#allocation13], 4294961152 }
  0x14   :  { %3915 = dma.done.wait [#allocation16], 13312  }
  0x15   :  { %3916 = vsyncadd [#allocation16], 4294953984  ;;  %vm174_vm0 = vcmask 1041408   ;;  %v151_v1 = vld [vmem:[%s4235_s1] sm:$0x3]  ;;  %v132_v8 = vld [vmem:[%s4234_s0 + $0x8] sm:$0xff] }
  0x16   :  { %v2893_v2 = vld [vmem:[%s4235_s1 + $0x2] sm:$0x3]  ;;  %v2901_v3 = vld [vmem:[%s4235_s1 + $0x4] sm:$0x3]  ;;  %v176_v4 = vsel %vm174_vm0, %v151_v1, 0  ;;  %vm152_vm1 = vcmask 31744  }
  0x17   :  { %v237_v5 = vsel %vm174_vm0, %v2893_v2, 0  ;;  %v298_v6 = vsel %vm174_vm0, %v2901_v3, 0  ;;  %v131_v7 = vld [vmem:[%s4234_s0] sm:$0xff]  ;;  %185 = vmatpush.bf16.msra.mxu0 %v176_v4  ;;  %v133_v10 = vld [vmem:[%s4234_s0 + $0x10] sm:$0xff]  ;;  %v134_v11 = vld [vmem:[%s4234_s0 + $0x18] sm:$0xff]  ;;  %v3923_v43 = vmov 0.0  }
  0x18   :  { %246 = vmatpush.bf16.msra.mxu1 %v237_v5  ;;  %v144_v9 = vpack.c.bf16 %v132_v8, %v131_v7  ;;  %307 = vmatpush.bf16.msra.mxu2 %v298_v6  ;;  %v145_v12 = vpack.c.bf16 %v134_v11, %v133_v10  ;;  %v135_v13 = vld [vmem:[%s4234_s0 + $0x20] sm:$0xff]  ;;  %v136_v14 = vld [vmem:[%s4234_s0 + $0x28] sm:$0xff]  ;;  %v137_v16 = vld [vmem:[%s4234_s0 + $0x30] sm:$0xff]  ;;  %104 = vst [vmem:[#allocation2] sm:$0xff] %v3923_v43 }
  0x19   :  { %v146_v15 = vpack.c.bf16 %v136_v14, %v135_v13  ;;  %v138_v17 = vld [vmem:[%s4234_s0 + $0x38] sm:$0xff]  ;;  %v3628_v19 = vld [vmem:[#allocation10 + $0x78] sm:$0xff]  ;;  %v3627_v21 = vld [vmem:[#allocation10 + $0x70] sm:$0xff]  ;;  %105 = vst [vmem:[#allocation2 + $0x8] sm:$0xff] %v3923_v43 }
  0x1a   :  { %2886 = vmatmul.msk.bf16.vlgmr.msra.gmra.mxu0 %vm152_vm1, %v144_v9  ;;  %v147_v18 = vpack.c.bf16 %v138_v17, %v137_v16  ;;  %v3636_v20 = vld [vmem:[#allocation10 + $0xb8] sm:$0xff]  ;;  %v139_v22 = vld [vmem:[%s4234_s0 + $0x40] sm:$0xff]  ;;  %v3625_v28 = vld [vmem:[#allocation10 + $0x60] sm:$0xff]  ;;  %106 = vst [vmem:[#allocation2 + $0x10] sm:$0xff] %v3923_v43 }
  0x1b   :  { %2894 = vmatmul.msk.bf16.vlgmr.msra.gmra.mxu1 %vm152_vm1, %v144_v9  ;;  %2902 = vmatmul.msk.bf16.vlgmr.msra.gmra.mxu2 %vm152_vm1, %v144_v9  ;;  %v140_v23 = vld [vmem:[%s4234_s0 + $0x48] sm:$0xff]  ;;  %v3626_v26 = vld [vmem:[#allocation10 + $0x68] sm:$0xff]  ;;  %v141_v29 = vld [vmem:[%s4234_s0 + $0x50] sm:$0xff]  ;;  %107 = vst [vmem:[#allocation2 + $0x18] sm:$0xff] %v3923_v43 }
  0x1c   :  { %723 = vmatpush.bf16.msrb.mxu0 %v3628_v19  ;;  %844 = vmatpush.bf16.msrb.mxu1 %v3636_v20  ;;  %v148_v24 = vpack.c.bf16 %v140_v23, %v139_v22  ;;  %v3635_v25 = vld [vmem:[#allocation10 + $0xb0] sm:$0xff]  ;;  %v3634_v27 = vld [vmem:[#allocation10 + $0xa8] sm:$0xff]  ;;  %v3633_v34 = vld [vmem:[#allocation10 + $0xa0] sm:$0xff]  ;;  %108 = vst [vmem:[#allocation2 + $0x20] sm:$0xff] %v3923_v43 }
  0x1d   :  { %v142_v30 = vld [vmem:[%s4234_s0 + $0x58] sm:$0xff]  ;;  %v143_v32 = vld [vmem:[%s4234_s0 + $0x60] sm:$0x3f]  ;;  %v3624_v35 = vld [vmem:[#allocation10 + $0x58] sm:$0xff]  ;;  %109 = vst [vmem:[#allocation2 + $0x28] sm:$0xff] %v3923_v43 }
  0x1e   :  { %v149_v31 = vpack.c.bf16 %v142_v30, %v141_v29  ;;  %v150_v33 = vpack.c.bf16 %v143_v32, %v143_v32  ;;  %v3620_v36 = vld [vmem:[#allocation10 + $0x38] sm:$0xff]  ;;  %v3619_v37 = vld [vmem:[#allocation10 + $0x30] sm:$0xff]  ;;  %v3618_v39 = vld [vmem:[#allocation10 + $0x28] sm:$0xff]  ;;  %110 = vst [vmem:[#allocation2 + $0x30] sm:$0xff] %v3923_v43 }
  0x1f   :  { %602 = vmatpush.bf16.msra.mxu3 %v3620_v36  ;;  %v3632_v38 = vld [vmem:[#allocation10 + $0x98] sm:$0xff]  ;;  %v3617_v40 = vld [vmem:[#allocation10 + $0x20] sm:$0xff]  ;;  %v3623_v44 = vld [vmem:[#allocation10 + $0x50] sm:$0xff]  ;;  %111 = vst [vmem:[#allocation2 + $0x38] sm:$0xff] %v3923_v43 }
  0x20   :  { %724 = vmatpush.bf16.msrb.mxu0 %v3627_v21  ;;  %845 = vmatpush.bf16.msrb.mxu1 %v3635_v25  ;;  %v3631_v45 = vld [vmem:[#allocation10 + $0x90] sm:$0xff]  ;;  %v3616_v46 = vld [vmem:[#allocation10 + $0x18] sm:$0xff]  ;;  %v3622_v51 = vld [vmem:[#allocation10 + $0x48] sm:$0xff]  ;;  %112 = vst [vmem:[#allocation2 + $0x40] sm:$0xff] %v3923_v43 }
  0x21   :  { %v3615_v47 = vld [vmem:[#allocation10 + $0x10] sm:$0xff]  ;;  %v3630_v52 = vld [vmem:[#allocation10 + $0x88] sm:$0xff]  ;;  %113 = vst [vmem:[#allocation2 + $0x48] sm:$0xff] %v3923_v43  ;;  %v3613_v54 = vld [vmem:[#allocation10] sm:$0xff] }
  0x22   :  { %v3614_v53 = vld [vmem:[#allocation10 + $0x8] sm:$0xff]  ;;  %114 = vst [vmem:[#allocation2 + $0x50] sm:$0xff] %v3923_v43  ;;  %v3621_v55 = vld [vmem:[#allocation10 + $0x40] sm:$0xff] }
  0x23   :  { %603 = vmatpush.bf16.msra.mxu3 %v3619_v37  ;;  %v3629_v56 = vld [vmem:[#allocation10 + $0x80] sm:$0xff]  ;;  %115 = vst [vmem:[#allocation2 + $0x58] sm:$0xff] %v3923_v43  ;;  %v4091_v62 = vld [vmem:[%s4239_s5] ss:$0 sm:$0xff] }
  0x24   :  { %725 = vmatpush.bf16.msrb.mxu0 %v3626_v26  ;;  %846 = vmatpush.bf16.msrb.mxu1 %v3634_v27  ;;  %116 = vst [vmem:[#allocation2 + $0x60] sm:$0x3f] %v3923_v43  ;;  %v4098_v4 = vld [vmem:[%s4240_s6] ss:$0 sm:$0xff] }
  0x25   :  { %117 = vst [vmem:[#allocation3] sm:$0xff] %v3923_v43 }
  0x26   :  { %118 = vst [vmem:[#allocation3 + $0x8] sm:$0xff] %v3923_v43 }
  0x27   :  { %604 = vmatpush.bf16.msra.mxu3 %v3618_v39  ;;  %119 = vst [vmem:[#allocation3 + $0x10] sm:$0xff] %v3923_v43 }
  0x28   :  { %726 = vmatpush.bf16.msrb.mxu0 %v3625_v28  ;;  %847 = vmatpush.bf16.msrb.mxu1 %v3633_v34  ;;  %120 = vst [vmem:[#allocation3 + $0x18] sm:$0xff] %v3923_v43 }
  0x29   :  { %121 = vst [vmem:[#allocation3 + $0x20] sm:$0xff] %v3923_v43 }
  0x2a   :  { %2887 = vmatmul.msk.bf16.gmra.mxu0 %vm152_vm1, %v145_v12  ;;  %122 = vst [vmem:[#allocation3 + $0x28] sm:$0xff] %v3923_v43 }
  0x2b   :  { %2895 = vmatmul.msk.bf16.gmra.mxu1 %vm152_vm1, %v145_v12  ;;  %2903 = vmatmul.msk.bf16.gmra.mxu2 %vm152_vm1, %v145_v12  ;;  %123 = vst [vmem:[#allocation3 + $0x30] sm:$0x3f] %v3923_v43 }
  0x2c   :  { %727 = vmatpush.bf16.msrb.mxu0 %v3624_v35  ;;  %848 = vmatpush.bf16.msrb.mxu1 %v3632_v38  ;;  %124 = vst [vmem:[#allocation4] sm:$0xff] %v3923_v43 }
  0x2d   :  { %605 = vmatpush.bf16.msra.mxu3 %v3617_v40  ;;  %125 = vst [vmem:[#allocation4 + $0x8] sm:$0xff] %v3923_v43 }
  0x2e   :  { %126 = vst [vmem:[#allocation4 + $0x10] sm:$0xff] %v3923_v43 }
  0x2f   :  { %127 = vst [vmem:[#allocation4 + $0x18] sm:$0xff] %v3923_v43 }
  0x30   :  { %728 = vmatpush.bf16.msrb.mxu0 %v3623_v44  ;;  %849 = vmatpush.bf16.msrb.mxu1 %v3631_v45  ;;  %128 = vst [vmem:[#allocation4 + $0x20] sm:$0xff] %v3923_v43 }
  0x31   :  { %606 = vmatpush.bf16.msra.mxu3 %v3616_v46  ;;  %129 = vst [vmem:[#allocation4 + $0x28] sm:$0xff] %v3923_v43 }
  0x32   :  { %130 = vst [vmem:[#allocation4 + $0x30] sm:$0x3f] %v3923_v43 }
  0x34   :  { %729 = vmatpush.bf16.msrb.mxu0 %v3622_v51  ;;  %850 = vmatpush.bf16.msrb.mxu1 %v3630_v52 }
  0x35   :  { %607 = vmatpush.bf16.msra.mxu3 %v3615_v47 }
  0x38   :  { %730 = vmatpush.bf16.msrb.mxu0 %v3621_v55  ;;  %851 = vmatpush.bf16.msrb.mxu1 %v3629_v56 }
  0x39   :  { %608 = vmatpush.bf16.msra.mxu3 %v3614_v53 }
  0x3a   :  { %2888 = vmatmul.msk.bf16.gmra.mxu0 %vm152_vm1, %v146_v15 }
  0x3b   :  { %2896 = vmatmul.msk.bf16.gmra.mxu1 %vm152_vm1, %v146_v15  ;;  %2904 = vmatmul.msk.bf16.gmra.mxu2 %vm152_vm1, %v146_v15 }
  0x3d   :  { %609 = vmatpush.bf16.msra.mxu3 %v3613_v54 }
  0x4a   :  { %2889 = vmatmul.msk.bf16.gmra.mxu0 %vm152_vm1, %v147_v18 }
  0x4b   :  { %2897 = vmatmul.msk.bf16.gmra.mxu1 %vm152_vm1, %v147_v18  ;;  %2905 = vmatmul.msk.bf16.gmra.mxu2 %vm152_vm1, %v147_v18 }
  0x5a   :  { %2890 = vmatmul.msk.bf16.gmra.mxu0 %vm152_vm1, %v148_v24 }
  0x5b   :  { %2898 = vmatmul.msk.bf16.gmra.mxu1 %vm152_vm1, %v148_v24  ;;  %2906 = vmatmul.msk.bf16.gmra.mxu2 %vm152_vm1, %v148_v24 }
  0x6a   :  { %2891 = vmatmul.msk.bf16.gmra.mxu0 %vm152_vm1, %v149_v31 }
  0x6b   :  { %2899 = vmatmul.msk.bf16.gmra.mxu1 %vm152_vm1, %v149_v31  ;;  %2907 = vmatmul.msk.bf16.gmra.mxu2 %vm152_vm1, %v149_v31 }
  0x7a   :  { %2892 = vmatmul.msk.bf16.gmra.mxu0 %vm152_vm1, %v150_v33 }
  0x7b   :  { %2900 = vmatmul.msk.bf16.gmra.mxu1 %vm152_vm1, %v150_v33  ;;  %2908 = vmatmul.msk.bf16.gmra.mxu2 %vm152_vm1, %v150_v33 }
  0x97   :  { %v187_v41 = vpop.f32.mrf.mxu0 }
  0x98   :  { %v248_v42 = vpop.f32.mrf.mxu1 }
  0x99   :  { %282 = vst [vmem:[#allocation6] sm:$0xff] %v248_v42 }
  0x9e   :  { %v309_v48 = vpop.f32.mrf.mxu2 }
  0x9f   :  { %343 = vst [vmem:[#allocation7] sm:$0xff] %v309_v48  ;;  %v189_v49 = vpop.f32.mrf.mxu0 }
  0xa0   :  { %v250_v50 = vpop.f32.mrf.mxu1 }
  0xa1   :  { %283 = vst [vmem:[#allocation6 + $0x8] sm:$0xff] %v250_v50 }
  0xa6   :  { %v311_v57 = vpop.f32.mrf.mxu2 }
  0xa7   :  { %344 = vst [vmem:[#allocation7 + $0x8] sm:$0xff] %v311_v57  ;;  %v192_v58 = vpop.f32.mrf.mxu0 }
  0xa8   :  { %v253_v59 = vpop.f32.mrf.mxu1  ;;  %v363_v60 = vld [vmem:[#allocation6 + $0x1] sm:$0xff] }
  0xa9   :  { %284 = vst [vmem:[#allocation6 + $0x10] sm:$0xff] %v253_v59  ;;  %v370_v61 = vadd.f32 %v363_v60, %v187_v41 }
  0xae   :  { %v377_v63 = vld [vmem:[#allocation7 + $0x2] sm:$0xff]  ;;  %v314_v0 = vpop.f32.mrf.mxu2 }
  0xaf   :  { %v384_v1 = vadd.f32 %v377_v63, %v370_v61  ;;  %345 = vst [vmem:[#allocation7 + $0x10] sm:$0xff] %v314_v0  ;;  %v194_v2 = vpop.f32.mrf.mxu0 }
  0xb0   :  { %v255_v3 = vpop.f32.mrf.mxu1  ;;  %v364_v6 = vld [vmem:[#allocation6 + $0x9] sm:$0xff] }
  0xb1   :  { %285 = vst [vmem:[#allocation6 + $0x18] sm:$0xff] %v255_v3  ;;  %v393_v5 = vmul.f32 %v4091_v62, %v384_v1  ;;  %v371_v8 = vadd.f32 %v364_v6, %v189_v49 }
  0xb3   :  { %v402_v7 = vadd.f32 %v4098_v4, %v393_v5 }
  0xb5   :  { %vm409_vm2 = vcmp.ge.f32.partialorder %v402_v7, 0.0  ;;  %v416_v9 = vmul.f32 0.2, %v402_v7 }
  0xb6   :  { %v378_v10 = vld [vmem:[#allocation7 + $0xa] sm:$0xff]  ;;  %v316_v11 = vpop.f32.mrf.mxu2 }
  0xb7   :  { %v385_v12 = vadd.f32 %v378_v10, %v371_v8  ;;  %346 = vst [vmem:[#allocation7 + $0x18] sm:$0xff] %v316_v11  ;;  %v197_v13 = vpop.f32.mrf.mxu0  ;;  %v423_v15 = vsel %vm409_vm2, %v402_v7, %v416_v9 }
  0xb8   :  { %v258_v14 = vpop.f32.mrf.mxu1  ;;  %430 = vst [vmem:[#allocation2 + $0x1] sm:$0xff] %v423_v15  ;;  %v365_v17 = vld [vmem:[#allocation6 + $0x11] sm:$0xff] }
  0xb9   :  { %286 = vst [vmem:[#allocation6 + $0x20] sm:$0xff] %v258_v14  ;;  %v394_v16 = vmul.f32 %v4091_v62, %v385_v12  ;;  %v372_v19 = vadd.f32 %v365_v17, %v192_v58 }
  0xbb   :  { %v403_v18 = vadd.f32 %v4098_v4, %v394_v16  ;;  %v4125_v16 = vld [vmem:[%s4239_s5] ss:$0 sm:$0xff] }
  0xbd   :  { %vm410_vm3 = vcmp.ge.f32.partialorder %v403_v18, 0.0  ;;  %v417_v20 = vmul.f32 0.2, %v403_v18 }
  0xbe   :  { %v379_v21 = vld [vmem:[#allocation7 + $0x12] sm:$0xff]  ;;  %v319_v22 = vpop.f32.mrf.mxu2 }
  0xbf   :  { %v386_v23 = vadd.f32 %v379_v21, %v372_v19  ;;  %347 = vst [vmem:[#allocation7 + $0x20] sm:$0xff] %v319_v22  ;;  %v199_v24 = vpop.f32.mrf.mxu0  ;;  %v424_v26 = vsel %vm410_vm3, %v403_v18, %v417_v20  ;;  %v518_v38 = vld [vmem:[#allocation2] sm:$0xff] }
  0xc0   :  { %v260_v25 = vpop.f32.mrf.mxu1  ;;  %431 = vst [vmem:[#allocation2 + $0x9] sm:$0xff] %v424_v26  ;;  %v366_v28 = vld [vmem:[#allocation6 + $0x19] sm:$0xff] }
  0xc1   :  { %287 = vst [vmem:[#allocation6 + $0x28] sm:$0xff] %v260_v25  ;;  %v395_v27 = vmul.f32 %v4091_v62, %v386_v23  ;;  %v373_v30 = vadd.f32 %v366_v28, %v194_v2 }
  0xc3   :  { %v404_v29 = vadd.f32 %v4098_v4, %v395_v27 }
  0xc5   :  { %vm411_vm4 = vcmp.ge.f32.partialorder %v404_v29, 0.0  ;;  %v418_v31 = vmul.f32 0.2, %v404_v29 }
  0xc6   :  { %v380_v32 = vld [vmem:[#allocation7 + $0x1a] sm:$0xff]  ;;  %v321_v33 = vpop.f32.mrf.mxu2 }
  0xc7   :  { %v387_v34 = vadd.f32 %v380_v32, %v373_v30  ;;  %348 = vst [vmem:[#allocation7 + $0x28] sm:$0xff] %v321_v33  ;;  %v202_v35 = vpop.f32.mrf.mxu0  ;;  %v425_v37 = vsel %vm411_vm4, %v404_v29, %v418_v31  ;;  %v519_v39 = vld [vmem:[#allocation2 + $0x8] sm:$0xff] }
  0xc8   :  { %v263_v36 = vpop.f32.mrf.mxu1  ;;  %227 = vst [vmem:[#allocation5 + $0x30] sm:$0xff] %v202_v35  ;;  %v531_v41 = vpack.c.bf16 %v519_v39, %v518_v38  ;;  %v367_v42 = vld [vmem:[#allocation6 + $0x21] sm:$0xff] }
  0xc9   :  { %v396_v40 = vmul.f32 %v4091_v62, %v387_v34  ;;  %288 = vst [vmem:[#allocation6 + $0x30] sm:$0xff] %v263_v36  ;;  %v374_v44 = vadd.f32 %v367_v42, %v197_v13 }
  0xca   :  { %432 = vst [vmem:[#allocation2 + $0x11] sm:$0xff] %v425_v37  ;;  %610 = vmatmul.bf16.vlgmr.msra.gmra.mxu3 %v531_v41  ;;  %731 = vmatmul.bf16.vlgmr.msrb.gmra.mxu0 %v531_v41 }
  0xcb   :  { %v405_v43 = vadd.f32 %v4098_v4, %v396_v40  ;;  %852 = vmatmul.bf16.vlgmr.msrb.gmra.mxu1 %v531_v41 }
  0xcd   :  { %vm412_vm5 = vcmp.ge.f32.partialorder %v405_v43, 0.0  ;;  %v419_v45 = vmul.f32 0.2, %v405_v43 }
  0xce   :  { %v381_v46 = vld [vmem:[#allocation7 + $0x22] sm:$0xff]  ;;  %v324_v47 = vpop.f32.mrf.mxu2 }
  0xcf   :  { %v388_v48 = vadd.f32 %v381_v46, %v374_v44  ;;  %349 = vst [vmem:[#allocation7 + $0x30] sm:$0xff] %v324_v47  ;;  %v204_v49 = vpop.f32.mrf.mxu0  ;;  %v426_v51 = vsel %vm412_vm5, %v405_v43, %v419_v45  ;;  %v362_v52 = vld [vmem:[#allocation5 + $0x30] sm:$0x1] }
  0xd0   :  { %v265_v50 = vpop.f32.mrf.mxu1  ;;  %v369_v53 = vld [vmem:[#allocation6 + $0x31] sm:$0x1]  ;;  %228 = vst [vmem:[#allocation5 + $0x38] sm:$0xff] %v204_v49  ;;  %v368_v55 = vld [vmem:[#allocation6 + $0x29] sm:$0xff] }
  0xd1   :  { %289 = vst [vmem:[#allocation6 + $0x38] sm:$0xff] %v265_v50  ;;  %v397_v54 = vmul.f32 %v4091_v62, %v388_v48  ;;  %v376_v56 = vadd.f32 %v369_v53, %v362_v52  ;;  %v375_v58 = vadd.f32 %v368_v55, %v199_v24  ;;  %v520_v6 = vld [vmem:[#allocation2 + $0x10] sm:$0xff] }
  0xd2   :  { %433 = vst [vmem:[#allocation2 + $0x19] sm:$0xff] %v426_v51 }
  0xd3   :  { %v406_v57 = vadd.f32 %v4098_v4, %v397_v54 }
  0xd5   :  { %vm413_vm6 = vcmp.ge.f32.partialorder %v406_v57, 0.0  ;;  %v420_v59 = vmul.f32 0.2, %v406_v57 }
  0xd6   :  { %v382_v60 = vld [vmem:[#allocation7 + $0x2a] sm:$0xff]  ;;  %v383_v61 = vld [vmem:[#allocation7 + $0x32] sm:$0x1]  ;;  %v326_v63 = vpop.f32.mrf.mxu2 }
  0xd7   :  { %v389_v0 = vadd.f32 %v382_v60, %v375_v58  ;;  %v390_v1 = vadd.f32 %v383_v61, %v376_v56  ;;  %350 = vst [vmem:[#allocation7 + $0x38] sm:$0xff] %v326_v63  ;;  %v207_v2 = vpop.f32.mrf.mxu0  ;;  %v427_v5 = vsel %vm413_vm6, %v406_v57, %v420_v59  ;;  %v437_v9 = vld [vmem:[#allocation5 + $0x33] sm:$0xff] }
  0xd8   :  { %v268_v3 = vpop.f32.mrf.mxu1  ;;  %229 = vst [vmem:[#allocation5 + $0x40] sm:$0xff] %v207_v2  ;;  %v444_v10 = vld [vmem:[#allocation6 + $0x34] sm:$0xff] }
  0xd9   :  { %v398_v7 = vmul.f32 %v4091_v62, %v389_v0  ;;  %v399_v8 = vmul.f32 %v4091_v62, %v390_v1  ;;  %290 = vst [vmem:[#allocation6 + $0x40] sm:$0xff] %v268_v3  ;;  %v521_v11 = vld [vmem:[#allocation2 + $0x18] sm:$0xff]  ;;  %v451_v15 = vadd.f32 %v444_v10, %v437_v9 }
  0xda   :  { %v532_v12 = vpack.c.bf16 %v521_v11, %v520_v6  ;;  %434 = vst [vmem:[#allocation2 + $0x21] sm:$0xff] %v427_v5 }
  0xdb   :  { %v408_v13 = vadd.f32 %v4098_v4, %v399_v8  ;;  %v407_v14 = vadd.f32 %v4098_v4, %v398_v7  ;;  %v4130_v4 = vld [vmem:[%s4240_s6] ss:$0 sm:$0xff] }
  0xdc   :  { %615 = vmatmul.bf16.gmra.mxu3 %v532_v12  ;;  %736 = vmatmul.bf16.gmra.mxu0 %v532_v12 }
  0xdd   :  { %857 = vmatmul.bf16.gmra.mxu1 %v532_v12  ;;  %vm414_vm7 = vcmp.ge.f32.partialorder %v407_v14, 0.0  ;;  %v421_v62 = vmul.f32 0.2, %v407_v14  ;;  %vm415_vm8 = vcmp.ge.f32.partialorder %v408_v13, 0.0  ;;  %v422_v17 = vmul.f32 0.2, %v408_v13 }
  0xde   :  { %v458_v18 = vld [vmem:[#allocation7 + $0x35] sm:$0xff]  ;;  %v329_v19 = vpop.f32.mrf.mxu2 }
  0xdf   :  { %v465_v20 = vadd.f32 %v458_v18, %v451_v15  ;;  %351 = vst [vmem:[#allocation7 + $0x40] sm:$0xff] %v329_v19  ;;  %v209_v21 = vpop.f32.mrf.mxu0  ;;  %v428_v23 = vsel %vm414_vm7, %v407_v14, %v421_v62  ;;  %v429_v24 = vsel %vm415_vm8, %v408_v13, %v422_v17  ;;  %v438_v26 = vld [vmem:[#allocation5 + $0x3b] sm:$0xff] }
  0xe0   :  { %v270_v22 = vpop.f32.mrf.mxu1  ;;  %230 = vst [vmem:[#allocation5 + $0x48] sm:$0xff] %v209_v21  ;;  %v445_v27 = vld [vmem:[#allocation6 + $0x3c] sm:$0xff] }
  0xe1   :  { %v474_v25 = vmul.f32 %v4125_v16, %v465_v20  ;;  %291 = vst [vmem:[#allocation6 + $0x48] sm:$0xff] %v270_v22  ;;  %v452_v29 = vadd.f32 %v445_v27, %v438_v26  ;;  %v522_v38 = vld [vmem:[#allocation2 + $0x20] sm:$0xff] }
  0xe2   :  { %435 = vst [vmem:[#allocation2 + $0x29] sm:$0xff] %v428_v23 }
  0xe3   :  { %v483_v28 = vadd.f32 %v4130_v4, %v474_v25  ;;  %436 = vst [vmem:[#allocation2 + $0x31] sm:$0x1] %v429_v24 }
  0xe5   :  { %vm490_vm9 = vcmp.ge.f32.partialorder %v483_v28, 0.0  ;;  %v497_v30 = vmul.f32 0.2, %v483_v28 }
  0xe6   :  { %v459_v31 = vld [vmem:[#allocation7 + $0x3d] sm:$0xff]  ;;  %v331_v32 = vpop.f32.mrf.mxu2 }
  0xe7   :  { %v466_v33 = vadd.f32 %v459_v31, %v452_v29  ;;  %352 = vst [vmem:[#allocation7 + $0x48] sm:$0xff] %v331_v32  ;;  %v212_v34 = vpop.f32.mrf.mxu0  ;;  %v504_v36 = vsel %vm490_vm9, %v483_v28, %v497_v30  ;;  %v439_v40 = vld [vmem:[#allocation5 + $0x43] sm:$0xff] }
  0xe8   :  { %v273_v35 = vpop.f32.mrf.mxu1  ;;  %231 = vst [vmem:[#allocation5 + $0x50] sm:$0xff] %v212_v34  ;;  %v446_v41 = vld [vmem:[#allocation6 + $0x44] sm:$0xff] }
  0xe9   :  { %v475_v37 = vmul.f32 %v4125_v16, %v466_v33  ;;  %292 = vst [vmem:[#allocation6 + $0x50] sm:$0xff] %v273_v35  ;;  %v523_v39 = vld [vmem:[#allocation2 + $0x28] sm:$0xff]  ;;  %v453_v45 = vadd.f32 %v446_v41, %v439_v40 }
  0xea   :  { %v533_v42 = vpack.c.bf16 %v523_v39, %v522_v38  ;;  %511 = vst [vmem:[#allocation2 + $0x34] sm:$0xff] %v504_v36 }
  0xeb   :  { %v484_v43 = vadd.f32 %v4130_v4, %v475_v37 }
  0xec   :  { %620 = vmatmul.bf16.gmra.mxu3 %v533_v42  ;;  %741 = vmatmul.bf16.gmra.mxu0 %v533_v42 }
  0xed   :  { %v498_v44 = vmul.f32 0.2, %v484_v43  ;;  %862 = vmatmul.bf16.gmra.mxu1 %v533_v42  ;;  %vm491_vm10 = vcmp.ge.f32.partialorder %v484_v43, 0.0 }
  0xee   :  { %v460_v46 = vld [vmem:[#allocation7 + $0x45] sm:$0xff]  ;;  %v334_v47 = vpop.f32.mrf.mxu2 }
  0xef   :  { %v467_v48 = vadd.f32 %v460_v46, %v453_v45  ;;  %353 = vst [vmem:[#allocation7 + $0x50] sm:$0xff] %v334_v47  ;;  %v214_v49 = vpop.f32.mrf.mxu0  ;;  %v505_v51 = vsel %vm491_vm10, %v484_v43, %v498_v44  ;;  %v440_v53 = vld [vmem:[#allocation5 + $0x4b] sm:$0xff] }
  0xf0   :  { %v275_v50 = vpop.f32.mrf.mxu1  ;;  %232 = vst [vmem:[#allocation5 + $0x58] sm:$0xff] %v214_v49  ;;  %v447_v54 = vld [vmem:[#allocation6 + $0x4c] sm:$0xff]  ;;  %v3643_v47 = vld [vmem:[#allocation12 + $0x30] sm:$0xff] }
  0xf1   :  { %v476_v52 = vmul.f32 %v4125_v16, %v467_v48  ;;  %293 = vst [vmem:[#allocation6 + $0x58] sm:$0xff] %v275_v50  ;;  %v454_v57 = vadd.f32 %v447_v54, %v440_v53  ;;  %v524_v2 = vld [vmem:[#allocation2 + $0x30] sm:$0xff]  ;;  %v3650_v53 = vld [vmem:[#allocation12 + $0x68] sm:$0xff] }
  0xf2   :  { %512 = vst [vmem:[#allocation2 + $0x3c] sm:$0xff] %v505_v51  ;;  %v3652_v48 = vld [vmem:[#allocation12 + $0x78] sm:$0xff]  ;;  %v3642_v51 = vld [vmem:[#allocation12 + $0x28] sm:$0xff] }
  0xf3   :  { %v485_v55 = vadd.f32 %v4130_v4, %v476_v52  ;;  %1194 = vmatpush.bf16.msrb.mxu3 %v3652_v48  ;;  %v3651_v52 = vld [vmem:[#allocation12 + $0x70] sm:$0xff] }
  0xf5   :  { %v499_v56 = vmul.f32 0.2, %v485_v55  ;;  %vm492_vm11 = vcmp.ge.f32.partialorder %v485_v55, 0.0 }
  0xf6   :  { %v461_v58 = vld [vmem:[#allocation7 + $0x4d] sm:$0xff]  ;;  %v336_v59 = vpop.f32.mrf.mxu2 }
  0xf7   :  { %v468_v60 = vadd.f32 %v461_v58, %v454_v57  ;;  %354 = vst [vmem:[#allocation7 + $0x58] sm:$0xff] %v336_v59  ;;  %v217_v61 = vpop.f32.mrf.mxu0  ;;  %v506_v0 = vsel %vm492_vm11, %v485_v55, %v499_v56  ;;  %v441_v5 = vld [vmem:[#allocation5 + $0x53] sm:$0xff]  ;;  %1195 = vmatpush.bf16.msrb.mxu3 %v3651_v52 }
  0xf8   :  { %v278_v63 = vpop.f32.mrf.mxu1  ;;  %233 = vst [vmem:[#allocation5 + $0x60] sm:$0x3f] %v217_v61  ;;  %v448_v6 = vld [vmem:[#allocation6 + $0x54] sm:$0xff]  ;;  %v3640_v59 = vld [vmem:[#allocation12 + $0x18] sm:$0xff] }
  0xf9   :  { %v477_v1 = vmul.f32 %v4125_v16, %v468_v60  ;;  %294 = vst [vmem:[#allocation6 + $0x60] sm:$0x3f] %v278_v63  ;;  %v525_v3 = vld [vmem:[#allocation2 + $0x38] sm:$0xff]  ;;  %v455_v10 = vadd.f32 %v448_v6, %v441_v5  ;;  %v3648_v60 = vld [vmem:[#allocation12 + $0x58] sm:$0xff] }
  0xfa   :  { %v534_v7 = vpack.c.bf16 %v525_v3, %v524_v2  ;;  %513 = vst [vmem:[#allocation2 + $0x44] sm:$0xff] %v506_v0  ;;  %v3641_v57 = vld [vmem:[#allocation12 + $0x20] sm:$0xff]  ;;  %v3639_v0 = vld [vmem:[#allocation12 + $0x10] sm:$0xff]  ;;  %v3638_v3 = vld [vmem:[#allocation12 + $0x8] sm:$0xff] }
  0xfb   :  { %v486_v8 = vadd.f32 %v4130_v4, %v477_v1  ;;  %1196 = vmatpush.bf16.msrb.mxu3 %v3650_v53  ;;  %v3649_v58 = vld [vmem:[#allocation12 + $0x60] sm:$0xff]  ;;  %v3647_v1 = vld [vmem:[#allocation12 + $0x50] sm:$0xff]  ;;  %v3646_v5 = vld [vmem:[#allocation12 + $0x48] sm:$0xff] }
  0xfc   :  { %625 = vmatmul.bf16.gmra.mxu3 %v534_v7  ;;  %746 = vmatmul.bf16.gmra.mxu0 %v534_v7 }
  0xfd   :  { %v500_v9 = vmul.f32 0.2, %v486_v8  ;;  %867 = vmatmul.bf16.gmra.mxu1 %v534_v7  ;;  %vm493_vm12 = vcmp.ge.f32.partialorder %v486_v8, 0.0 }
  0xfe   :  { %v462_v11 = vld [vmem:[#allocation7 + $0x55] sm:$0xff]  ;;  %v339_v12 = vpop.f32.mrf.mxu2 }
  0xff   :  { %v469_v13 = vadd.f32 %v462_v11, %v455_v10  ;;  %355 = vst [vmem:[#allocation7 + $0x60] sm:$0x3f] %v339_v12  ;;  %v219_v14 = vpop.f32.mrf.mxu0  ;;  %v507_v62 = vsel %vm493_vm12, %v486_v8, %v500_v9  ;;  %v443_v17 = vld [vmem:[#allocation5 + $0x63] sm:$0x1]  ;;  %v442_v20 = vld [vmem:[#allocation5 + $0x5b] sm:$0xff]  ;;  %1197 = vmatpush.bf16.msrb.mxu3 %v3649_v58 }
 0x100   :  { %v280_v15 = vpop.f32.mrf.mxu1  ;;  %v450_v18 = vld [vmem:[#allocation6 + $0x64] sm:$0x1]  ;;  %514 = vst [vmem:[#allocation2 + $0x4c] sm:$0xff] %v507_v62  ;;  %v449_v21 = vld [vmem:[#allocation6 + $0x5c] sm:$0xff]  ;;  %v3637_v12 = vld [vmem:[#allocation12] sm:$0xff] }
 0x101   :  { %v478_v19 = vmul.f32 %v4125_v16, %v469_v13  ;;  %v457_v23 = vadd.f32 %v450_v18, %v443_v17  ;;  %v456_v25 = vadd.f32 %v449_v21, %v442_v20  ;;  %v526_v31 = vld [vmem:[#allocation2 + $0x40] sm:$0xff]  ;;  %v3645_v13 = vld [vmem:[#allocation12 + $0x40] sm:$0xff] }
 0x102   :  { %v4149_v11 = vld [vmem:[%s4239_s5 + $0x1] ss:$0 sm:$0xff] }
 0x103   :  { %v487_v22 = vadd.f32 %v4130_v4, %v478_v19  ;;  %1198 = vmatpush.bf16.msrb.mxu3 %v3648_v60  ;;  %v4154_v17 = vld [vmem:[%s4240_s6 + $0x1] ss:$0 sm:$0xff] }
 0x105   :  { %v501_v24 = vmul.f32 0.2, %v487_v22  ;;  %vm494_vm13 = vcmp.ge.f32.partialorder %v487_v22, 0.0 }
 0x106   :  { %v463_v26 = vld [vmem:[#allocation7 + $0x5d] sm:$0xff]  ;;  %v464_v27 = vld [vmem:[#allocation7 + $0x65] sm:$0x1]  ;;  %v341_v28 = vpop.f32.mrf.mxu2 }
 0x107   :  { %v470_v29 = vadd.f32 %v463_v26, %v456_v25  ;;  %v471_v30 = vadd.f32 %v464_v27, %v457_v23  ;;  %v527_v32 = vld [vmem:[#allocation2 + $0x48] sm:$0xff]  ;;  %v508_v33 = vsel %vm494_vm13, %v487_v22, %v501_v24  ;;  %1199 = vmatpush.bf16.msrb.mxu3 %v3647_v1 }
 0x108   :  { %v535_v34 = vpack.c.bf16 %v527_v32, %v526_v31  ;;  %515 = vst [vmem:[#allocation2 + $0x54] sm:$0xff] %v508_v33 }
 0x109   :  { %v479_v35 = vmul.f32 %v4125_v16, %v470_v29  ;;  %v480_v36 = vmul.f32 %v4125_v16, %v471_v30 }
 0x10b   :  { %v488_v37 = vadd.f32 %v4130_v4, %v479_v35  ;;  %v489_v38 = vadd.f32 %v4130_v4, %v480_v36  ;;  %v3644_v4 = vld [vmem:[#allocation12 + $0x38] sm:$0xff]  ;;  %1200 = vmatpush.bf16.msrb.mxu3 %v3646_v5 }
 0x10c   :  { %630 = vmatmul.bf16.gmra.mxu3 %v535_v34  ;;  %751 = vmatmul.bf16.gmra.mxu0 %v535_v34 }
 0x10d   :  { %v502_v39 = vmul.f32 0.2, %v488_v37  ;;  %v503_v40 = vmul.f32 0.2, %v489_v38  ;;  %872 = vmatmul.bf16.gmra.mxu1 %v535_v34  ;;  %vm495_vm14 = vcmp.ge.f32.partialorder %v488_v37, 0.0  ;;  %vm496_vm15 = vcmp.ge.f32.partialorder %v489_v38, 0.0  ;;  %1094 = vmatpush.bf16.msrb.mxu2 %v3644_v4 }
 0x10f   :  { %v509_v41 = vsel %vm495_vm14, %v488_v37, %v502_v39  ;;  %v510_v42 = vsel %vm496_vm15, %v489_v38, %v503_v40  ;;  %v528_v43 = vld [vmem:[#allocation2 + $0x50] sm:$0xff]  ;;  %1201 = vmatpush.bf16.msrb.mxu3 %v3645_v13 }
 0x110   :  { %516 = vst [vmem:[#allocation2 + $0x5c] sm:$0xff] %v509_v41 }
 0x111   :  { %517 = vst [vmem:[#allocation2 + $0x64] sm:$0x1] %v510_v42  ;;  %1095 = vmatpush.bf16.msrb.mxu2 %v3643_v47 }
 0x115   :  { %1096 = vmatpush.bf16.msrb.mxu2 %v3642_v51 }
 0x117   :  { %v529_v44 = vld [vmem:[#allocation2 + $0x58] sm:$0xff] }
 0x118   :  { %v536_v45 = vpack.c.bf16 %v529_v44, %v528_v43  ;;  %v530_v16 = vld [vmem:[#allocation2 + $0x60] sm:$0x3f] }
 0x119   :  { %v537_v46 = vpack.c.bf16 %v530_v16, %v530_v16  ;;  %1097 = vmatpush.bf16.msrb.mxu2 %v3641_v57 }
 0x11c   :  { %635 = vmatmul.bf16.gmra.mxu3 %v536_v45  ;;  %756 = vmatmul.bf16.gmra.mxu0 %v536_v45 }
 0x11d   :  { %877 = vmatmul.bf16.gmra.mxu1 %v536_v45  ;;  %1098 = vmatpush.bf16.msrb.mxu2 %v3640_v59 }
 0x121   :  { %1099 = vmatpush.bf16.msrb.mxu2 %v3639_v0 }
 0x125   :  { %1100 = vmatpush.bf16.msrb.mxu2 %v3638_v3 }
 0x129   :  { %1101 = vmatpush.bf16.msrb.mxu2 %v3637_v12 }
 0x12c   :  { %640 = vmatmul.bf16.gmra.mxu3 %v537_v46  ;;  %761 = vmatmul.bf16.gmra.mxu0 %v537_v46 }
 0x12d   :  { %882 = vmatmul.bf16.gmra.mxu1 %v537_v46 }
 0x147   :  { %v732_v49 = vpop.f32.mrf.mxu0 }
 0x148   :  { %766 = vst [vmem:[#allocation6] sm:$0xff] %v732_v49  ;;  %v853_v50 = vpop.f32.mrf.mxu1 }
 0x149   :  { %887 = vst [vmem:[#allocation7] sm:$0xff] %v853_v50 }
 0x14d   :  { %v611_v54 = vpop.f32.mrf.mxu3 }
 0x14e   :  { %645 = vst [vmem:[#allocation5] sm:$0xff] %v611_v54 }
 0x14f   :  { %v734_v55 = vpop.f32.mrf.mxu0 }
 0x150   :  { %767 = vst [vmem:[#allocation6 + $0x8] sm:$0xff] %v734_v55  ;;  %v855_v56 = vpop.f32.mrf.mxu1 }
 0x151   :  { %888 = vst [vmem:[#allocation7 + $0x8] sm:$0xff] %v855_v56 }
 0x155   :  { %v613_v61 = vpop.f32.mrf.mxu3 }
 0x156   :  { %646 = vst [vmem:[#allocation5 + $0x8] sm:$0xff] %v613_v61 }
 0x157   :  { %v908_v6 = vld [vmem:[#allocation6 + $0x1] ss:$2 sm:$0xff] }
 0x159   :  { %v737_v63 = vpop.f32.mrf.mxu0 }
 0x15a   :  { %768 = vst [vmem:[#allocation6 + $0x10] sm:$0xff] %v737_v63  ;;  %v858_v2 = vpop.f32.mrf.mxu1 }
 0x15b   :  { %889 = vst [vmem:[#allocation7 + $0x10] sm:$0xff] %v858_v2 }
 0x15d   :  { %v900_v7 = vld [vmem:[#allocation5] ss:$2 sm:$0xff] }
 0x15e   :  { %v915_v8 = vadd.f32 %v908_v6, %v900_v7 }
 0x15f   :  { %v616_v9 = vpop.f32.mrf.mxu3 }
 0x160   :  { %647 = vst [vmem:[#allocation5 + $0x10] sm:$0xff] %v616_v9 }
 0x161   :  { %v739_v10 = vpop.f32.mrf.mxu0 }
 0x162   :  { %v920_v14 = vld [vmem:[#allocation7 + $0x2] ss:$2 sm:$0xff]  ;;  %769 = vst [vmem:[#allocation6 + $0x18] sm:$0xff] %v739_v10  ;;  %v860_v15 = vpop.f32.mrf.mxu1  ;;  %v4171_v10 = vld [vmem:[%s4239_s5 + $0x1] ss:$0 sm:$0xff] }
 0x163   :  { %v927_v62 = vadd.f32 %v920_v14, %v915_v8  ;;  %890 = vst [vmem:[#allocation7 + $0x18] sm:$0xff] %v860_v15  ;;  %v4176_v15 = vld [vmem:[%s4240_s6 + $0x1] ss:$0 sm:$0xff] }
 0x165   :  { %v933_v18 = vmul.f32 %v4149_v11, %v927_v62 }
 0x167   :  { %v618_v19 = vpop.f32.mrf.mxu3  ;;  %v939_v20 = vadd.f32 %v4154_v17, %v933_v18  ;;  %v3660_v18 = vld [vmem:[#allocation12 + $0xb8] sm:$0xff] }
 0x168   :  { %648 = vst [vmem:[#allocation5 + $0x18] sm:$0xff] %v618_v19  ;;  %1294 = vmatpush.bf16.msra.mxu2 %v3660_v18 }
 0x169   :  { %v742_v21 = vpop.f32.mrf.mxu0  ;;  %vm943_vm1 = vcmp.ge.f32.partialorder %v939_v20, 0.0  ;;  %v947_v22 = vmul.f32 0.2, %v939_v20  ;;  %v910_v25 = vld [vmem:[#allocation6 + $0x11] ss:$2 sm:$0xff] }
 0x16a   :  { %770 = vst [vmem:[#allocation6 + $0x20] sm:$0xff] %v742_v21  ;;  %v863_v23 = vpop.f32.mrf.mxu1  ;;  %v3659_v21 = vld [vmem:[#allocation12 + $0xb0] sm:$0xff] }
 0x16b   :  { %891 = vst [vmem:[#allocation7 + $0x20] sm:$0xff] %v863_v23  ;;  %v951_v24 = vsel %vm943_vm1, %v939_v20, %v947_v22 }
 0x16c   :  { %955 = vst [vmem:[#allocation3 + $0x1] sm:$0xff] %v951_v24  ;;  %1295 = vmatpush.bf16.msra.mxu2 %v3659_v21  ;;  %v3674_v21 = vld [vmem:[#allocation14 + $0x68] sm:$0xff] }
 0x16f   :  { %v902_v26 = vld [vmem:[#allocation5 + $0x10] ss:$2 sm:$0xff]  ;;  %v621_v27 = vpop.f32.mrf.mxu3 }
 0x170   :  { %v916_v28 = vadd.f32 %v910_v25, %v902_v26  ;;  %649 = vst [vmem:[#allocation5 + $0x20] sm:$0xff] %v621_v27  ;;  %v3658_v25 = vld [vmem:[#allocation12 + $0xa8] sm:$0xff] }
 0x171   :  { %v744_v29 = vpop.f32.mrf.mxu0  ;;  %1296 = vmatpush.bf16.msra.mxu2 %v3658_v25  ;;  %v3681_v25 = vld [vmem:[#allocation14 + $0xa0] sm:$0xff] }
 0x172   :  { %v922_v30 = vld [vmem:[#allocation7 + $0x12] ss:$2 sm:$0xff]  ;;  %771 = vst [vmem:[#allocation6 + $0x28] sm:$0xff] %v744_v29  ;;  %v865_v31 = vpop.f32.mrf.mxu1 }
 0x173   :  { %v928_v32 = vadd.f32 %v922_v30, %v916_v28  ;;  %892 = vst [vmem:[#allocation7 + $0x28] sm:$0xff] %v865_v31  ;;  %v1019_v46 = vld [vmem:[#allocation3] sm:$0xff] }
 0x175   :  { %v934_v33 = vmul.f32 %v4149_v11, %v928_v32 }
 0x177   :  { %v623_v34 = vpop.f32.mrf.mxu3  ;;  %v940_v35 = vadd.f32 %v4154_v17, %v934_v33 }
 0x178   :  { %650 = vst [vmem:[#allocation5 + $0x28] sm:$0xff] %v623_v34 }
 0x179   :  { %v747_v36 = vpop.f32.mrf.mxu0  ;;  %vm944_vm2 = vcmp.ge.f32.partialorder %v940_v35, 0.0  ;;  %v948_v37 = vmul.f32 0.2, %v940_v35  ;;  %v912_v40 = vld [vmem:[#allocation6 + $0x21] ss:$2 sm:$0xff] }
 0x17a   :  { %772 = vst [vmem:[#allocation6 + $0x30] sm:$0xff] %v747_v36  ;;  %v868_v38 = vpop.f32.mrf.mxu1 }
 0x17b   :  { %893 = vst [vmem:[#allocation7 + $0x30] sm:$0xff] %v868_v38  ;;  %v952_v39 = vsel %vm944_vm2, %v940_v35, %v948_v37  ;;  %v3657_v38 = vld [vmem:[#allocation12 + $0xa0] sm:$0xff] }
 0x17c   :  { %956 = vst [vmem:[#allocation3 + $0x9] sm:$0xff] %v952_v39  ;;  %1297 = vmatpush.bf16.msra.mxu2 %v3657_v38  ;;  %v3665_v38 = vld [vmem:[#allocation14 + $0x20] sm:$0xff] }
 0x17f   :  { %v904_v41 = vld [vmem:[#allocation5 + $0x20] ss:$2 sm:$0xff]  ;;  %v626_v42 = vpop.f32.mrf.mxu3 }
 0x180   :  { %v917_v43 = vadd.f32 %v912_v40, %v904_v41  ;;  %651 = vst [vmem:[#allocation5 + $0x30] sm:$0xff] %v626_v42  ;;  %v3656_v41 = vld [vmem:[#allocation12 + $0x98] sm:$0xff] }
 0x181   :  { %v749_v44 = vpop.f32.mrf.mxu0  ;;  %v914_v50 = vld [vmem:[#allocation6 + $0x31] ss:$2 sm:$0x1]  ;;  %1298 = vmatpush.bf16.msra.mxu2 %v3656_v41  ;;  %v3664_v41 = vld [vmem:[#allocation14 + $0x18] sm:$0xff] }
 0x182   :  { %v924_v45 = vld [vmem:[#allocation7 + $0x22] ss:$2 sm:$0xff]  ;;  %773 = vst [vmem:[#allocation6 + $0x38] sm:$0xff] %v749_v44  ;;  %v870_v16 = vpop.f32.mrf.mxu1  ;;  %v926_v55 = vld [vmem:[#allocation7 + $0x32] ss:$2 sm:$0x1] }
 0x183   :  { %894 = vst [vmem:[#allocation7 + $0x38] sm:$0xff] %v870_v16  ;;  %v1020_v4 = vld [vmem:[#allocation3 + $0x8] sm:$0xff]  ;;  %v929_v47 = vadd.f32 %v924_v45, %v917_v43 }
 0x184   :  { %v4160_v48 = vpack.c.bf16 %v1020_v4, %v1019_v46 }
 0x185   :  { %v935_v49 = vmul.f32 %v4149_v11, %v929_v47 }
 0x186   :  { %1102 = vmatmul.bf16.vlgmr.msrb.gmra.mxu2 %v4160_v48  ;;  %1202 = vmatmul.bf16.vlgmr.msrb.gmra.mxu3 %v4160_v48 }
 0x187   :  { %v906_v51 = vld [vmem:[#allocation5 + $0x30] ss:$2 sm:$0x1]  ;;  %v628_v52 = vpop.f32.mrf.mxu3  ;;  %v941_v53 = vadd.f32 %v4154_v17, %v935_v49 }
 0x188   :  { %v918_v54 = vadd.f32 %v914_v50, %v906_v51  ;;  %652 = vst [vmem:[#allocation5 + $0x38] sm:$0xff] %v628_v52 }
 0x189   :  { %v752_v56 = vpop.f32.mrf.mxu0  ;;  %vm945_vm3 = vcmp.ge.f32.partialorder %v941_v53, 0.0  ;;  %v949_v57 = vmul.f32 0.2, %v941_v53 }
 0x18a   :  { %v930_v58 = vadd.f32 %v926_v55, %v918_v54  ;;  %774 = vst [vmem:[#allocation6 + $0x40] sm:$0xff] %v752_v56  ;;  %v873_v59 = vpop.f32.mrf.mxu1 }
 0x18b   :  { %895 = vst [vmem:[#allocation7 + $0x40] sm:$0xff] %v873_v59  ;;  %v953_v60 = vsel %vm945_vm3, %v941_v53, %v949_v57 }
 0x18c   :  { %v936_v61 = vmul.f32 %v4149_v11, %v930_v58  ;;  %957 = vst [vmem:[#allocation3 + $0x11] sm:$0xff] %v953_v60  ;;  %v3655_v58 = vld [vmem:[#allocation12 + $0x90] sm:$0xff] }
 0x18d   :  { %1299 = vmatpush.bf16.msra.mxu2 %v3655_v58 }
 0x18e   :  { %v942_v63 = vadd.f32 %v4154_v17, %v936_v61  ;;  %v3654_v61 = vld [vmem:[#allocation12 + $0x88] sm:$0xff] }
 0x18f   :  { %v631_v0 = vpop.f32.mrf.mxu3 }
 0x190   :  { %653 = vst [vmem:[#allocation5 + $0x40] sm:$0xff] %v631_v0  ;;  %vm946_vm4 = vcmp.ge.f32.partialorder %v942_v63, 0.0  ;;  %v950_v1 = vmul.f32 0.2, %v942_v63 }
 0x191   :  { %v754_v2 = vpop.f32.mrf.mxu0  ;;  %v968_v6 = vld [vmem:[#allocation6 + $0x34] ss:$2 sm:$0xff]  ;;  %1300 = vmatpush.bf16.msra.mxu2 %v3654_v61 }
 0x192   :  { %775 = vst [vmem:[#allocation6 + $0x48] sm:$0xff] %v754_v2  ;;  %v875_v3 = vpop.f32.mrf.mxu1  ;;  %v954_v5 = vsel %vm946_vm4, %v942_v63, %v950_v1  ;;  %v980_v11 = vld [vmem:[#allocation7 + $0x35] ss:$2 sm:$0xff] }
 0x193   :  { %896 = vst [vmem:[#allocation7 + $0x48] sm:$0xff] %v875_v3  ;;  %v1021_v34 = vld [vmem:[#allocation3 + $0x10] sm:$0xff] }
 0x194   :  { %958 = vst [vmem:[#allocation3 + $0x19] sm:$0x1] %v954_v5  ;;  %v3653_v3 = vld [vmem:[#allocation12 + $0x80] sm:$0xff] }
 0x195   :  { %1301 = vmatpush.bf16.msra.mxu2 %v3653_v3 }
 0x197   :  { %v960_v7 = vld [vmem:[#allocation5 + $0x33] ss:$2 sm:$0xff]  ;;  %v633_v8 = vpop.f32.mrf.mxu3 }
 0x198   :  { %v975_v9 = vadd.f32 %v968_v6, %v960_v7  ;;  %654 = vst [vmem:[#allocation5 + $0x48] sm:$0xff] %v633_v8 }
 0x199   :  { %v757_v12 = vpop.f32.mrf.mxu0 }
 0x19a   :  { %v987_v13 = vadd.f32 %v980_v11, %v975_v9  ;;  %776 = vst [vmem:[#allocation6 + $0x50] sm:$0xff] %v757_v12  ;;  %v878_v14 = vpop.f32.mrf.mxu1 }
 0x19b   :  { %897 = vst [vmem:[#allocation7 + $0x50] sm:$0xff] %v878_v14  ;;  %v3684_v14 = vld [vmem:[#allocation14 + $0xb8] sm:$0xff] }
 0x19c   :  { %v993_v62 = vmul.f32 %v4171_v10, %v987_v13  ;;  %v3676_v13 = vld [vmem:[#allocation14 + $0x78] sm:$0xff]  ;;  %1700 = vmatpush.bf16.msra.mxu1 %v3684_v14 }
 0x19d   :  { %1600 = vmatpush.bf16.msra.mxu0 %v3676_v13 }
 0x19e   :  { %v999_v17 = vadd.f32 %v4176_v15, %v993_v62  ;;  %v3683_v62 = vld [vmem:[#allocation14 + $0xb0] sm:$0xff] }
 0x19f   :  { %v636_v19 = vpop.f32.mrf.mxu3 }
 0x1a0   :  { %655 = vst [vmem:[#allocation5 + $0x50] sm:$0xff] %v636_v19  ;;  %vm1003_vm5 = vcmp.ge.f32.partialorder %v999_v17, 0.0  ;;  %v1007_v20 = vmul.f32 0.2, %v999_v17  ;;  %1701 = vmatpush.bf16.msra.mxu1 %v3683_v62 }
 0x1a1   :  { %v759_v22 = vpop.f32.mrf.mxu0  ;;  %v970_v26 = vld [vmem:[#allocation6 + $0x44] ss:$2 sm:$0xff] }
 0x1a2   :  { %777 = vst [vmem:[#allocation6 + $0x58] sm:$0xff] %v759_v22  ;;  %v880_v23 = vpop.f32.mrf.mxu1  ;;  %v1011_v24 = vsel %vm1003_vm5, %v999_v17, %v1007_v20  ;;  %v982_v30 = vld [vmem:[#allocation7 + $0x45] ss:$2 sm:$0xff] }
 0x1a3   :  { %898 = vst [vmem:[#allocation7 + $0x58] sm:$0xff] %v880_v23  ;;  %v3682_v22 = vld [vmem:[#allocation14 + $0xa8] sm:$0xff]  ;;  %v3668_v23 = vld [vmem:[#allocation14 + $0x38] sm:$0xff] }
 0x1a4   :  { %1015 = vst [vmem:[#allocation3 + $0x1c] sm:$0xff] %v1011_v24  ;;  %1702 = vmatpush.bf16.msra.mxu1 %v3682_v22  ;;  %v3673_v24 = vld [vmem:[#allocation14 + $0x60] sm:$0xff]  ;;  %1500 = vmatpush.bf16.msra.mxu3 %v3668_v23 }
 0x1a7   :  { %v962_v27 = vld [vmem:[#allocation5 + $0x43] ss:$2 sm:$0xff]  ;;  %v638_v28 = vpop.f32.mrf.mxu3 }
 0x1a8   :  { %v976_v29 = vadd.f32 %v970_v26, %v962_v27  ;;  %656 = vst [vmem:[#allocation5 + $0x58] sm:$0xff] %v638_v28  ;;  %1703 = vmatpush.bf16.msra.mxu1 %v3681_v25  ;;  %v3667_v28 = vld [vmem:[#allocation14 + $0x30] sm:$0xff] }
 0x1a9   :  { %v762_v31 = vpop.f32.mrf.mxu0  ;;  %1501 = vmatpush.bf16.msra.mxu3 %v3667_v28 }
 0x1aa   :  { %v988_v32 = vadd.f32 %v982_v30, %v976_v29  ;;  %778 = vst [vmem:[#allocation6 + $0x60] sm:$0x3f] %v762_v31  ;;  %v883_v33 = vpop.f32.mrf.mxu1  ;;  %v3672_v29 = vld [vmem:[#allocation14 + $0x58] sm:$0xff] }
 0x1ab   :  { %899 = vst [vmem:[#allocation7 + $0x60] sm:$0x3f] %v883_v33  ;;  %v1022_v35 = vld [vmem:[#allocation3 + $0x18] sm:$0xff] }
 0x1ac   :  { %v994_v36 = vmul.f32 %v4171_v10, %v988_v32  ;;  %v1027_v37 = vpack.c.bf16 %v1022_v35, %v1021_v34  ;;  %v3666_v34 = vld [vmem:[#allocation14 + $0x28] sm:$0xff]  ;;  %v3680_v35 = vld [vmem:[#allocation14 + $0x98] sm:$0xff] }
 0x1ad   :  { %1502 = vmatpush.bf16.msra.mxu3 %v3666_v34  ;;  %1704 = vmatpush.bf16.msra.mxu1 %v3680_v35  ;;  %v3807_v34 = vld [vmem:[%s4240_s6 + $0x2] ss:$0 sm:$0xff] }
 0x1ae   :  { %v1000_v39 = vadd.f32 %v4176_v15, %v994_v36  ;;  %1107 = vmatmul.bf16.gmra.mxu2 %v1027_v37  ;;  %1207 = vmatmul.bf16.gmra.mxu3 %v1027_v37 }
 0x1af   :  { %v641_v40 = vpop.f32.mrf.mxu3 }
 0x1b0   :  { %657 = vst [vmem:[#allocation5 + $0x60] sm:$0x3f] %v641_v40  ;;  %vm1004_vm6 = vcmp.ge.f32.partialorder %v1000_v39, 0.0  ;;  %v1008_v42 = vmul.f32 0.2, %v1000_v39  ;;  %v3679_v40 = vld [vmem:[#allocation14 + $0x90] sm:$0xff] }
 0x1b1   :  { %v764_v43 = vpop.f32.mrf.mxu0  ;;  %v972_v16 = vld [vmem:[#allocation6 + $0x54] ss:$2 sm:$0xff]  ;;  %v974_v46 = vld [vmem:[#allocation6 + $0x64] ss:$2 sm:$0x1]  ;;  %1503 = vmatpush.bf16.msra.mxu3 %v3665_v38  ;;  %1705 = vmatpush.bf16.msra.mxu1 %v3679_v40 }
 0x1b2   :  { %v885_v44 = vpop.f32.mrf.mxu1  ;;  %v1012_v45 = vsel %vm1004_vm6, %v1000_v39, %v1008_v42  ;;  %v984_v52 = vld [vmem:[#allocation7 + $0x55] ss:$2 sm:$0xff]  ;;  %v986_v53 = vld [vmem:[#allocation7 + $0x65] ss:$2 sm:$0x1] }
 0x1b3   :  { %1016 = vst [vmem:[#allocation3 + $0x24] sm:$0xff] %v1012_v45  ;;  %v3671_v39 = vld [vmem:[#allocation14 + $0x50] sm:$0xff]  ;;  %v3670_v44 = vld [vmem:[#allocation14 + $0x48] sm:$0xff] }
 0x1b4   :  { %v3663_v43 = vld [vmem:[#allocation14 + $0x10] sm:$0xff]  ;;  %v3678_v45 = vld [vmem:[#allocation14 + $0x88] sm:$0xff] }
 0x1b5   :  { %1504 = vmatpush.bf16.msra.mxu3 %v3664_v41  ;;  %1706 = vmatpush.bf16.msra.mxu1 %v3678_v45 }
 0x1b7   :  { %v964_v4 = vld [vmem:[#allocation5 + $0x53] ss:$2 sm:$0xff]  ;;  %v966_v47 = vld [vmem:[#allocation5 + $0x63] ss:$2 sm:$0x1]  ;;  %v643_v49 = vpop.f32.mrf.mxu3 }
 0x1b8   :  { %v977_v50 = vadd.f32 %v972_v16, %v964_v4  ;;  %v978_v51 = vadd.f32 %v974_v46, %v966_v47  ;;  %v3662_v16 = vld [vmem:[#allocation14 + $0x8] sm:$0xff]  ;;  %v3661_v4 = vld [vmem:[#allocation14] sm:$0xff] }
 0x1b9   :  { %1505 = vmatpush.bf16.msra.mxu3 %v3663_v43  ;;  %v3669_v47 = vld [vmem:[#allocation14 + $0x40] sm:$0xff] }
 0x1ba   :  { %v989_v54 = vadd.f32 %v984_v52, %v977_v50  ;;  %v990_v55 = vadd.f32 %v986_v53, %v978_v51  ;;  %v1023_v5 = vld [vmem:[#allocation3 + $0x20] sm:$0xff]  ;;  %v3677_v49 = vld [vmem:[#allocation14 + $0x80] sm:$0xff]  ;;  %v3804_v52 = vld [vmem:[%s4239_s5 + $0x2] ss:$0 sm:$0xff] }
 0x1bb   :  { %1707 = vmatpush.bf16.msra.mxu1 %v3677_v49 }
 0x1bc   :  { %v995_v56 = vmul.f32 %v4171_v10, %v989_v54  ;;  %v996_v57 = vmul.f32 %v4171_v10, %v990_v55 }
 0x1bd   :  { %1506 = vmatpush.bf16.msra.mxu3 %v3662_v16 }
 0x1be   :  { %v1001_v59 = vadd.f32 %v4176_v15, %v995_v56  ;;  %v1002_v60 = vadd.f32 %v4176_v15, %v996_v57  ;;  %v3675_v15 = vld [vmem:[#allocation14 + $0x70] sm:$0xff] }
 0x1bf   :  { %1601 = vmatpush.bf16.msra.mxu0 %v3675_v15  ;;  %v3805_v56 = vld [vmem:[%s4240_s6 + $0x2] ss:$0 sm:$0xff] }
 0x1c0   :  { %vm1005_vm7 = vcmp.ge.f32.partialorder %v1001_v59, 0.0  ;;  %v1009_v63 = vmul.f32 0.2, %v1001_v59  ;;  %vm1006_vm8 = vcmp.ge.f32.partialorder %v1002_v60, 0.0  ;;  %v1010_v0 = vmul.f32 0.2, %v1002_v60 }
 0x1c1   :  { %1507 = vmatpush.bf16.msra.mxu3 %v3661_v4 }
 0x1c2   :  { %v1013_v1 = vsel %vm1005_vm7, %v1001_v59, %v1009_v63  ;;  %v1014_v2 = vsel %vm1006_vm8, %v1002_v60, %v1010_v0  ;;  %vm2877_vm7 = vcmask 1024  }
 0x1c3   :  { %1017 = vst [vmem:[#allocation3 + $0x2c] sm:$0xff] %v1013_v1  ;;  %1602 = vmatpush.bf16.msra.mxu0 %v3674_v21 }
 0x1c4   :  { %1018 = vst [vmem:[#allocation3 + $0x34] sm:$0x1] %v1014_v2 }
 0x1c7   :  { %1603 = vmatpush.bf16.msra.mxu0 %v3673_v24 }
 0x1ca   :  { %v1024_v6 = vld [vmem:[#allocation3 + $0x28] sm:$0xff] }
 0x1cb   :  { %v1028_v7 = vpack.c.bf16 %v1024_v6, %v1023_v5  ;;  %v1025_v8 = vld [vmem:[#allocation3 + $0x30] sm:$0x3f]  ;;  %1604 = vmatpush.bf16.msra.mxu0 %v3672_v29 }
 0x1cc   :  { %v1029_v9 = vpack.c.bf16 %v1025_v8, %v1025_v8 }
 0x1cd   :  { %1112 = vmatmul.bf16.gmra.mxu2 %v1028_v7  ;;  %1212 = vmatmul.bf16.gmra.mxu3 %v1028_v7 }
 0x1cf   :  { %1605 = vmatpush.bf16.msra.mxu0 %v3671_v39 }
 0x1d3   :  { %1606 = vmatpush.bf16.msra.mxu0 %v3670_v44 }
 0x1d7   :  { %1607 = vmatpush.bf16.msra.mxu0 %v3669_v47 }
 0x1dd   :  { %1117 = vmatmul.bf16.gmra.mxu2 %v1029_v9  ;;  %1217 = vmatmul.bf16.gmra.mxu3 %v1029_v9 }
 0x1ed   :  { %1302 = vmatmul.bf16.vlgmr.msra.gmra.mxu2 %v4160_v48 }
 0x1fd   :  { %1307 = vmatmul.bf16.gmra.mxu2 %v1027_v37 }
 0x209   :  { %v1203_v10 = vpop.f32.mrf.mxu3  ;;  %v4187_v12 = vpop.f32.mrf.mxu2 }
 0x20a   :  { %1222 = vst [vmem:[#allocation6] sm:$0xff] %v1203_v10 }
 0x20d   :  { %1312 = vmatmul.bf16.gmra.mxu2 %v1028_v7 }
 0x211   :  { %v1205_v11 = vpop.f32.mrf.mxu3  ;;  %v4189_v17 = vpop.f32.mrf.mxu2 }
 0x212   :  { %1223 = vst [vmem:[#allocation6 + $0x8] sm:$0xff] %v1205_v11 }
 0x219   :  { %v1333_v50 = vld [vmem:[#allocation6 + $0x1] sm:$0xff] }
 0x21a   :  { %v1337_v51 = vadd.f32 %v1333_v50, %v4187_v12 }
 0x21d   :  { %1317 = vmatmul.bf16.gmra.mxu2 %v1029_v9 }
 0x231   :  { %v4191_v48 = vpop.f32.mrf.mxu2  ;;  %v1208_v18 = vpop.f32.mrf.mxu3 }
 0x232   :  { %1224 = vst [vmem:[#allocation6 + $0x10] sm:$0xff] %v1208_v18 }
 0x239   :  { %v1110_v19 = vpop.f32.mrf.mxu2  ;;  %v1210_v20 = vpop.f32.mrf.mxu3  ;;  %v1334_v58 = vld [vmem:[#allocation6 + $0x9] sm:$0xff] }
 0x23a   :  { %1125 = vst [vmem:[#allocation5 + $0x18] sm:$0xff] %v1110_v19  ;;  %v1338_v60 = vadd.f32 %v1334_v58, %v4189_v17 }
 0x23b   :  { %1225 = vst [vmem:[#allocation6 + $0x18] sm:$0xff] %v1210_v20 }
 0x241   :  { %v1332_v5 = vld [vmem:[#allocation5 + $0x18] sm:$0x1] }
 0x242   :  { %v1335_v6 = vld [vmem:[#allocation6 + $0x11] sm:$0xff]  ;;  %v1336_v7 = vld [vmem:[#allocation6 + $0x19] sm:$0x1] }
 0x243   :  { %v1339_v9 = vadd.f32 %v1335_v6, %v4191_v48  ;;  %v1340_v10 = vadd.f32 %v1336_v7, %v1332_v5  ;;  %v3806_v48 = vld [vmem:[%s4239_s5 + $0x2] ss:$0 sm:$0xff] }
 0x250   :  { %v1113_v26 = vpop.f32.mrf.mxu2  ;;  %v1213_v27 = vpop.f32.mrf.mxu3 }
 0x251   :  { %1126 = vst [vmem:[#allocation5 + $0x20] sm:$0xff] %v1113_v26 }
 0x252   :  { %1226 = vst [vmem:[#allocation6 + $0x20] sm:$0xff] %v1213_v27 }
 0x258   :  { %v1115_v30 = vpop.f32.mrf.mxu2  ;;  %v1215_v31 = vpop.f32.mrf.mxu3  ;;  %v1377_v18 = vld [vmem:[#allocation5 + $0x1b] sm:$0xff] }
 0x259   :  { %1127 = vst [vmem:[#allocation5 + $0x28] sm:$0xff] %v1115_v30  ;;  %v1381_v19 = vld [vmem:[#allocation6 + $0x1c] sm:$0xff] }
 0x25a   :  { %1227 = vst [vmem:[#allocation6 + $0x28] sm:$0xff] %v1215_v31  ;;  %v1385_v24 = vadd.f32 %v1381_v19, %v1377_v18  ;;  %v3691_v18 = vld [vmem:[#allocation15 + $0x30] sm:$0xff] }
 0x25b   :  { %v3699_v19 = vld [vmem:[#allocation15 + $0x70] sm:$0xff] }
 0x260   :  { %v1118_v32 = vpop.f32.mrf.mxu2  ;;  %v1218_v33 = vpop.f32.mrf.mxu3 }
 0x261   :  { %1128 = vst [vmem:[#allocation5 + $0x30] sm:$0x3f] %v1118_v32  ;;  %v1382_v38 = vld [vmem:[#allocation6 + $0x24] sm:$0xff] }
 0x262   :  { %1228 = vst [vmem:[#allocation6 + $0x30] sm:$0x3f] %v1218_v33 }
 0x268   :  { %v1120_v36 = vpop.f32.mrf.mxu2  ;;  %v1220_v37 = vpop.f32.mrf.mxu3  ;;  %v1379_v16 = vld [vmem:[#allocation5 + $0x2b] sm:$0xff]  ;;  %v1380_v4 = vld [vmem:[#allocation5 + $0x33] sm:$0x1] }
 0x269   :  { %v1378_v37 = vld [vmem:[#allocation5 + $0x23] sm:$0xff]  ;;  %v1383_v47 = vld [vmem:[#allocation6 + $0x2c] sm:$0xff]  ;;  %v1384_v49 = vld [vmem:[#allocation6 + $0x34] sm:$0x1] }
 0x26a   :  { %v1386_v40 = vadd.f32 %v1382_v38, %v1378_v37  ;;  %v3695_v37 = vld [vmem:[#allocation15 + $0x50] sm:$0xff] }
 0x26b   :  { %v3711_v38 = vld [vmem:[#allocation15 + $0xd0] sm:$0xff] }
 0x270   :  { %v1303_v42 = vpop.f32.mrf.mxu2 }
 0x271   :  { %1322 = vst [vmem:[#allocation7] sm:$0xff] %v1303_v42 }
 0x278   :  { %v1305_v46 = vpop.f32.mrf.mxu2 }
 0x279   :  { %1323 = vst [vmem:[#allocation7 + $0x8] sm:$0xff] %v1305_v46 }
 0x280   :  { %v1341_v53 = vld [vmem:[#allocation7 + $0x2] sm:$0xff]  ;;  %v1308_v54 = vpop.f32.mrf.mxu2 }
 0x281   :  { %v1345_v55 = vadd.f32 %v1341_v53, %v1337_v51  ;;  %1324 = vst [vmem:[#allocation7 + $0x10] sm:$0xff] %v1308_v54  ;;  %v1387_v51 = vadd.f32 %v1383_v47, %v1379_v16  ;;  %v3708_v47 = vld [vmem:[#allocation15 + $0xb8] sm:$0xff] }
 0x283   :  { %v1351_v57 = vmul.f32 %v3804_v52, %v1345_v55 }
 0x285   :  { %v1357_v59 = vadd.f32 %v3805_v56, %v1351_v57 }
 0x287   :  { %vm1361_vm9 = vcmp.ge.f32.partialorder %v1357_v59, 0.0  ;;  %v1365_v61 = vmul.f32 0.2, %v1357_v59 }
 0x288   :  { %v1342_v63 = vld [vmem:[#allocation7 + $0xa] sm:$0xff]  ;;  %v1310_v0 = vpop.f32.mrf.mxu2 }
 0x289   :  { %v1346_v1 = vadd.f32 %v1342_v63, %v1338_v60  ;;  %1325 = vst [vmem:[#allocation7 + $0x18] sm:$0xff] %v1310_v0  ;;  %v1369_v2 = vsel %vm1361_vm9, %v1357_v59, %v1365_v61 }
 0x28a   :  { %1373 = vst [vmem:[#allocation4 + $0x1] sm:$0xff] %v1369_v2 }
 0x28b   :  { %v1352_v3 = vmul.f32 %v3804_v52, %v1346_v1 }
 0x28d   :  { %v1358_v8 = vadd.f32 %v3805_v56, %v1352_v3 }
 0x28f   :  { %vm1362_vm10 = vcmp.ge.f32.partialorder %v1358_v8, 0.0  ;;  %v1366_v11 = vmul.f32 0.2, %v1358_v8 }
 0x290   :  { %v1343_v12 = vld [vmem:[#allocation7 + $0x12] sm:$0xff]  ;;  %v1344_v13 = vld [vmem:[#allocation7 + $0x1a] sm:$0x1]  ;;  %v1313_v14 = vpop.f32.mrf.mxu2 }
 0x291   :  { %v1347_v15 = vadd.f32 %v1343_v12, %v1339_v9  ;;  %v1348_v62 = vadd.f32 %v1344_v13, %v1340_v10  ;;  %1326 = vst [vmem:[#allocation7 + $0x20] sm:$0xff] %v1313_v14  ;;  %v1370_v17 = vsel %vm1362_vm10, %v1358_v8, %v1366_v11  ;;  %v1425_v30 = vld [vmem:[#allocation4] sm:$0xff]  ;;  %v3692_v14 = vld [vmem:[#allocation15 + $0x38] sm:$0xff] }
 0x292   :  { %1374 = vst [vmem:[#allocation4 + $0x9] sm:$0xff] %v1370_v17  ;;  %v3724_v17 = vld [vmem:[#allocation15 + $0x138] sm:$0xff]  ;;  %1860 = vmatpush.bf16.msrb.mxu2 %v3692_v14  ;;  %v3729_v14 = vld [vmem:[#allocation15 + $0x160] sm:$0xff] }
 0x293   :  { %v1353_v20 = vmul.f32 %v3804_v52, %v1347_v15  ;;  %v1354_v21 = vmul.f32 %v3804_v52, %v1348_v62  ;;  %v1388_v52 = vadd.f32 %v1384_v49, %v1380_v4  ;;  %v3700_v15 = vld [vmem:[#allocation15 + $0x78] sm:$0xff]  ;;  %2191 = vmatpush.bf16.msrb.mxu1 %v3724_v17  ;;  %v3693_v4 = vld [vmem:[#allocation15 + $0x40] sm:$0xff] }
 0x294   :  { %v3716_v62 = vld [vmem:[#allocation15 + $0xf8] sm:$0xff]  ;;  %1945 = vmatpush.bf16.msrb.mxu3 %v3700_v15  ;;  %v3709_v49 = vld [vmem:[#allocation15 + $0xc0] sm:$0xff] }
 0x295   :  { %v1359_v22 = vadd.f32 %v3805_v56, %v1353_v20  ;;  %v1360_v23 = vadd.f32 %v3805_v56, %v1354_v21  ;;  %2109 = vmatpush.bf16.msrb.mxu0 %v3716_v62  ;;  %v3715_v20 = vld [vmem:[#allocation15 + $0xf0] sm:$0xff]  ;;  %v3745_v15 = vld [vmem:[#allocation15 + $0x1e0] sm:$0xff] }
 0x296   :  { %v3723_v21 = vld [vmem:[#allocation15 + $0x130] sm:$0xff]  ;;  %1861 = vmatpush.bf16.msrb.mxu2 %v3691_v18  ;;  %v3753_v62 = vld [vmem:[#allocation15 + $0x220] sm:$0xff] }
 0x297   :  { %vm1363_vm11 = vcmp.ge.f32.partialorder %v1359_v22, 0.0  ;;  %vm1364_vm12 = vcmp.ge.f32.partialorder %v1360_v23, 0.0  ;;  %v1367_v25 = vmul.f32 0.2, %v1359_v22  ;;  %v1368_v26 = vmul.f32 0.2, %v1360_v23  ;;  %2192 = vmatpush.bf16.msrb.mxu1 %v3723_v21 }
 0x298   :  { %v1389_v27 = vld [vmem:[#allocation7 + $0x1d] sm:$0xff]  ;;  %v1315_v28 = vpop.f32.mrf.mxu2  ;;  %1946 = vmatpush.bf16.msrb.mxu3 %v3699_v19 }
 0x299   :  { %v1393_v29 = vadd.f32 %v1389_v27, %v1385_v24  ;;  %1327 = vst [vmem:[#allocation7 + $0x28] sm:$0xff] %v1315_v28  ;;  %v1426_v31 = vld [vmem:[#allocation4 + $0x8] sm:$0xff]  ;;  %v1371_v32 = vsel %vm1363_vm11, %v1359_v22, %v1367_v25  ;;  %v1372_v33 = vsel %vm1364_vm12, %v1360_v23, %v1368_v26  ;;  %2110 = vmatpush.bf16.msrb.mxu0 %v3715_v20  ;;  %v3690_v22 = vld [vmem:[#allocation15 + $0x28] sm:$0xff]  ;;  %v3689_v25 = vld [vmem:[#allocation15 + $0x20] sm:$0xff] }
 0x29a   :  { %v1432_v35 = vpack.c.bf16 %v1426_v31, %v1425_v30  ;;  %1375 = vst [vmem:[#allocation4 + $0x11] sm:$0xff] %v1371_v32  ;;  %v3698_v23 = vld [vmem:[#allocation15 + $0x68] sm:$0xff]  ;;  %1862 = vmatpush.bf16.msrb.mxu2 %v3690_v22  ;;  %v3697_v26 = vld [vmem:[#allocation15 + $0x60] sm:$0xff]  ;;  %v3688_v31 = vld [vmem:[#allocation15 + $0x18] sm:$0xff] }
 0x29b   :  { %1376 = vst [vmem:[#allocation4 + $0x19] sm:$0x1] %v1372_v33  ;;  %v1399_v36 = vmul.f32 %v3806_v48, %v1393_v29  ;;  %v3714_v24 = vld [vmem:[#allocation15 + $0xe8] sm:$0xff]  ;;  %v3713_v27 = vld [vmem:[#allocation15 + $0xe0] sm:$0xff]  ;;  %v3696_v32 = vld [vmem:[#allocation15 + $0x58] sm:$0xff] }
 0x29c   :  { %1508 = vmatmul.bf16.vlgmr.msra.gmra.mxu3 %v1432_v35  ;;  %1608 = vmatmul.bf16.vlgmr.msra.gmra.mxu0 %v1432_v35  ;;  %v3721_v28 = vld [vmem:[#allocation15 + $0x120] sm:$0xff]  ;;  %v3712_v33 = vld [vmem:[#allocation15 + $0xd8] sm:$0xff] }
 0x29d   :  { %1708 = vmatmul.bf16.vlgmr.msra.gmra.mxu1 %v1432_v35  ;;  %v1405_v39 = vadd.f32 %v3807_v34, %v1399_v36  ;;  %1947 = vmatpush.bf16.msrb.mxu3 %v3698_v23  ;;  %v3687_v36 = vld [vmem:[#allocation15 + $0x10] sm:$0xff]  ;;  %v3704_v19 = vld [vmem:[#allocation15 + $0x98] sm:$0xff] }
 0x29e   :  { %2111 = vmatpush.bf16.msrb.mxu0 %v3714_v24  ;;  %1863 = vmatpush.bf16.msrb.mxu2 %v3689_v25  ;;  %v3728_v21 = vld [vmem:[#allocation15 + $0x158] sm:$0xff] }
 0x29f   :  { %vm1409_vm13 = vcmp.ge.f32.partialorder %v1405_v39, 0.0  ;;  %v1413_v41 = vmul.f32 0.2, %v1405_v39  ;;  %v3744_v22 = vld [vmem:[#allocation15 + $0x1d8] sm:$0xff] }
 0x2a0   :  { %v1390_v42 = vld [vmem:[#allocation7 + $0x25] sm:$0xff]  ;;  %v1318_v43 = vpop.f32.mrf.mxu2 }
 0x2a1   :  { %v1394_v44 = vadd.f32 %v1390_v42, %v1386_v40  ;;  %1328 = vst [vmem:[#allocation7 + $0x30] sm:$0x3f] %v1318_v43  ;;  %v1417_v45 = vsel %vm1409_vm13, %v1405_v39, %v1413_v41  ;;  %v1427_v57 = vld [vmem:[#allocation4 + $0x10] sm:$0xff]  ;;  %1948 = vmatpush.bf16.msrb.mxu3 %v3697_v26  ;;  %v3719_v39 = vld [vmem:[#allocation15 + $0x110] sm:$0xff]  ;;  %v3686_v42 = vld [vmem:[#allocation15 + $0x8] sm:$0xff] }
 0x2a2   :  { %1421 = vst [vmem:[#allocation4 + $0x1c] sm:$0xff] %v1417_v45  ;;  %2112 = vmatpush.bf16.msrb.mxu0 %v3713_v27  ;;  %1864 = vmatpush.bf16.msrb.mxu2 %v3688_v31  ;;  %v3694_v43 = vld [vmem:[#allocation15 + $0x48] sm:$0xff]  ;;  %v3752_v24 = vld [vmem:[#allocation15 + $0x218] sm:$0xff]  ;;  %v3727_v26 = vld [vmem:[#allocation15 + $0x150] sm:$0xff] }
 0x2a3   :  { %v1400_v46 = vmul.f32 %v3806_v48, %v1394_v44  ;;  %v3710_v44 = vld [vmem:[#allocation15 + $0xc8] sm:$0xff]  ;;  %v3743_v27 = vld [vmem:[#allocation15 + $0x1d0] sm:$0xff] }
 0x2a4   :  { %v3718_v45 = vld [vmem:[#allocation15 + $0x108] sm:$0xff] }
 0x2a5   :  { %v1406_v50 = vadd.f32 %v3807_v34, %v1400_v46  ;;  %1949 = vmatpush.bf16.msrb.mxu3 %v3696_v32  ;;  %v3685_v46 = vld [vmem:[#allocation15] sm:$0xff] }
 0x2a6   :  { %2113 = vmatpush.bf16.msrb.mxu0 %v3712_v33  ;;  %1865 = vmatpush.bf16.msrb.mxu2 %v3687_v36  ;;  %v3742_v36 = vld [vmem:[#allocation15 + $0x1c8] sm:$0xff] }
 0x2a7   :  { %vm1410_vm14 = vcmp.ge.f32.partialorder %v1406_v50, 0.0  ;;  %v1414_v53 = vmul.f32 0.2, %v1406_v50 }
 0x2a8   :  { %v1320_v54 = vpop.f32.mrf.mxu2  ;;  %v1391_v55 = vld [vmem:[#allocation7 + $0x2d] sm:$0xff]  ;;  %v1392_v56 = vld [vmem:[#allocation7 + $0x35] sm:$0x1] }
 0x2a9   :  { %v1428_v58 = vld [vmem:[#allocation4 + $0x18] sm:$0xff]  ;;  %v1395_v59 = vadd.f32 %v1391_v55, %v1387_v51  ;;  %v1418_v60 = vsel %vm1410_vm14, %v1406_v50, %v1414_v53  ;;  %v1396_v61 = vadd.f32 %v1392_v56, %v1388_v52  ;;  %1950 = vmatpush.bf16.msrb.mxu3 %v3695_v37  ;;  %v3732_v52 = vld [vmem:[#allocation15 + $0x178] sm:$0xff]  ;;  %v3707_v56 = vld [vmem:[#allocation15 + $0xb0] sm:$0xff] }
 0x2aa   :  { %v1433_v63 = vpack.c.bf16 %v1428_v58, %v1427_v57  ;;  %1422 = vst [vmem:[#allocation4 + $0x24] sm:$0xff] %v1418_v60  ;;  %2114 = vmatpush.bf16.msrb.mxu0 %v3711_v38  ;;  %1866 = vmatpush.bf16.msrb.mxu2 %v3686_v42  ;;  %v3717_v51 = vld [vmem:[#allocation15 + $0x100] sm:$0xff]  ;;  %v3748_v54 = vld [vmem:[#allocation15 + $0x1f8] sm:$0xff]  ;;  %v3731_v57 = vld [vmem:[#allocation15 + $0x170] sm:$0xff] }
 0x2ab   :  { %v1401_v0 = vmul.f32 %v3806_v48, %v1395_v59  ;;  %v1402_v1 = vmul.f32 %v3806_v48, %v1396_v61  ;;  %v3722_v48 = vld [vmem:[#allocation15 + $0x128] sm:$0xff]  ;;  %v3756_v55 = vld [vmem:[#allocation15 + $0x238] sm:$0xff]  ;;  %v3747_v58 = vld [vmem:[#allocation15 + $0x1f0] sm:$0xff] }
 0x2ac   :  { %1513 = vmatmul.bf16.gmra.mxu3 %v1433_v63  ;;  %1613 = vmatmul.bf16.gmra.mxu0 %v1433_v63  ;;  %v3755_v59 = vld [vmem:[#allocation15 + $0x230] sm:$0xff]  ;;  %v3701_v42 = vld [vmem:[#allocation15 + $0x80] sm:$0xff] }
 0x2ad   :  { %1713 = vmatmul.bf16.gmra.mxu1 %v1433_v63  ;;  %v1407_v2 = vadd.f32 %v3807_v34, %v1401_v0  ;;  %v1408_v3 = vadd.f32 %v3807_v34, %v1402_v1  ;;  %v3720_v34 = vld [vmem:[#allocation15 + $0x118] sm:$0xff]  ;;  %1951 = vmatpush.bf16.msrb.mxu3 %v3694_v43  ;;  %v4211_v1 = vld [vmem:[%s4239_s5 + $0x3] ss:$0 sm:$0xff] }
 0x2ae   :  { %2193 = vmatpush.bf16.msrb.mxu1 %v3722_v48  ;;  %2115 = vmatpush.bf16.msrb.mxu0 %v3710_v44  ;;  %v3703_v48 = vld [vmem:[#allocation15 + $0x90] sm:$0xff] }
 0x2af   :  { %vm1411_vm15 = vcmp.ge.f32.partialorder %v1407_v2, 0.0  ;;  %v1415_v5 = vmul.f32 0.2, %v1407_v2  ;;  %vm1412_vm1 = vcmp.ge.f32.partialorder %v1408_v3, 0.0  ;;  %v1416_v6 = vmul.f32 0.2, %v1408_v3  ;;  %1867 = vmatpush.bf16.msrb.mxu2 %v3685_v46 }
 0x2b1   :  { %v1419_v7 = vsel %vm1411_vm15, %v1407_v2, %v1415_v5  ;;  %v1420_v8 = vsel %vm1412_vm1, %v1408_v3, %v1416_v6  ;;  %v1429_v9 = vld [vmem:[#allocation4 + $0x20] sm:$0xff]  ;;  %1952 = vmatpush.bf16.msrb.mxu3 %v3693_v4  ;;  %v3749_v4 = vld [vmem:[#allocation15 + $0x200] sm:$0xff] }
 0x2b2   :  { %1423 = vst [vmem:[#allocation4 + $0x2c] sm:$0xff] %v1419_v7  ;;  %2194 = vmatpush.bf16.msrb.mxu1 %v3721_v28  ;;  %2116 = vmatpush.bf16.msrb.mxu0 %v3709_v49  ;;  %v3706_v2 = vld [vmem:[#allocation15 + $0xa8] sm:$0xff]  ;;  %v3751_v28 = vld [vmem:[#allocation15 + $0x210] sm:$0xff] }
 0x2b3   :  { %1424 = vst [vmem:[#allocation4 + $0x34] sm:$0x1] %v1420_v8  ;;  %2027 = vmatpush.bf16.msra.mxu2 %v3708_v47  ;;  %v3730_v5 = vld [vmem:[#allocation15 + $0x168] sm:$0xff] }
 0x2b4   :  { %v3746_v6 = vld [vmem:[#allocation15 + $0x1e8] sm:$0xff] }
 0x2b5   :  { %2273 = vmatpush.bf16.msra.mxu3 %v3732_v52  ;;  %v3754_v7 = vld [vmem:[#allocation15 + $0x228] sm:$0xff] }
 0x2b6   :  { %2195 = vmatpush.bf16.msrb.mxu1 %v3720_v34  ;;  %2437 = vmatpush.bf16.msra.mxu0 %v3748_v54 }
 0x2b7   :  { %2028 = vmatpush.bf16.msra.mxu2 %v3707_v56  ;;  %v3810_v56 = vld [vmem:[%s4239_s5 + $0x3] ss:$0 sm:$0xff] }
 0x2b9   :  { %v1430_v10 = vld [vmem:[#allocation4 + $0x28] sm:$0xff]  ;;  %2274 = vmatpush.bf16.msra.mxu3 %v3731_v57 }
 0x2ba   :  { %v1434_v11 = vpack.c.bf16 %v1430_v10, %v1429_v9  ;;  %v1431_v12 = vld [vmem:[#allocation4 + $0x30] sm:$0x3f]  ;;  %2196 = vmatpush.bf16.msrb.mxu1 %v3719_v39  ;;  %2438 = vmatpush.bf16.msra.mxu0 %v3747_v58  ;;  %v3750_v39 = vld [vmem:[#allocation15 + $0x208] sm:$0xff] }
 0x2bb   :  { %v1435_v13 = vpack.c.bf16 %v1431_v12, %v1431_v12  ;;  %2029 = vmatpush.bf16.msra.mxu2 %v3706_v2  ;;  %v3705_v12 = vld [vmem:[#allocation15 + $0xa0] sm:$0xff] }
 0x2bc   :  { %1518 = vmatmul.bf16.gmra.mxu3 %v1434_v11  ;;  %1618 = vmatmul.bf16.gmra.mxu0 %v1434_v11 }
 0x2bd   :  { %1718 = vmatmul.bf16.gmra.mxu1 %v1434_v11  ;;  %v3809_v11 = vld [vmem:[%s4240_s6 + $0x3] ss:$0 sm:$0xff]  ;;  %2275 = vmatpush.bf16.msra.mxu3 %v3730_v5 }
 0x2be   :  { %2197 = vmatpush.bf16.msrb.mxu1 %v3718_v45  ;;  %2439 = vmatpush.bf16.msra.mxu0 %v3746_v6  ;;  %v3725_v45 = vld [vmem:[#allocation15 + $0x140] sm:$0xff] }
 0x2bf   :  { %2030 = vmatpush.bf16.msra.mxu2 %v3705_v12 }
 0x2c1   :  { %2276 = vmatpush.bf16.msra.mxu3 %v3729_v14  ;;  %v3764_v14 = vld [vmem:[#allocation15 + $0x278] sm:$0xff] }
 0x2c2   :  { %2198 = vmatpush.bf16.msrb.mxu1 %v3717_v51  ;;  %2440 = vmatpush.bf16.msra.mxu0 %v3745_v15 }
 0x2c3   :  { %2031 = vmatpush.bf16.msra.mxu2 %v3704_v19 }
 0x2c5   :  { %2277 = vmatpush.bf16.msra.mxu3 %v3728_v21 }
 0x2c6   :  { %2519 = vmatpush.bf16.msra.mxu1 %v3756_v55  ;;  %2441 = vmatpush.bf16.msra.mxu0 %v3744_v22 }
 0x2c7   :  { %2032 = vmatpush.bf16.msra.mxu2 %v3703_v48  ;;  %v3788_v48 = vld [vmem:[#allocation15 + $0x338] sm:$0xff] }
 0x2c9   :  { %2278 = vmatpush.bf16.msra.mxu3 %v3727_v26  ;;  %v3763_v26 = vld [vmem:[#allocation15 + $0x270] sm:$0xff] }
 0x2ca   :  { %2520 = vmatpush.bf16.msra.mxu1 %v3755_v59  ;;  %2442 = vmatpush.bf16.msra.mxu0 %v3743_v27  ;;  %v3779_v27 = vld [vmem:[#allocation15 + $0x2f0] sm:$0xff] }
 0x2cc   :  { %1523 = vmatmul.bf16.gmra.mxu3 %v1435_v13  ;;  %1623 = vmatmul.bf16.gmra.mxu0 %v1435_v13 }
 0x2cd   :  { %1723 = vmatmul.bf16.gmra.mxu1 %v1435_v13 }
 0x2ce   :  { %2521 = vmatpush.bf16.msra.mxu1 %v3754_v7  ;;  %2443 = vmatpush.bf16.msra.mxu0 %v3742_v36  ;;  %v3785_v36 = vld [vmem:[#allocation15 + $0x320] sm:$0xff] }
 0x2d2   :  { %2522 = vmatpush.bf16.msra.mxu1 %v3753_v62 }
 0x2d6   :  { %2523 = vmatpush.bf16.msra.mxu1 %v3752_v24  ;;  %v3780_v24 = vld [vmem:[#allocation15 + $0x2f8] sm:$0xff] }
 0x2da   :  { %2524 = vmatpush.bf16.msra.mxu1 %v3751_v28  ;;  %v3787_v28 = vld [vmem:[#allocation15 + $0x330] sm:$0xff] }
 0x2de   :  { %2525 = vmatpush.bf16.msra.mxu1 %v3750_v39 }
 0x2e2   :  { %2526 = vmatpush.bf16.msra.mxu1 %v3749_v4  ;;  %v3784_v4 = vld [vmem:[#allocation15 + $0x318] sm:$0xff] }
 0x319   :  { %v1609_v29 = vpop.f32.mrf.mxu0 }
 0x31a   :  { %1628 = vst [vmem:[#allocation6] sm:$0xff] %v1609_v29  ;;  %v1709_v30 = vpop.f32.mrf.mxu1 }
 0x31b   :  { %1728 = vst [vmem:[#allocation7] sm:$0xff] %v1709_v30  ;;  %v3702_v30 = vld [vmem:[#allocation15 + $0x88] sm:$0xff] }
 0x31c   :  { %2033 = vmatpush.bf16.msra.mxu2 %v3702_v30  ;;  %v3762_v30 = vld [vmem:[#allocation15 + $0x268] sm:$0xff] }
 0x31f   :  { %v1509_v35 = vpop.f32.mrf.mxu3 }
 0x320   :  { %1528 = vst [vmem:[#allocation5] sm:$0xff] %v1509_v35  ;;  %v3726_v35 = vld [vmem:[#allocation15 + $0x148] sm:$0xff]  ;;  %2034 = vmatpush.bf16.msra.mxu2 %v3701_v42 }
 0x321   :  { %v1611_v40 = vpop.f32.mrf.mxu0  ;;  %2279 = vmatpush.bf16.msra.mxu3 %v3726_v35  ;;  %v3777_v35 = vld [vmem:[#allocation15 + $0x2e0] sm:$0xff] }
 0x322   :  { %1629 = vst [vmem:[#allocation6 + $0x8] sm:$0xff] %v1611_v40  ;;  %v1711_v41 = vpop.f32.mrf.mxu1 }
 0x323   :  { %1729 = vst [vmem:[#allocation7 + $0x8] sm:$0xff] %v1711_v41 }
 0x325   :  { %2280 = vmatpush.bf16.msra.mxu3 %v3725_v45 }
 0x327   :  { %v1511_v16 = vpop.f32.mrf.mxu3 }
 0x328   :  { %1529 = vst [vmem:[#allocation5 + $0x8] sm:$0xff] %v1511_v16  ;;  %v3741_v16 = vld [vmem:[#allocation15 + $0x1c0] sm:$0xff] }
 0x329   :  { %v1614_v50 = vpop.f32.mrf.mxu0  ;;  %v1737_v61 = vld [vmem:[#allocation6 + $0x1] ss:$2 sm:$0xff]  ;;  %2444 = vmatpush.bf16.msra.mxu0 %v3741_v16 }
 0x32a   :  { %1630 = vst [vmem:[#allocation6 + $0x10] sm:$0xff] %v1614_v50  ;;  %v1714_v53 = vpop.f32.mrf.mxu1 }
 0x32b   :  { %1730 = vst [vmem:[#allocation7 + $0x10] sm:$0xff] %v1714_v53 }
 0x32f   :  { %v1735_v60 = vld [vmem:[#allocation5] ss:$2 sm:$0xff]  ;;  %v1514_v63 = vpop.f32.mrf.mxu3 }
 0x330   :  { %v1739_v0 = vadd.f32 %v1737_v61, %v1735_v60  ;;  %1530 = vst [vmem:[#allocation5 + $0x10] sm:$0xff] %v1514_v63  ;;  %v3811_v60 = vld [vmem:[%s4240_s6 + $0x3] ss:$0 sm:$0xff] }
 0x331   :  { %v1616_v3 = vpop.f32.mrf.mxu0 }
 0x332   :  { %v1741_v8 = vld [vmem:[#allocation7 + $0x2] ss:$2 sm:$0xff]  ;;  %1631 = vst [vmem:[#allocation6 + $0x18] sm:$0xff] %v1616_v3  ;;  %v1716_v9 = vpop.f32.mrf.mxu1 }
 0x333   :  { %v1743_v10 = vadd.f32 %v1741_v8, %v1739_v0  ;;  %1731 = vst [vmem:[#allocation7 + $0x18] sm:$0xff] %v1716_v9 }
 0x335   :  { %v1747_v13 = vmul.f32 %v4211_v1, %v1743_v10 }
 0x337   :  { %v1516_v17 = vpop.f32.mrf.mxu3  ;;  %v1751_v18 = vadd.f32 %v3809_v11, %v1747_v13  ;;  %v3740_v13 = vld [vmem:[#allocation15 + $0x1b8] sm:$0xff] }
 0x338   :  { %1531 = vst [vmem:[#allocation5 + $0x18] sm:$0xff] %v1516_v17 }
 0x339   :  { %v1619_v20 = vpop.f32.mrf.mxu0  ;;  %vm1753_vm2 = vcmp.ge.f32.partialorder %v1751_v18, 0.0  ;;  %v1755_v25 = vmul.f32 0.2, %v1751_v18  ;;  %v1738_v32 = vld [vmem:[#allocation6 + $0x11] ss:$2 sm:$0x1f] }
 0x33a   :  { %1632 = vst [vmem:[#allocation6 + $0x20] sm:$0xff] %v1619_v20  ;;  %v1719_v23 = vpop.f32.mrf.mxu1  ;;  %v1742_v37 = vld [vmem:[#allocation7 + $0x12] ss:$2 sm:$0x1f] }
 0x33b   :  { %1732 = vst [vmem:[#allocation7 + $0x20] sm:$0xff] %v1719_v23  ;;  %v1757_v29 = vsel %vm1753_vm2, %v1751_v18, %v1755_v25  ;;  %v3739_v25 = vld [vmem:[#allocation15 + $0x1b0] sm:$0xff] }
 0x33c   :  { %1759 = vst [vmem:[#allocation8] sm:$0xff] %v1757_v29  ;;  %v3738_v29 = vld [vmem:[#allocation15 + $0x1a8] sm:$0xff] }
 0x33f   :  { %v1736_v31 = vld [vmem:[#allocation5 + $0x10] ss:$2 sm:$0x1f]  ;;  %v1519_v33 = vpop.f32.mrf.mxu3 }
 0x340   :  { %v1740_v34 = vadd.f32 %v1738_v32, %v1736_v31  ;;  %1532 = vst [vmem:[#allocation5 + $0x20] sm:$0xff] %v1519_v33  ;;  %v3778_v31 = vld [vmem:[#allocation15 + $0x2e8] sm:$0xff]  ;;  %v3737_v33 = vld [vmem:[#allocation15 + $0x1a0] sm:$0xff] }
 0x341   :  { %v1621_v38 = vpop.f32.mrf.mxu0  ;;  %v3786_v32 = vld [vmem:[#allocation15 + $0x328] sm:$0xff] }
 0x342   :  { %v1744_v40 = vadd.f32 %v1742_v37, %v1740_v34  ;;  %1633 = vst [vmem:[#allocation6 + $0x28] sm:$0xff] %v1621_v38  ;;  %v1721_v41 = vpop.f32.mrf.mxu1  ;;  %v3761_v34 = vld [vmem:[#allocation15 + $0x260] sm:$0xff] }
 0x343   :  { %1733 = vst [vmem:[#allocation7 + $0x28] sm:$0xff] %v1721_v41 }
 0x344   :  { %v1748_v43 = vmul.f32 %v4211_v1, %v1744_v40 }
 0x346   :  { %v1752_v44 = vadd.f32 %v3809_v11, %v1748_v43  ;;  %v3736_v43 = vld [vmem:[#allocation15 + $0x198] sm:$0xff] }
 0x347   :  { %v1521_v46 = vpop.f32.mrf.mxu3 }
 0x348   :  { %1533 = vst [vmem:[#allocation5 + $0x28] sm:$0xff] %v1521_v46  ;;  %vm1754_vm3 = vcmp.ge.f32.partialorder %v1752_v44, 0.0  ;;  %v1756_v47 = vmul.f32 0.2, %v1752_v44  ;;  %v3776_v46 = vld [vmem:[#allocation15 + $0x2d8] sm:$0xff] }
 0x349   :  { %v1624_v49 = vpop.f32.mrf.mxu0  ;;  %v1766_v53 = vld [vmem:[#allocation6 + $0x1c] ss:$2 sm:$0xff] }
 0x34a   :  { %1634 = vst [vmem:[#allocation6 + $0x30] sm:$0x3f] %v1624_v49  ;;  %v1724_v50 = vpop.f32.mrf.mxu1  ;;  %v1758_v51 = vsel %vm1754_vm3, %v1752_v44, %v1756_v47  ;;  %v1772_v57 = vld [vmem:[#allocation7 + $0x1d] ss:$2 sm:$0xff] }
 0x34b   :  { %1734 = vst [vmem:[#allocation7 + $0x30] sm:$0x3f] %v1724_v50  ;;  %v3760_v44 = vld [vmem:[#allocation15 + $0x258] sm:$0xff]  ;;  %v3735_v47 = vld [vmem:[#allocation15 + $0x190] sm:$0xff] }
 0x34c   :  { %1760 = vst [vmem:[#allocation8 + $0x8] sm:$0x1f] %v1758_v51  ;;  %v3759_v49 = vld [vmem:[#allocation15 + $0x250] sm:$0xff] }
 0x34d   :  { %v3775_v50 = vld [vmem:[#allocation15 + $0x2d0] sm:$0xff] }
 0x34e   :  { %v3783_v51 = vld [vmem:[#allocation15 + $0x310] sm:$0xff] }
 0x34f   :  { %v1762_v52 = vld [vmem:[#allocation5 + $0x1b] ss:$2 sm:$0xff]  ;;  %v1524_v54 = vpop.f32.mrf.mxu3 }
 0x350   :  { %v1769_v55 = vadd.f32 %v1766_v53, %v1762_v52  ;;  %1534 = vst [vmem:[#allocation5 + $0x30] sm:$0x3f] %v1524_v54  ;;  %v3734_v52 = vld [vmem:[#allocation15 + $0x188] sm:$0xff] }
 0x351   :  { %v1626_v58 = vpop.f32.mrf.mxu0  ;;  %v1768_v2 = vld [vmem:[#allocation6 + $0x2c] ss:$2 sm:$0x1f]  ;;  %v3758_v53 = vld [vmem:[#allocation15 + $0x248] sm:$0xff] }
 0x352   :  { %v1775_v59 = vadd.f32 %v1772_v57, %v1769_v55  ;;  %v1726_v61 = vpop.f32.mrf.mxu1  ;;  %v1774_v7 = vld [vmem:[#allocation7 + $0x2d] ss:$2 sm:$0x1f]  ;;  %v3772_v58 = vld [vmem:[#allocation15 + $0x2b8] sm:$0xff] }
 0x353   :  { %v3774_v54 = vld [vmem:[#allocation15 + $0x2c8] sm:$0xff]  ;;  %v3757_v57 = vld [vmem:[#allocation15 + $0x240] sm:$0xff] }
 0x354   :  { %v1779_v63 = vmul.f32 %v3810_v56, %v1775_v59  ;;  %v3782_v55 = vld [vmem:[#allocation15 + $0x308] sm:$0xff]  ;;  %v3773_v59 = vld [vmem:[#allocation15 + $0x2c0] sm:$0xff] }
 0x356   :  { %v1783_v0 = vadd.f32 %v3811_v60, %v1779_v63 }
 0x357   :  { %v1764_v1 = vld [vmem:[#allocation5 + $0x2b] ss:$2 sm:$0x1f]  ;;  %v1526_v3 = vpop.f32.mrf.mxu3 }
 0x358   :  { %v1770_v5 = vadd.f32 %v1768_v2, %v1764_v1  ;;  %vm1785_vm4 = vcmp.ge.f32.partialorder %v1783_v0, 0.0  ;;  %v1787_v6 = vmul.f32 0.2, %v1783_v0 }
 0x35a   :  { %v1776_v8 = vadd.f32 %v1774_v7, %v1770_v5  ;;  %v1789_v9 = vsel %vm1785_vm4, %v1783_v0, %v1787_v6  ;;  %v3771_v5 = vld [vmem:[#allocation15 + $0x2b0] sm:$0xff] }
 0x35b   :  { %1791 = vst [vmem:[#allocation8 + $0xd] sm:$0xff] %v1789_v9  ;;  %v3769_v9 = vld [vmem:[#allocation15 + $0x2a0] sm:$0xff] }
 0x35c   :  { %v1780_v10 = vmul.f32 %v3810_v56, %v1776_v8  ;;  %v3733_v56 = vld [vmem:[#allocation15 + $0x180] sm:$0xff]  ;;  %v3770_v8 = vld [vmem:[#allocation15 + $0x2a8] sm:$0xff] }
 0x35e   :  { %v1784_v11 = vadd.f32 %v3811_v60, %v1780_v10  ;;  %v3781_v60 = vld [vmem:[#allocation15 + $0x300] sm:$0xff]  ;;  %v3768_v10 = vld [vmem:[#allocation15 + $0x298] sm:$0xff] }
 0x360   :  { %vm1786_vm5 = vcmp.ge.f32.partialorder %v1784_v11, 0.0  ;;  %v1788_v12 = vmul.f32 0.2, %v1784_v11 }
 0x362   :  { %v1794_v15 = vld [vmem:[#allocation8] ss:$13 sm:$0x3]  ;;  %v1878_v62 = vld [vmem:[#allocation8 + $0x1] ss:$13 sm:$0x3]  ;;  %v1790_v17 = vsel %vm1786_vm5, %v1784_v11, %v1788_v12 }
 0x363   :  { %v1795_v18 = vpack.c.bf16 %v1794_v15, %v1794_v15  ;;  %v1879_v19 = vpack.c.bf16 %v1878_v62, %v1878_v62  ;;  %v2042_v20 = vld [vmem:[#allocation8 + $0x3] ss:$13 sm:$0x3]  ;;  %v2124_v21 = vld [vmem:[#allocation8 + $0x4] ss:$13 sm:$0x3] }
 0x364   :  { %v2043_v22 = vpack.c.bf16 %v2042_v20, %v2042_v20  ;;  %v2125_v23 = vpack.c.bf16 %v2124_v21, %v2124_v21  ;;  %1792 = vst [vmem:[#allocation8 + $0x15] sm:$0x1f] %v1790_v17  ;;  %v1960_v37 = vld [vmem:[#allocation8 + $0x2] ss:$13 sm:$0x3]  ;;  %v3767_v11 = vld [vmem:[#allocation15 + $0x290] sm:$0xff] }
 0x365   :  { %1868 = vmatmul.bf16.vlgmr.msrb.gmra.mxu2 %v1795_v18  ;;  %1953 = vmatmul.bf16.vlgmr.msrb.gmra.mxu3 %v1879_v19  ;;  %v2206_v38 = vld [vmem:[#allocation8 + $0x5] ss:$13 sm:$0x3]  ;;  %v2370_v39 = vld [vmem:[#allocation8 + $0x7] ss:$13 sm:$0x3]  ;;  %v1961_v41 = vpack.c.bf16 %v1960_v37, %v1960_v37 }
 0x366   :  { %2117 = vmatmul.bf16.vlgmr.msrb.gmra.mxu0 %v2043_v22  ;;  %2199 = vmatmul.bf16.vlgmr.msrb.gmra.mxu1 %v2125_v23  ;;  %v2207_v42 = vpack.c.bf16 %v2206_v38, %v2206_v38  ;;  %v2371_v45 = vpack.c.bf16 %v2370_v39, %v2370_v39  ;;  %v2288_v61 = vld [vmem:[#allocation8 + $0x6] ss:$13 sm:$0x3]  ;;  %v3766_v12 = vld [vmem:[#allocation15 + $0x288] sm:$0xff] }
 0x367   :  { %2355 = vmatpush.bf16.msrb.mxu2 %v3740_v13  ;;  %2601 = vmatpush.bf16.msrb.mxu3 %v3764_v14  ;;  %v2289_v2 = vpack.c.bf16 %v2288_v61, %v2288_v61  ;;  %v3765_v13 = vld [vmem:[#allocation15 + $0x280] sm:$0xff] }
 0x368   :  { %2765 = vmatpush.bf16.msrb.mxu0 %v3780_v24  ;;  %2847 = vmatpush.bf16.msrb.mxu1 %v3788_v48 }
 0x36b   :  { %2356 = vmatpush.bf16.msrb.mxu2 %v3739_v25  ;;  %2602 = vmatpush.bf16.msrb.mxu3 %v3763_v26  ;;  %v2452_v40 = vld [vmem:[#allocation8 + $0x8] ss:$13 sm:$0x3]  ;;  %v2534_v63 = vld [vmem:[#allocation8 + $0x9] ss:$13 sm:$0x3] }
 0x36c   :  { %2766 = vmatpush.bf16.msrb.mxu0 %v3779_v27  ;;  %2848 = vmatpush.bf16.msrb.mxu1 %v3787_v28  ;;  %v2453_v16 = vpack.c.bf16 %v2452_v40, %v2452_v40  ;;  %v2698_v0 = vld [vmem:[#allocation8 + $0xb] ss:$13 sm:$0x3]  ;;  %v2780_v1 = vld [vmem:[#allocation8 + $0xc] ss:$13 sm:$0x3]  ;;  %v2535_v3 = vpack.c.bf16 %v2534_v63, %v2534_v63 }
 0x36d   :  { %v2699_v6 = vpack.c.bf16 %v2698_v0, %v2698_v0  ;;  %v2781_v7 = vpack.c.bf16 %v2780_v1, %v2780_v1  ;;  %v2616_v14 = vld [vmem:[#allocation8 + $0xa] ss:$13 sm:$0x3] }
 0x36e   :  { %v2617_v15 = vpack.c.bf16 %v2616_v14, %v2616_v14 }
 0x36f   :  { %2357 = vmatpush.bf16.msrb.mxu2 %v3738_v29  ;;  %2603 = vmatpush.bf16.msrb.mxu3 %v3762_v30 }
 0x370   :  { %2767 = vmatpush.bf16.msrb.mxu0 %v3778_v31  ;;  %2849 = vmatpush.bf16.msrb.mxu1 %v3786_v32  ;;  %v3812_v31 = vld [vmem:[%s4242_s8] ss:$0 sm:$0xff] }
 0x373   :  { %2358 = vmatpush.bf16.msrb.mxu2 %v3737_v33  ;;  %2604 = vmatpush.bf16.msrb.mxu3 %v3761_v34 }
 0x374   :  { %2768 = vmatpush.bf16.msrb.mxu0 %v3777_v35  ;;  %2850 = vmatpush.bf16.msrb.mxu1 %v3785_v36 }
 0x375   :  { %2035 = vmatmul.bf16.vlgmr.msra.gmra.mxu2 %v1961_v41  ;;  %2281 = vmatmul.bf16.vlgmr.msra.gmra.mxu3 %v2207_v42 }
 0x376   :  { %2445 = vmatmul.bf16.vlgmr.msra.gmra.mxu0 %v2371_v45  ;;  %2527 = vmatmul.bf16.vlgmr.msra.gmra.mxu1 %v2453_v16 }
 0x377   :  { %2359 = vmatpush.bf16.msrb.mxu2 %v3736_v43  ;;  %2605 = vmatpush.bf16.msrb.mxu3 %v3760_v44 }
 0x378   :  { %2769 = vmatpush.bf16.msrb.mxu0 %v3776_v46  ;;  %2851 = vmatpush.bf16.msrb.mxu1 %v3784_v4 }
 0x37b   :  { %2360 = vmatpush.bf16.msrb.mxu2 %v3735_v47  ;;  %2606 = vmatpush.bf16.msrb.mxu3 %v3759_v49 }
 0x37c   :  { %2770 = vmatpush.bf16.msrb.mxu0 %v3775_v50  ;;  %2852 = vmatpush.bf16.msrb.mxu1 %v3783_v51 }
 0x37f   :  { %2361 = vmatpush.bf16.msrb.mxu2 %v3734_v52  ;;  %2607 = vmatpush.bf16.msrb.mxu3 %v3758_v53  ;;  %v3813_v53 = vld [vmem:[%s4243_s9] ss:$0 sm:$0xff] }
 0x380   :  { %2771 = vmatpush.bf16.msrb.mxu0 %v3774_v54  ;;  %2853 = vmatpush.bf16.msrb.mxu1 %v3782_v55 }
 0x383   :  { %2362 = vmatpush.bf16.msrb.mxu2 %v3733_v56  ;;  %2608 = vmatpush.bf16.msrb.mxu3 %v3757_v57 }
 0x384   :  { %2772 = vmatpush.bf16.msrb.mxu0 %v3773_v59  ;;  %2854 = vmatpush.bf16.msrb.mxu1 %v3781_v60  ;;  %v3814_v59 = vld [vmem:[#allocation9] ss:$0 sm:$0xff] }
 0x386   :  { %2363 = vmatmul.bf16.vlgmr.msrb.gmra.mxu2 %v2289_v2  ;;  %2609 = vmatmul.bf16.vlgmr.msrb.gmra.mxu3 %v2535_v3 }
 0x387   :  { %2683 = vmatpush.bf16.msra.mxu2 %v3772_v58  ;;  %2773 = vmatmul.bf16.vlgmr.msrb.gmra.mxu0 %v2699_v6 }
 0x388   :  { %2855 = vmatmul.bf16.vlgmr.msrb.gmra.mxu1 %v2781_v7 }
 0x38b   :  { %2684 = vmatpush.bf16.msra.mxu2 %v3771_v5 }
 0x38f   :  { %2685 = vmatpush.bf16.msra.mxu2 %v3770_v8 }
 0x393   :  { %2686 = vmatpush.bf16.msra.mxu2 %v3769_v9 }
 0x397   :  { %2687 = vmatpush.bf16.msra.mxu2 %v3768_v10 }
 0x39b   :  { %2688 = vmatpush.bf16.msra.mxu2 %v3767_v11 }
 0x39f   :  { %2689 = vmatpush.bf16.msra.mxu2 %v3766_v12 }
 0x3a3   :  { %2690 = vmatpush.bf16.msra.mxu2 %v3765_v13 }
 0x3a6   :  { %2691 = vmatmul.bf16.vlgmr.msra.gmra.mxu2 %v2617_v15 }
 0x3e3   :  { %v2118_v62 = vpop.f32.mrf.mxu0  ;;  %v2200_v17 = vpop.f32.mrf.mxu1 }
 0x3e8   :  { %v1869_v18 = vpop.f32.mrf.mxu2  ;;  %v1954_v19 = vpop.f32.mrf.mxu3 }
 0x3e9   :  { %v1876_v33 = vadd.f32 %v3812_v31, %v1869_v18 }
 0x3eb   :  { %v2120_v20 = vpop.f32.mrf.mxu0  ;;  %v2202_v21 = vpop.f32.mrf.mxu1  ;;  %v1958_v35 = vadd.f32 %v1954_v19, %v1876_v33 }
 0x3f0   :  { %v1871_v22 = vpop.f32.mrf.mxu2  ;;  %v1956_v23 = vpop.f32.mrf.mxu3 }
 0x3f3   :  { %v2446_v24 = vpop.f32.mrf.mxu0  ;;  %v2528_v48 = vpop.f32.mrf.mxu1 }
 0x3f8   :  { %v2036_v25 = vpop.f32.mrf.mxu2  ;;  %v2282_v26 = vpop.f32.mrf.mxu3 }
 0x3f9   :  { %v2040_v38 = vadd.f32 %v2036_v25, %v1958_v35 }
 0x3fb   :  { %v2448_v27 = vpop.f32.mrf.mxu0  ;;  %v2530_v28 = vpop.f32.mrf.mxu1  ;;  %v2122_v41 = vadd.f32 %v2118_v62, %v2040_v38 }
 0x3fd   :  { %v2204_v44 = vadd.f32 %v2200_v17, %v2122_v41 }
 0x3ff   :  { %v2286_v45 = vadd.f32 %v2282_v26, %v2204_v44 }
 0x400   :  { %v2038_v29 = vpop.f32.mrf.mxu2  ;;  %v2284_v30 = vpop.f32.mrf.mxu3 }
 0x404   :  { %v2774_v32 = vpop.f32.mrf.mxu0 }
 0x405   :  { %v2856_v34 = vpop.f32.mrf.mxu1 }
 0x409   :  { %v2364_v36 = vpop.f32.mrf.mxu2  ;;  %v2610_v37 = vpop.f32.mrf.mxu3 }
 0x40a   :  { %v2368_v16 = vadd.f32 %v2364_v36, %v2286_v45 }
 0x40c   :  { %v2776_v39 = vpop.f32.mrf.mxu0  ;;  %v2450_v46 = vadd.f32 %v2446_v24, %v2368_v16 }
 0x40d   :  { %v2858_v40 = vpop.f32.mrf.mxu1 }
 0x40e   :  { %v2532_v4 = vadd.f32 %v2528_v48, %v2450_v46 }
 0x410   :  { %v2614_v47 = vadd.f32 %v2610_v37, %v2532_v4 }
 0x411   :  { %v2366_v42 = vpop.f32.mrf.mxu2  ;;  %v2612_v43 = vpop.f32.mrf.mxu3 }
 0x429   :  { %v2692_v49 = vpop.f32.mrf.mxu2 }
 0x42a   :  { %v2696_v50 = vadd.f32 %v2692_v49, %v2614_v47 }
 0x42c   :  { %v2778_v51 = vadd.f32 %v2774_v32, %v2696_v50 }
 0x42e   :  { %v2860_v52 = vadd.f32 %v2856_v34, %v2778_v51 }
 0x430   :  { %vm2861_vm6 = vcmp.ge.f32.partialorder %v2860_v52, 0.0  ;;  %v2862_v54 = vmul.f32 0.2, %v2860_v52 }
 0x431   :  { %v2694_v55 = vpop.f32.mrf.mxu2 }
 0x432   :  { %v2863_v56 = vsel %vm2861_vm6, %v2860_v52, %v2862_v54 }
 0x433   :  { %v2868_v57 = vmul.f32 %v3813_v53, %v2863_v56 }
 0x435   :  { %v2869_v58 = vsel %vm174_vm0, %v2868_v57, 0.0 }
 0x436   :  { %2870 = vadd.xlane.f32.xlu0 %v2869_v58 }
 0x4a9   :  { %v2871_v60 = vpop.xlane.xlu0 %2870 }
 0x4aa   :  { %v2876_v61 = vadd.f32 %v3814_v59, %v2871_v60 }
 0x4ac   :  { %2878 = vst.msk [vmem:[%s4245_s11] sm:$0x3] %vm2877_vm7, %v2876_v61 }
 0x4ad   :  { %2883 = vsyncpa [#allocation11], 1 }
 0x4ae   :  { %2884 = vsyncpa [#allocation13], 1 }
 0x4af   :  { %2885 = vsyncpa [#allocation16], 1 }

</bundles_post_ra>
